<compile_context>
chip_gen: v6e
topology: v6e:2x2x1
jax: 0.10.0
libtpu: 0.0.40
codegen_flags: <defaults>
</compile_context>

<pallas_src>
import functools
import math

import jax
import jax.numpy as jnp
from jax.experimental import pallas as pl
from jax.experimental.pallas import tpu as pltpu

NUM_CLASSES = 5
LANE = 128            # TPU lane width; all narrow outputs are padded to this.

# EfficientNet surrogate sizes
STEM_CH = 32
STEM_K_PAD = 32       # 9 taps * 3 channels = 27, padded to 32
EFF_FEAT = 1280       # in_features of efficientnet_b0.classifier[1]

# ViT surrogate sizes
PATCH = 16
EMBED = 128           # real vit_base uses 768
NHEAD = 4             # real vit_base uses 12


# ----------------------------------------------------------------------------
# Small helpers
# ----------------------------------------------------------------------------

def _pad_cols(w, n):
    return jnp.pad(w, ((0, 0), (0, n - w.shape[1])))


def _pad_rows(w, n):
    return jnp.pad(w, ((0, n - w.shape[0]), (0, 0)))


def _row(v):
    return v.reshape(1, -1)


def _pick_tile(p, cap=4096):
    """Full P when it fits under the cap, else largest 8-aligned divisor <= cap."""
    if p <= cap:
        return p
    for t in range(cap - (cap % 8), 7, -8):
        if p % t == 0:
            return t
    return p   # fallback: single big tile (correct, just larger than cap)


def _bf16_dot(a, w):
    """bf16 MXU matmul with f32 accumulation (no-op casts if already bf16)."""
    return jnp.dot(a.astype(jnp.bfloat16), w.astype(jnp.bfloat16),
                   preferred_element_type=jnp.float32)


# ----------------------------------------------------------------------------
# Kernel E: stem conv (matmul over im2col patches) + SiLU + fused GAP + head
#   grid = (B, num_spatial_tiles); batch "parallel", spatial "arbitrary".
#   At the last spatial tile the pooled row goes straight through the
#   1280-d SiLU projection and the 5-way classifier (no second pallas_call,
#   no HBM round trip of the pooled features).
#   output: eff_logits [B, 1, 128]  (lanes 5: are exact zeros)
# ----------------------------------------------------------------------------

def _stem_head_kernel(x_ref, sw_ref, sb_ref, hw_ref, hb_ref, cw_ref, cb_ref,
                      o_ref, acc_ref, *, inv_p):
    pi = pl.program_id(1)

    @pl.when(pi == 0)
    def _():
        acc_ref[...] = jnp.zeros_like(acc_ref)

    x = x_ref[0]                                            # [tile_p, 32] bf16
    y = _bf16_dot(x, sw_ref[...]) + sb_ref[...]             # [tile_p, 128] f32
    y = y * jax.nn.sigmoid(y)                               # SiLU
    acc_ref[...] += jnp.sum(y, axis=0, keepdims=True)       # running spatial sum

    @pl.when(pi == pl.num_programs(1) - 1)
    def _():
        pooled = acc_ref[...] * inv_p                       # mean over H*W [1,128]
        h = _bf16_dot(pooled, hw_ref[...]) + hb_ref[...]    # [1, 1280]
        h = h * jax.nn.sigmoid(h)                           # SiLU
        o_ref[0] = _bf16_dot(h, cw_ref[...]) + cb_ref[...]  # [1, 128]


# ----------------------------------------------------------------------------
# Kernel V: whole ViT surrogate for one batch element + ensemble average
#   grid = (B,), "parallel" (uses both v7x TensorCores).
#   CLS token / positional embedding pre-folded host-side; padded key rows
#   masked before softmax; per-head outputs written into a VMEM scratch.
# ----------------------------------------------------------------------------

def _vit_block_kernel(p_ref, pw_ref, pb_ref, pos_ref,
                      g1_ref, b1_ref, qkvw_ref, qkvb_ref,
                      projw_ref, projb_ref, g2_ref, b2_ref,
                      f1w_ref, f1b_ref, f2w_ref, f2b_ref,
                      gf_ref, bf_ref, hw_ref, hb_ref, eff_ref,
                      o_ref, ao_ref, *, nhead, dh, s_valid):
    def ln(x, g, b):
        mu = jnp.mean(x, axis=-1, keepdims=True)
        xc = x - mu
        var = jnp.mean(xc * xc, axis=-1, keepdims=True)
        return xc * jax.lax.rsqrt(var + 1e-6) * g + b

    d = nhead * dh
    s_pad = p_ref.shape[1]

    # Patch embedding; CLS token & positional embedding already folded into pos.
    tokens = _bf16_dot(p_ref[0], pw_ref[...]) + pb_ref[...] + pos_ref[...]  # [S,D]

    # key mask for the zero-padded sequence rows (row 0 = CLS is always valid).
    col = jax.lax.broadcasted_iota(jnp.int32, (1, s_pad), 1)
    kmask = jnp.where(col < s_valid, 0.0, -1e30)

    # Attention sub-block (scale already folded into q weights/bias host-side).
    h = ln(tokens, g1_ref[...], b1_ref[...])
    qkv = _bf16_dot(h, qkvw_ref[...]) + qkvb_ref[...]                       # [S,3D]
    for i in range(nhead):
        q = qkv[:, i * dh:(i + 1) * dh].astype(jnp.bfloat16)
        k = qkv[:, d + i * dh:d + (i + 1) * dh].astype(jnp.bfloat16)
        v = qkv[:, 2 * d + i * dh:2 * d + (i + 1) * dh].astype(jnp.bfloat16)
        s = jnp.einsum("qd,kd->qk", q, k, preferred_element_type=jnp.float32)
        s = s + kmask
        s = s - jnp.max(s, axis=-1, keepdims=True)
        pr = jnp.exp(s)
        pr = pr * pl.reciprocal(jnp.sum(pr, axis=-1, keepdims=True), approx=True)
        ao_ref[:, i * dh:(i + 1) * dh] = jnp.einsum(
            "qk,kd->qd", pr.astype(jnp.bfloat16), v,
            preferred_element_type=jnp.float32)
    t = tokens + _bf16_dot(ao_ref[...], projw_ref[...]) + projb_ref[...]

    # MLP sub-block.
    h2 = ln(t, g2_ref[...], b2_ref[...])
    m = jax.nn.gelu(_bf16_dot(h2, f1w_ref[...]) + f1b_ref[...], approximate=True)
    t = t + _bf16_dot(m, f2w_ref[...]) + f2b_ref[...]

    # Final norm, CLS head, and the ensemble average (out1 + out2) / 2.
    tf = ln(t, gf_ref[...], bf_ref[...])
    logits2 = _bf16_dot(tf[0:1, :], hw_ref[...]) + hb_ref[...]              # [1,128]
    o_ref[0] = (eff_ref[0] + logits2) * 0.5


# ----------------------------------------------------------------------------
# Branch wrappers
# ----------------------------------------------------------------------------

def effnet_branch(p, x_nhwc):
    # TODO(synk): full MBConv stack not reproduced; stem(3x3 s2)+SiLU -> GAP ->
    # 1280-d head -> 5-way classifier surrogate.
    B, H, W, C = x_nhwc.shape
    Ho, Wo = H // 2, W // 2
    P = Ho * Wo
    K1 = 9 * C

    # im2col for the 3x3 stride-2 stem; bf16 with K padded 27->32 so DMA rows
    # are 64-byte aligned and HBM traffic is halved.
    # TODO(synk): 9 per-tap accumulated matmuls from the padded NHWC input would
    # avoid the 2.25x im2col materialization entirely at real resolutions.
    xp = jnp.pad(x_nhwc, ((0, 0), (1, 1), (1, 1), (0, 0)))
    cols = [xp[:, i:i + 2 * Ho - 1:2, j:j + 2 * Wo - 1:2, :]
            for i in range(3) for j in range(3)]
    patches = jnp.concatenate(cols, axis=-1).reshape(B, P, K1)
    patches = jnp.pad(patches, ((0, 0), (0, 0), (0, STEM_K_PAD - K1)))
    patches = patches.astype(jnp.bfloat16)

    tile_p = _pick_tile(P)
    eff = pl.pallas_call(
        functools.partial(_stem_head_kernel, inv_p=1.0 / float(P)),
        out_shape=jax.ShapeDtypeStruct((B, 1, LANE), jnp.float32),
        grid_spec=pltpu.PrefetchScalarGridSpec(
            num_scalar_prefetch=0,
            grid=(B, P // tile_p),
            in_specs=[
                pl.BlockSpec((1, tile_p, STEM_K_PAD), lambda b, i: (b, i, 0)),
                pl.BlockSpec((STEM_K_PAD, LANE), lambda b, i: (0, 0)),
                pl.BlockSpec((1, LANE), lambda b, i: (0, 0)),
                pl.BlockSpec((LANE, EFF_FEAT), lambda b, i: (0, 0)),
                pl.BlockSpec((1, EFF_FEAT), lambda b, i: (0, 0)),
                pl.BlockSpec((EFF_FEAT, LANE), lambda b, i: (0, 0)),
                pl.BlockSpec((1, LANE), lambda b, i: (0, 0)),
            ],
            out_specs=pl.BlockSpec((1, 1, LANE), lambda b, i: (b, 0, 0)),
            scratch_shapes=[pltpu.VMEM((1, LANE), jnp.float32)],
        ),
        compiler_params=pltpu.CompilerParams(
            dimension_semantics=("parallel", "arbitrary"),
            vmem_limit_bytes=32 * 1024 * 1024),
    )(patches, p["stem_w"], p["stem_b"], p["headproj_w"], p["headproj_b"],
      p["cls_w"], p["cls_b"])
    return eff                                               # [B, 1, 128]


def vit_branch(p, x_nhwc, eff_logits3d):
    # TODO(synk): real vit_base_patch16_224 has depth=12, dim=768, heads=12 with
    # pretrained weights; here a single transformer block with dim=128 is used.
    B, H, W, C = x_nhwc.shape
    Hp, Wp = H // PATCH, W // PATCH
    Np = Hp * Wp
    Kp = PATCH * PATCH * C
    S = Np + 1
    S_pad = p["pos"].shape[0]

    # Non-overlapping patch extraction (pure layout, channel-last), bf16.
    # Row 0 is the (zero) CLS patch; trailing zero rows pad S to a sublane
    # multiple — their keys get masked in-kernel.
    patches = (x_nhwc.reshape(B, Hp, PATCH, Wp, PATCH, C)
               .transpose(0, 1, 3, 2, 4, 5)
               .reshape(B, Np, Kp))
    patches = jnp.pad(patches, ((0, 0), (1, S_pad - S), (0, 0)))
    patches = patches.astype(jnp.bfloat16)

    def fs(a):  # full-array block, constant index over the (B,) grid
        zeros = (0,) * a.ndim
        return pl.BlockSpec(a.shape, lambda b: zeros)

    kern = functools.partial(_vit_block_kernel, nhead=NHEAD, dh=EMBED // NHEAD,
                             s_valid=S)
    out = pl.pallas_call(
        kern,
        out_shape=jax.ShapeDtypeStruct((B, 1, LANE), jnp.float32),
        grid_spec=pltpu.PrefetchScalarGridSpec(
            num_scalar_prefetch=0,
            grid=(B,),
            in_specs=[
                pl.BlockSpec((1, S_pad, Kp), lambda b: (b, 0, 0)),
                fs(p["patch_w"]), fs(p["patch_b"]), fs(p["pos"]),
                fs(p["ln1_g"]), fs(p["ln1_b"]),
                fs(p["qkv_w"]), fs(p["qkv_b"]),
                fs(p["proj_w"]), fs(p["proj_b"]),
                fs(p["ln2_g"]), fs(p["ln2_b"]),
                fs(p["fc1_w"]), fs(p["fc1_b"]),
                fs(p["fc2_w"]), fs(p["fc2_b"]),
                fs(p["lnf_g"]), fs(p["lnf_b"]),
                fs(p["head_w"]), fs(p["head_b"]),
                pl.BlockSpec((1, 1, LANE), lambda b: (b, 0, 0)),
            ],
            out_specs=pl.BlockSpec((1, 1, LANE), lambda b: (b, 0, 0)),
            scratch_shapes=[pltpu.VMEM((S_pad, EMBED), jnp.float32)],
        ),
        compiler_params=pltpu.CompilerParams(
            dimension_semantics=("parallel",),
            vmem_limit_bytes=32 * 1024 * 1024),
    )(patches, p["patch_w"], p["patch_b"], p["pos"],
      p["ln1_g"], p["ln1_b"], p["qkv_w"], p["qkv_b"], p["proj_w"], p["proj_b"],
      p["ln2_g"], p["ln2_b"], p["fc1_w"], p["fc1_b"], p["fc2_w"], p["fc2_b"],
      p["lnf_g"], p["lnf_b"], p["head_w"], p["head_b"], eff_logits3d)
    return out


# ----------------------------------------------------------------------------
# Ensemble forward (matches EnsembleModel.forward semantics: (out1+out2)/2)
# ----------------------------------------------------------------------------

def ensemble_forward(p, x):
    B = x.shape[0]
    x_nhwc = jnp.transpose(x, (0, 2, 3, 1))       # NCHW -> NHWC once
    eff3d = effnet_branch(p, x_nhwc)              # [B, 1, 128] padded logits1
    avg = vit_branch(p, x_nhwc, eff3d)            # [B, 1, 128] = (l1 + l2)/2 padded
    return avg.reshape(B, LANE)[:, :NUM_CLASSES]  # [B, 5]


# ----------------------------------------------------------------------------
# Deterministic parameter initialization (logical shapes) + device layout prep
# ----------------------------------------------------------------------------

def _dense(key, fan_in, fan_out):
    w = jax.random.normal(key, (fan_in, fan_out), jnp.float32) / jnp.sqrt(
        jnp.asarray(fan_in, jnp.float32))
    b = jnp.zeros((fan_out,), jnp.float32)
    return w, b


def init_params(img_hw):
    H, W = img_hw
    Hp, Wp = H // PATCH, W // PATCH
    S = Hp * Wp + 1
    keys = jax.random.split(jax.random.PRNGKey(1), 16)
    p = {}
    # EfficientNet surrogate
    p["stem_w"], p["stem_b"] = _dense(keys[0], 3 * 9, STEM_CH)
    p["headproj_w"], p["headproj_b"] = _dense(keys[1], STEM_CH, EFF_FEAT)
    p["cls_w"], p["cls_b"] = _dense(keys[2], EFF_FEAT, NUM_CLASSES)
    # ViT surrogate
    p["patch_w"], p["patch_b"] = _dense(keys[3], 3 * PATCH * PATCH, EMBED)
    p["cls_tok"] = 0.02 * jax.random.normal(keys[4], (1, 1, EMBED), jnp.float32)
    p["pos"] = 0.02 * jax.random.normal(keys[5], (1, S, EMBED), jnp.float32)
    p["ln1_g"] = jnp.ones((EMBED,), jnp.float32)
    p["ln1_b"] = jnp.zeros((EMBED,), jnp.float32)
    p["qkv_w"], p["qkv_b"] = _dense(keys[6], EMBED, 3 * EMBED)
    p["proj_w"], p["proj_b"] = _dense(keys[7], EMBED, EMBED)
    p["ln2_g"] = jnp.ones((EMBED,), jnp.float32)
    p["ln2_b"] = jnp.zeros((EMBED,), jnp.float32)
    p["fc1_w"], p["fc1_b"] = _dense(keys[8], EMBED, 4 * EMBED)
    p["fc2_w"], p["fc2_b"] = _dense(keys[9], 4 * EMBED, EMBED)
    p["lnf_g"] = jnp.ones((EMBED,), jnp.float32)
    p["lnf_b"] = jnp.zeros((EMBED,), jnp.float32)
    p["head_w"], p["head_b"] = _dense(keys[10], EMBED, NUM_CLASSES)
    return p


def prepare_params(p):
    """Pad lane-sparse weights to 128 lanes, cast matmul weights to bf16,
    fold the attention scale into the q columns, and fold the CLS token into
    row 0 of a sublane-padded positional table (biases/LN stay f32)."""
    q = {}
    # EfficientNet surrogate
    q["stem_w"] = _pad_rows(_pad_cols(p["stem_w"], LANE),
                            STEM_K_PAD).astype(jnp.bfloat16)     # [32, 128] bf16
    q["stem_b"] = _pad_cols(_row(p["stem_b"]), LANE)             # [1, 128] f32
    q["headproj_w"] = _pad_rows(p["headproj_w"],
                                LANE).astype(jnp.bfloat16)       # [128, 1280] bf16
    q["headproj_b"] = _row(p["headproj_b"])                      # [1, 1280] f32
    q["cls_w"] = _pad_cols(p["cls_w"], LANE).astype(jnp.bfloat16)  # [1280, 128]
    q["cls_b"] = _pad_cols(_row(p["cls_b"]), LANE)               # [1, 128] f32
    # ViT surrogate
    q["patch_w"] = p["patch_w"].astype(jnp.bfloat16)             # [768, 128] bf16
    q["patch_b"] = _row(p["patch_b"])                            # [1, 128] f32
    # CLS token folded into row 0 of pos (row 0 of the data is a zero patch, so
    # its embedding is exactly patch_b; correct for that here).  Pad S to a
    # multiple of 8 sublanes; padded keys are masked in-kernel.
    S = p["pos"].shape[1]
    S_pad = ((S + 7) // 8) * 8
    pos = p["pos"].reshape(S, EMBED)
    pos = pos.at[0].add(p["cls_tok"].reshape(EMBED) - p["patch_b"])
    q["pos"] = _pad_rows(pos, S_pad)                             # [S_pad, 128] f32
    for k in ("ln1", "ln2", "lnf"):
        q[k + "_g"] = _row(p[k + "_g"])
        q[k + "_b"] = _row(p[k + "_b"])
    # Fold 1/sqrt(dh) into the q columns of the fused QKV projection.
    scale = 1.0 / math.sqrt(EMBED // NHEAD)
    qkv_w = p["qkv_w"].at[:, :EMBED].multiply(scale)
    qkv_b = p["qkv_b"].at[:EMBED].multiply(scale)
    q["qkv_w"] = qkv_w.astype(jnp.bfloat16)                      # [128, 384] bf16
    q["qkv_b"] = _row(qkv_b)                                     # [1, 384] f32
    q["proj_w"] = p["proj_w"].astype(jnp.bfloat16)
    q["proj_b"] = _row(p["proj_b"])
    q["fc1_w"] = p["fc1_w"].astype(jnp.bfloat16)
    q["fc1_b"] = _row(p["fc1_b"])
    q["fc2_w"] = p["fc2_w"].astype(jnp.bfloat16)
    q["fc2_b"] = _row(p["fc2_b"])
    q["head_w"] = _pad_cols(p["head_w"], LANE).astype(jnp.bfloat16)  # [128, 128]
    q["head_b"] = _pad_cols(_row(p["head_b"]), LANE)             # [1, 128] f32
    return q


if __name__ == "__main__":
    B, C, H, W = 2, 3, 32, 32     # small NCHW input (PyTorch convention)
    x = jax.random.normal(jax.random.PRNGKey(0), (B, C, H, W), jnp.float32)
    params = prepare_params(init_params((H, W)))

    fwd = jax.jit(ensemble_forward)
    out = jax.block_until_ready(fwd(params, x))

    assert out.shape == (B, NUM_CLASSES), out.shape
    assert out.dtype == jnp.float32
    assert bool(jnp.all(jnp.isfinite(out)))
    print("KERNEL_OK")
</pallas_src>

<mosaic_0001>
module attributes {stable_mosaic.version = 11 : i64} {
  func.func @_stem_head_kernel(%arg0: i32, %arg1: i32, %arg2: memref<1x256x32xbf16, #tpu.memory_space<vmem>>, %arg3: memref<32x128xbf16, #tpu.memory_space<vmem>>, %arg4: memref<1x128xf32, #tpu.memory_space<vmem>>, %arg5: memref<128x1280xbf16, #tpu.memory_space<vmem>>, %arg6: memref<1x1280xf32, #tpu.memory_space<vmem>>, %arg7: memref<1280x128xbf16, #tpu.memory_space<vmem>>, %arg8: memref<1x128xf32, #tpu.memory_space<vmem>>, %arg9: memref<1x1x128xf32, #tpu.memory_space<vmem>>, %arg10: memref<1x128xf32, #tpu.memory_space<vmem>>) attributes {dimension_semantics = [#tpu.dimension_semantics<parallel>, #tpu.dimension_semantics<arbitrary>], iteration_bounds = array<i64: 2, 1>, scalar_prefetch = 0 : i64, scratch_operands = 1 : i64, tpu.core_type = #tpu.core_type<tc>, window_params = [{transform_indices = @transform_0, window_bounds = array<i64: 1, 256, 32>}, {pipeline_mode = #tpu.pipeline_mode<synchronous>, transform_indices = @transform_1, window_bounds = array<i64: 32, 128>}, {pipeline_mode = #tpu.pipeline_mode<synchronous>, transform_indices = @transform_2, window_bounds = array<i64: 1, 128>}, {pipeline_mode = #tpu.pipeline_mode<synchronous>, transform_indices = @transform_3, window_bounds = array<i64: 128, 1280>}, {pipeline_mode = #tpu.pipeline_mode<synchronous>, transform_indices = @transform_4, window_bounds = array<i64: 1, 1280>}, {pipeline_mode = #tpu.pipeline_mode<synchronous>, transform_indices = @transform_5, window_bounds = array<i64: 1280, 128>}, {pipeline_mode = #tpu.pipeline_mode<synchronous>, transform_indices = @transform_6, window_bounds = array<i64: 1, 128>}, {transform_indices = @transform_7, window_bounds = array<i64: 1, 1, 128>}]} {
    %c0_i32 = arith.constant 0 : i32
    %0 = arith.cmpi eq, %arg1, %c0_i32 : i32
    %1 = arith.extui %0 : i1 to i32
    %c0_i32_0 = arith.constant 0 : i32
    %2 = arith.cmpi ne, %1, %c0_i32_0 : i32
    scf.if %2 {
      %cst_15 = arith.constant 0.000000e+00 : f32
      %24 = vector.broadcast %cst_15 : f32 to vector<1x128xf32>
      %c0_16 = arith.constant 0 : index
      %c0_17 = arith.constant 0 : index
      %25 = vector.load %arg10[%c0_16, %c0_17] : memref<1x128xf32, #tpu.memory_space<vmem>>, vector<1x128xf32>
      tpu.vector_store %arg10[%c0_16, %c0_17], %24 {strides = array<i32>} : memref<1x128xf32, #tpu.memory_space<vmem>>, vector<1x128xf32>,
    } else {
    }
    %c0 = arith.constant 0 : index
    %c0_1 = arith.constant 0 : index
    %c0_2 = arith.constant 0 : index
    %3 = vector.load %arg2[%c0, %c0_1, %c0_2] : memref<1x256x32xbf16, #tpu.memory_space<vmem>>, vector<1x256x32xbf16>
    %4 = vector.shape_cast %3 : vector<1x256x32xbf16> to vector<256x32xbf16>
    %c0_3 = arith.constant 0 : index
    %c0_4 = arith.constant 0 : index
    %5 = vector.load %arg3[%c0_3, %c0_4] : memref<32x128xbf16, #tpu.memory_space<vmem>>, vector<32x128xbf16>
    %cst = arith.constant dense<0.000000e+00> : vector<256x128xf32>
    %6 = tpu.matmul %4, %5, %cst {dimension_numbers = #tpu.dot_dimension_numbers<[1], [0], [0], [1], [0, 0, 1, 1], [], []>} : vector<256x32xbf16>, vector<32x128xbf16>, vector<256x128xf32> -> vector<256x128xf32>
    %c0_5 = arith.constant 0 : index
    %c0_6 = arith.constant 0 : index
    %7 = vector.load %arg4[%c0_5, %c0_6] : memref<1x128xf32, #tpu.memory_space<vmem>>, vector<1x128xf32>
    %8 = vector.broadcast %7 : vector<1x128xf32> to vector<256x128xf32>
    %9 = arith.addf %6, %8 : vector<256x128xf32>
    %10 = arith.negf %9 : vector<256x128xf32>
    %11 = math.exp %10 : vector<256x128xf32>
    %cst_7 = arith.constant 1.000000e+00 : f32
    %12 = vector.broadcast %cst_7 : f32 to vector<256x128xf32>
    %13 = arith.addf %12, %11 : vector<256x128xf32>
    %14 = arith.divf %12, %13 : vector<256x128xf32>
    %15 = arith.mulf %9, %14 : vector<256x128xf32>
    %c0_8 = arith.constant 0 : index
    %c0_9 = arith.constant 0 : index
    %16 = vector.load %arg10[%c0_8, %c0_9] : memref<1x128xf32, #tpu.memory_space<vmem>>, vector<1x128xf32>
    %cst_10 = arith.constant dense<0.000000e+00> : vector<128xf32>
    %17 = vector.multi_reduction <add>, %15, %cst_10 [0] : vector<256x128xf32> to vector<128xf32>
    %18 = vector.shape_cast %17 : vector<128xf32> to vector<1x128xf32>
    %19 = arith.addf %16, %18 : vector<1x128xf32>
    %c0_11 = arith.constant 0 : index
    %c0_12 = arith.constant 0 : index
    %20 = vector.load %arg10[%c0_11, %c0_12] : memref<1x128xf32, #tpu.memory_space<vmem>>, vector<1x128xf32>
    tpu.vector_store %arg10[%c0_11, %c0_12], %19 {strides = array<i32>} : memref<1x128xf32, #tpu.memory_space<vmem>>, vector<1x128xf32>,
    %c0_i32_13 = arith.constant 0 : i32
    %21 = arith.cmpi eq, %arg1, %c0_i32_13 : i32
    %22 = arith.extui %21 : i1 to i32
    %c0_i32_14 = arith.constant 0 : i32
    %23 = arith.cmpi ne, %22, %c0_i32_14 : i32
    scf.if %23 {
      %c0_15 = arith.constant 0 : index
      %c0_16 = arith.constant 0 : index
      %24 = vector.load %arg10[%c0_15, %c0_16] : memref<1x128xf32, #tpu.memory_space<vmem>>, vector<1x128xf32>
      %cst_17 = arith.constant 3.906250e-03 : f32
      %25 = vector.broadcast %cst_17 : f32 to vector<1x128xf32>
      %26 = arith.mulf %24, %25 : vector<1x128xf32>
      %c0_18 = arith.constant 0 : index
      %c0_19 = arith.constant 0 : index
      %27 = vector.load %arg5[%c0_18, %c0_19] : memref<128x1280xbf16, #tpu.memory_space<vmem>>, vector<128x1280xbf16>
      %28 = arith.truncf %26 : vector<1x128xf32> to vector<1x128xbf16>
      %cst_20 = arith.constant dense<0.000000e+00> : vector<1x1280xf32>
      %29 = tpu.matmul %28, %27, %cst_20 {dimension_numbers = #tpu.dot_dimension_numbers<[1], [0], [0], [1], [0, 0, 1, 1], [], []>} : vector<1x128xbf16>, vector<128x1280xbf16>, vector<1x1280xf32> -> vector<1x1280xf32>
      %c0_21 = arith.constant 0 : index
      %c0_22 = arith.constant 0 : index
      %30 = vector.load %arg6[%c0_21, %c0_22] : memref<1x1280xf32, #tpu.memory_space<vmem>>, vector<1x1280xf32>
      %31 = arith.addf %29, %30 : vector<1x1280xf32>
      %32 = arith.negf %31 : vector<1x1280xf32>
      %33 = math.exp %32 : vector<1x1280xf32>
      %cst_23 = arith.constant 1.000000e+00 : f32
      %34 = vector.broadcast %cst_23 : f32 to vector<1x1280xf32>
      %35 = arith.addf %34, %33 : vector<1x1280xf32>
      %36 = arith.divf %34, %35 : vector<1x1280xf32>
      %37 = arith.mulf %31, %36 : vector<1x1280xf32>
      %c0_24 = arith.constant 0 : index
      %c0_25 = arith.constant 0 : index
      %38 = vector.load %arg7[%c0_24, %c0_25] : memref<1280x128xbf16, #tpu.memory_space<vmem>>, vector<1280x128xbf16>
      %39 = arith.truncf %37 : vector<1x1280xf32> to vector<1x1280xbf16>
      %cst_26 = arith.constant dense<0.000000e+00> : vector<1x128xf32>
      %40 = tpu.matmul %39, %38, %cst_26 {dimension_numbers = #tpu.dot_dimension_numbers<[1], [0], [0], [1], [0, 0, 1, 1], [], []>} : vector<1x1280xbf16>, vector<1280x128xbf16>, vector<1x128xf32> -> vector<1x128xf32>
      %c0_27 = arith.constant 0 : index
      %c0_28 = arith.constant 0 : index
      %41 = vector.load %arg8[%c0_27, %c0_28] : memref<1x128xf32, #tpu.memory_space<vmem>>, vector<1x128xf32>
      %42 = arith.addf %40, %41 : vector<1x128xf32>
      %c0_29 = arith.constant 0 : index
      %c0_30 = arith.constant 0 : index
      %c0_31 = arith.constant 0 : index
      %43 = vector.load %arg9[%c0_29, %c0_30, %c0_31] : memref<1x1x128xf32, #tpu.memory_space<vmem>>, vector<1x1x128xf32>
      %44 = vector.shape_cast %43 : vector<1x1x128xf32> to vector<1x128xf32>
      %45 = vector.shape_cast %42 : vector<1x128xf32> to vector<1x1x128xf32>
      tpu.vector_store %arg9[%c0_29, %c0_30, %c0_31], %45 {strides = array<i32>} : memref<1x1x128xf32, #tpu.memory_space<vmem>>, vector<1x1x128xf32>,
    } else {
    }
    return
  }
  func.func @transform_0(%arg0: i32, %arg1: i32) -> (i32, i32, i32) {
    %c0_i32 = arith.constant 0 : i32
    %c0_i32_0 = arith.constant 0 : i32
    return %arg0, %arg1, %c0_i32 : i32, i32, i32
  }
  func.func @transform_1(%arg0: i32, %arg1: i32) -> (i32, i32) {
    %c0_i32 = arith.constant 0 : i32
    %c0_i32_0 = arith.constant 0 : i32
    %c0_i32_1 = arith.constant 0 : i32
    return %c0_i32, %c0_i32_0 : i32, i32
  }
  func.func @transform_2(%arg0: i32, %arg1: i32) -> (i32, i32) {
    %c0_i32 = arith.constant 0 : i32
    %c0_i32_0 = arith.constant 0 : i32
    %c0_i32_1 = arith.constant 0 : i32
    return %c0_i32, %c0_i32_0 : i32, i32
  }
  func.func @transform_3(%arg0: i32, %arg1: i32) -> (i32, i32) {
    %c0_i32 = arith.constant 0 : i32
    %c0_i32_0 = arith.constant 0 : i32
    %c0_i32_1 = arith.constant 0 : i32
    return %c0_i32, %c0_i32_0 : i32, i32
  }
  func.func @transform_4(%arg0: i32, %arg1: i32) -> (i32, i32) {
    %c0_i32 = arith.constant 0 : i32
    %c0_i32_0 = arith.constant 0 : i32
    %c0_i32_1 = arith.constant 0 : i32
    return %c0_i32, %c0_i32_0 : i32, i32
  }
  func.func @transform_5(%arg0: i32, %arg1: i32) -> (i32, i32) {
    %c0_i32 = arith.constant 0 : i32
    %c0_i32_0 = arith.constant 0 : i32
    %c0_i32_1 = arith.constant 0 : i32
    return %c0_i32, %c0_i32_0 : i32, i32
  }
  func.func @transform_6(%arg0: i32, %arg1: i32) -> (i32, i32) {
    %c0_i32 = arith.constant 0 : i32
    %c0_i32_0 = arith.constant 0 : i32
    %c0_i32_1 = arith.constant 0 : i32
    return %c0_i32, %c0_i32_0 : i32, i32
  }
  func.func @transform_7(%arg0: i32, %arg1: i32) -> (i32, i32, i32) {
    %c0_i32 = arith.constant 0 : i32
    %c0_i32_0 = arith.constant 0 : i32
    %c0_i32_1 = arith.constant 0 : i32
    return %arg0, %c0_i32, %c0_i32_0 : i32, i32, i32
  }
}

module attributes {stable_mosaic.version = 11 : i64} {
  func.func @_vit_block_kernel(%arg0: i32, %arg1: memref<1x8x768xbf16, #tpu.memory_space<vmem>>, %arg2: memref<768x128xbf16, #tpu.memory_space<vmem>>, %arg3: memref<1x128xf32, #tpu.memory_space<vmem>>, %arg4: memref<8x128xf32, #tpu.memory_space<vmem>>, %arg5: memref<1x128xf32, #tpu.memory_space<vmem>>, %arg6: memref<1x128xf32, #tpu.memory_space<vmem>>, %arg7: memref<128x384xbf16, #tpu.memory_space<vmem>>, %arg8: memref<1x384xf32, #tpu.memory_space<vmem>>, %arg9: memref<128x128xbf16, #tpu.memory_space<vmem>>, %arg10: memref<1x128xf32, #tpu.memory_space<vmem>>, %arg11: memref<1x128xf32, #tpu.memory_space<vmem>>, %arg12: memref<1x128xf32, #tpu.memory_space<vmem>>, %arg13: memref<128x512xbf16, #tpu.memory_space<vmem>>, %arg14: memref<1x512xf32, #tpu.memory_space<vmem>>, %arg15: memref<512x128xbf16, #tpu.memory_space<vmem>>, %arg16: memref<1x128xf32, #tpu.memory_space<vmem>>, %arg17: memref<1x128xf32, #tpu.memory_space<vmem>>, %arg18: memref<1x128xf32, #tpu.memory_space<vmem>>, %arg19: memref<128x128xbf16, #tpu.memory_space<vmem>>, %arg20: memref<1x128xf32, #tpu.memory_space<vmem>>, %arg21: memref<1x1x128xf32, #tpu.memory_space<vmem>>, %arg22: memref<1x1x128xf32, #tpu.memory_space<vmem>>, %arg23: memref<8x128xf32, #tpu.memory_space<vmem>>) attributes {dimension_semantics = [#tpu.dimension_semantics<parallel>], iteration_bounds = array<i64: 2>, scalar_prefetch = 0 : i64, scratch_operands = 1 : i64, tpu.core_type = #tpu.core_type<tc>, window_params = [{transform_indices = @transform_0, window_bounds = array<i64: 1, 8, 768>}, {pipeline_mode = #tpu.pipeline_mode<synchronous>, transform_indices = @transform_1, window_bounds = array<i64: 768, 128>}, {pipeline_mode = #tpu.pipeline_mode<synchronous>, transform_indices = @transform_2, window_bounds = array<i64: 1, 128>}, {pipeline_mode = #tpu.pipeline_mode<synchronous>, transform_indices = @transform_3, window_bounds = array<i64: 8, 128>}, {pipeline_mode = #tpu.pipeline_mode<synchronous>, transform_indices = @transform_4, window_bounds = array<i64: 1, 128>}, {pipeline_mode = #tpu.pipeline_mode<synchronous>, transform_indices = @transform_5, window_bounds = array<i64: 1, 128>}, {pipeline_mode = #tpu.pipeline_mode<synchronous>, transform_indices = @transform_6, window_bounds = array<i64: 128, 384>}, {pipeline_mode = #tpu.pipeline_mode<synchronous>, transform_indices = @transform_7, window_bounds = array<i64: 1, 384>}, {pipeline_mode = #tpu.pipeline_mode<synchronous>, transform_indices = @transform_8, window_bounds = array<i64: 128, 128>}, {pipeline_mode = #tpu.pipeline_mode<synchronous>, transform_indices = @transform_9, window_bounds = array<i64: 1, 128>}, {pipeline_mode = #tpu.pipeline_mode<synchronous>, transform_indices = @transform_10, window_bounds = array<i64: 1, 128>}, {pipeline_mode = #tpu.pipeline_mode<synchronous>, transform_indices = @transform_11, window_bounds = array<i64: 1, 128>}, {pipeline_mode = #tpu.pipeline_mode<synchronous>, transform_indices = @transform_12, window_bounds = array<i64: 128, 512>}, {pipeline_mode = #tpu.pipeline_mode<synchronous>, transform_indices = @transform_13, window_bounds = array<i64: 1, 512>}, {pipeline_mode = #tpu.pipeline_mode<synchronous>, transform_indices = @transform_14, window_bounds = array<i64: 512, 128>}, {pipeline_mode = #tpu.pipeline_mode<synchronous>, transform_indices = @transform_15, window_bounds = array<i64: 1, 128>}, {pipeline_mode = #tpu.pipeline_mode<synchronous>, transform_indices = @transform_16, window_bounds = array<i64: 1, 128>}, {pipeline_mode = #tpu.pipeline_mode<synchronous>, transform_indices = @transform_17, window_bounds = array<i64: 1, 128>}, {pipeline_mode = #tpu.pipeline_mode<synchronous>, transform_indices = @transform_18, window_bounds = array<i64: 128, 128>}, {pipeline_mode = #tpu.pipeline_mode<synchronous>, transform_indices = @transform_19, window_bounds = array<i64: 1, 128>}, {transform_indices = @transform_20, window_bounds = array<i64: 1, 1, 128>}, {transform_indices = @transform_21, window_bounds = array<i64: 1, 1, 128>}]} {
    %c0 = arith.constant 0 : index
    %c0_0 = arith.constant 0 : index
    %c0_1 = arith.constant 0 : index
    %0 = vector.load %arg1[%c0, %c0_0, %c0_1] : memref<1x8x768xbf16, #tpu.memory_space<vmem>>, vector<1x8x768xbf16>
    %1 = vector.shape_cast %0 : vector<1x8x768xbf16> to vector<8x768xbf16>
    %c0_2 = arith.constant 0 : index
    %c0_3 = arith.constant 0 : index
    %2 = vector.load %arg2[%c0_2, %c0_3] : memref<768x128xbf16, #tpu.memory_space<vmem>>, vector<768x128xbf16>
    %cst = arith.constant dense<0.000000e+00> : vector<8x128xf32>
    %3 = tpu.matmul %1, %2, %cst {dimension_numbers = #tpu.dot_dimension_numbers<[1], [0], [0], [1], [0, 0, 1, 1], [], []>} : vector<8x768xbf16>, vector<768x128xbf16>, vector<8x128xf32> -> vector<8x128xf32>
    %c0_4 = arith.constant 0 : index
    %c0_5 = arith.constant 0 : index
    %4 = vector.load %arg3[%c0_4, %c0_5] : memref<1x128xf32, #tpu.memory_space<vmem>>, vector<1x128xf32>
    %5 = vector.broadcast %4 : vector<1x128xf32> to vector<8x128xf32>
    %6 = arith.addf %3, %5 : vector<8x128xf32>
    %c0_6 = arith.constant 0 : index
    %c0_7 = arith.constant 0 : index
    %7 = vector.load %arg4[%c0_6, %c0_7] : memref<8x128xf32, #tpu.memory_space<vmem>>, vector<8x128xf32>
    %8 = arith.addf %6, %7 : vector<8x128xf32>
    %9 = tpu.iota {dimensions = array<i32: 1>} : vector<1x8xi32>
    %c5_i32 = arith.constant 5 : i32
    %10 = vector.broadcast %c5_i32 : i32 to vector<1x8xi32>
    %11 = arith.cmpi slt, %9, %10 : vector<1x8xi32>
    %cst_8 = arith.constant 0.000000e+00 : f32
    %cst_9 = arith.constant -1.000000e+30 : f32
    %12 = vector.broadcast %cst_8 : f32 to vector<1x8xf32>
    %13 = vector.broadcast %cst_9 : f32 to vector<1x8xf32>
    %14 = arith.select %11, %12, %13 : vector<1x8xi1>, vector<1x8xf32>
    %c0_10 = arith.constant 0 : index
    %c0_11 = arith.constant 0 : index
    %15 = vector.load %arg5[%c0_10, %c0_11] : memref<1x128xf32, #tpu.memory_space<vmem>>, vector<1x128xf32>
    %c0_12 = arith.constant 0 : index
    %c0_13 = arith.constant 0 : index
    %16 = vector.load %arg6[%c0_12, %c0_13] : memref<1x128xf32, #tpu.memory_space<vmem>>, vector<1x128xf32>
    %cst_14 = arith.constant dense<0.000000e+00> : vector<8xf32>
    %17 = vector.multi_reduction <add>, %8, %cst_14 [1] : vector<8x128xf32> to vector<8xf32>
    %18 = vector.shape_cast %17 : vector<8xf32> to vector<8x1xf32>
    %cst_15 = arith.constant 1.280000e+02 : f32
    %19 = vector.broadcast %cst_15 : f32 to vector<8x1xf32>
    %20 = arith.divf %18, %19 : vector<8x1xf32>
    %21 = vector.broadcast %20 : vector<8x1xf32> to vector<8x128xf32>
    %22 = arith.subf %8, %21 : vector<8x128xf32>
    %23 = arith.mulf %22, %22 : vector<8x128xf32>
    %cst_16 = arith.constant dense<0.000000e+00> : vector<8xf32>
    %24 = vector.multi_reduction <add>, %23, %cst_16 [1] : vector<8x128xf32> to vector<8xf32>
    %25 = vector.shape_cast %24 : vector<8xf32> to vector<8x1xf32>
    %cst_17 = arith.constant 1.280000e+02 : f32
    %26 = vector.broadcast %cst_17 : f32 to vector<8x1xf32>
    %27 = arith.divf %25, %26 : vector<8x1xf32>
    %cst_18 = arith.constant 9.99999997E-7 : f32
    %28 = vector.broadcast %cst_18 : f32 to vector<8x1xf32>
    %29 = arith.addf %27, %28 : vector<8x1xf32>
    %30 = math.rsqrt %29 : vector<8x1xf32>
    %31 = vector.broadcast %30 : vector<8x1xf32> to vector<8x128xf32>
    %32 = arith.mulf %22, %31 : vector<8x128xf32>
    %33 = vector.broadcast %15 : vector<1x128xf32> to vector<8x128xf32>
    %34 = arith.mulf %32, %33 : vector<8x128xf32>
    %35 = vector.broadcast %16 : vector<1x128xf32> to vector<8x128xf32>
    %36 = arith.addf %34, %35 : vector<8x128xf32>
    %c0_19 = arith.constant 0 : index
    %c0_20 = arith.constant 0 : index
    %37 = vector.load %arg7[%c0_19, %c0_20] : memref<128x384xbf16, #tpu.memory_space<vmem>>, vector<128x384xbf16>
    %38 = arith.truncf %36 : vector<8x128xf32> to vector<8x128xbf16>
    %cst_21 = arith.constant dense<0.000000e+00> : vector<8x384xf32>
    %39 = tpu.matmul %38, %37, %cst_21 {dimension_numbers = #tpu.dot_dimension_numbers<[1], [0], [0], [1], [0, 0, 1, 1], [], []>} : vector<8x128xbf16>, vector<128x384xbf16>, vector<8x384xf32> -> vector<8x384xf32>
    %c0_22 = arith.constant 0 : index
    %c0_23 = arith.constant 0 : index
    %40 = vector.load %arg8[%c0_22, %c0_23] : memref<1x384xf32, #tpu.memory_space<vmem>>, vector<1x384xf32>
    %41 = vector.broadcast %40 : vector<1x384xf32> to vector<8x384xf32>
    %42 = arith.addf %39, %41 : vector<8x384xf32>
    %43 = vector.extract_strided_slice %42 {offsets = [0, 0], sizes = [8, 32], strides = [1, 1]} : vector<8x384xf32> to vector<8x32xf32>
    %44 = arith.truncf %43 : vector<8x32xf32> to vector<8x32xbf16>
    %45 = vector.extract_strided_slice %42 {offsets = [0, 128], sizes = [8, 32], strides = [1, 1]} : vector<8x384xf32> to vector<8x32xf32>
    %46 = arith.truncf %45 : vector<8x32xf32> to vector<8x32xbf16>
    %47 = vector.extract_strided_slice %42 {offsets = [0, 256], sizes = [8, 32], strides = [1, 1]} : vector<8x384xf32> to vector<8x32xf32>
    %48 = arith.truncf %47 : vector<8x32xf32> to vector<8x32xbf16>
    "tpu.trace_start"() <{level = 10 : i32, message = "qd,kd->qk"}> : () -> ()
    %cst_24 = arith.constant dense<0.000000e+00> : vector<8x8xf32>
    %49 = tpu.matmul %44, %46, %cst_24 {dimension_numbers = #tpu.dot_dimension_numbers<[1], [1], [0], [0], [0, 0, 1, 0], [], []>} : vector<8x32xbf16>, vector<8x32xbf16>, vector<8x8xf32> -> vector<8x8xf32>
    "tpu.trace_stop"() : () -> ()
    %50 = vector.broadcast %14 : vector<1x8xf32> to vector<8x8xf32>
    %51 = arith.addf %49, %50 : vector<8x8xf32>
    %cst_25 = arith.constant dense<0xFF800000> : vector<8xf32>
    %52 = vector.multi_reduction <maximumf>, %51, %cst_25 [1] : vector<8x8xf32> to vector<8xf32>
    %53 = vector.shape_cast %52 : vector<8xf32> to vector<8x1xf32>
    %54 = vector.broadcast %53 : vector<8x1xf32> to vector<8x8xf32>
    %55 = arith.subf %51, %54 : vector<8x8xf32>
    %56 = math.exp %55 : vector<8x8xf32>
    %cst_26 = arith.constant dense<0.000000e+00> : vector<8xf32>
    %57 = vector.multi_reduction <add>, %56, %cst_26 [1] : vector<8x8xf32> to vector<8xf32>
    %58 = vector.shape_cast %57 : vector<8xf32> to vector<8x1xf32>
    %59 = tpu.reciprocal %58 {approx = true} : vector<8x1xf32> -> vector<8x1xf32>
    %60 = vector.broadcast %59 : vector<8x1xf32> to vector<8x8xf32>
    %61 = arith.mulf %56, %60 : vector<8x8xf32>
    %62 = arith.truncf %61 : vector<8x8xf32> to vector<8x8xbf16>
    "tpu.trace_start"() <{level = 10 : i32, message = "qk,kd->qd"}> : () -> ()
    %cst_27 = arith.constant dense<0.000000e+00> : vector<8x32xf32>
    %63 = tpu.matmul %62, %48, %cst_27 {dimension_numbers = #tpu.dot_dimension_numbers<[1], [0], [0], [1], [0, 0, 1, 1], [], []>} : vector<8x8xbf16>, vector<8x32xbf16>, vector<8x32xf32> -> vector<8x32xf32>
    "tpu.trace_stop"() : () -> ()
    %c0_28 = arith.constant 0 : index
    %c0_29 = arith.constant 0 : index
    %64 = vector.load %arg23[%c0_28, %c0_29] : memref<8x128xf32, #tpu.memory_space<vmem>>, vector<8x32xf32>
    tpu.vector_store %arg23[%c0_28, %c0_29], %63 {strides = array<i32>} : memref<8x128xf32, #tpu.memory_space<vmem>>, vector<8x32xf32>,
    %65 = vector.extract_strided_slice %42 {offsets = [0, 32], sizes = [8, 32], strides = [1, 1]} : vector<8x384xf32> to vector<8x32xf32>
    %66 = arith.truncf %65 : vector<8x32xf32> to vector<8x32xbf16>
    %67 = vector.extract_strided_slice %42 {offsets = [0, 160], sizes = [8, 32], strides = [1, 1]} : vector<8x384xf32> to vector<8x32xf32>
    %68 = arith.truncf %67 : vector<8x32xf32> to vector<8x32xbf16>
    %69 = vector.extract_strided_slice %42 {offsets = [0, 288], sizes = [8, 32], strides = [1, 1]} : vector<8x384xf32> to vector<8x32xf32>
    %70 = arith.truncf %69 : vector<8x32xf32> to vector<8x32xbf16>
    "tpu.trace_start"() <{level = 10 : i32, message = "qd,kd->qk"}> : () -> ()
    %cst_30 = arith.constant dense<0.000000e+00> : vector<8x8xf32>
    %71 = tpu.matmul %66, %68, %cst_30 {dimension_numbers = #tpu.dot_dimension_numbers<[1], [1], [0], [0], [0, 0, 1, 0], [], []>} : vector<8x32xbf16>, vector<8x32xbf16>, vector<8x8xf32> -> vector<8x8xf32>
    "tpu.trace_stop"() : () -> ()
    %72 = vector.broadcast %14 : vector<1x8xf32> to vector<8x8xf32>
    %73 = arith.addf %71, %72 : vector<8x8xf32>
    %cst_31 = arith.constant dense<0xFF800000> : vector<8xf32>
    %74 = vector.multi_reduction <maximumf>, %73, %cst_31 [1] : vector<8x8xf32> to vector<8xf32>
    %75 = vector.shape_cast %74 : vector<8xf32> to vector<8x1xf32>
    %76 = vector.broadcast %75 : vector<8x1xf32> to vector<8x8xf32>
    %77 = arith.subf %73, %76 : vector<8x8xf32>
    %78 = math.exp %77 : vector<8x8xf32>
    %cst_32 = arith.constant dense<0.000000e+00> : vector<8xf32>
    %79 = vector.multi_reduction <add>, %78, %cst_32 [1] : vector<8x8xf32> to vector<8xf32>
    %80 = vector.shape_cast %79 : vector<8xf32> to vector<8x1xf32>
    %81 = tpu.reciprocal %80 {approx = true} : vector<8x1xf32> -> vector<8x1xf32>
    %82 = vector.broadcast %81 : vector<8x1xf32> to vector<8x8xf32>
    %83 = arith.mulf %78, %82 : vector<8x8xf32>
    %84 = arith.truncf %83 : vector<8x8xf32> to vector<8x8xbf16>
    "tpu.trace_start"() <{level = 10 : i32, message = "qk,kd->qd"}> : () -> ()
    %cst_33 = arith.constant dense<0.000000e+00> : vector<8x32xf32>
    %85 = tpu.matmul %84, %70, %cst_33 {dimension_numbers = #tpu.dot_dimension_numbers<[1], [0], [0], [1], [0, 0, 1, 1], [], []>} : vector<8x8xbf16>, vector<8x32xbf16>, vector<8x32xf32> -> vector<8x32xf32>
    "tpu.trace_stop"() : () -> ()
    %c0_34 = arith.constant 0 : index
    %c32 = arith.constant 32 : index
    %86 = vector.load %arg23[%c0_34, %c32] : memref<8x128xf32, #tpu.memory_space<vmem>>, vector<8x32xf32>
    tpu.vector_store %arg23[%c0_34, %c32], %85 {strides = array<i32>} : memref<8x128xf32, #tpu.memory_space<vmem>>, vector<8x32xf32>,
    %87 = vector.extract_strided_slice %42 {offsets = [0, 64], sizes = [8, 32], strides = [1, 1]} : vector<8x384xf32> to vector<8x32xf32>
    %88 = arith.truncf %87 : vector<8x32xf32> to vector<8x32xbf16>
    %89 = vector.extract_strided_slice %42 {offsets = [0, 192], sizes = [8, 32], strides = [1, 1]} : vector<8x384xf32> to vector<8x32xf32>
    %90 = arith.truncf %89 : vector<8x32xf32> to vector<8x32xbf16>
    %91 = vector.extract_strided_slice %42 {offsets = [0, 320], sizes = [8, 32], strides = [1, 1]} : vector<8x384xf32> to vector<8x32xf32>
    %92 = arith.truncf %91 : vector<8x32xf32> to vector<8x32xbf16>
    "tpu.trace_start"() <{level = 10 : i32, message = "qd,kd->qk"}> : () -> ()
    %cst_35 = arith.constant dense<0.000000e+00> : vector<8x8xf32>
    %93 = tpu.matmul %88, %90, %cst_35 {dimension_numbers = #tpu.dot_dimension_numbers<[1], [1], [0], [0], [0, 0, 1, 0], [], []>} : vector<8x32xbf16>, vector<8x32xbf16>, vector<8x8xf32> -> vector<8x8xf32>
    "tpu.trace_stop"() : () -> ()
    %94 = vector.broadcast %14 : vector<1x8xf32> to vector<8x8xf32>
    %95 = arith.addf %93, %94 : vector<8x8xf32>
    %cst_36 = arith.constant dense<0xFF800000> : vector<8xf32>
    %96 = vector.multi_reduction <maximumf>, %95, %cst_36 [1] : vector<8x8xf32> to vector<8xf32>
    %97 = vector.shape_cast %96 : vector<8xf32> to vector<8x1xf32>
    %98 = vector.broadcast %97 : vector<8x1xf32> to vector<8x8xf32>
    %99 = arith.subf %95, %98 : vector<8x8xf32>
    %100 = math.exp %99 : vector<8x8xf32>
    %cst_37 = arith.constant dense<0.000000e+00> : vector<8xf32>
    %101 = vector.multi_reduction <add>, %100, %cst_37 [1] : vector<8x8xf32> to vector<8xf32>
    %102 = vector.shape_cast %101 : vector<8xf32> to vector<8x1xf32>
    %103 = tpu.reciprocal %102 {approx = true} : vector<8x1xf32> -> vector<8x1xf32>
    %104 = vector.broadcast %103 : vector<8x1xf32> to vector<8x8xf32>
    %105 = arith.mulf %100, %104 : vector<8x8xf32>
    %106 = arith.truncf %105 : vector<8x8xf32> to vector<8x8xbf16>
    "tpu.trace_start"() <{level = 10 : i32, message = "qk,kd->qd"}> : () -> ()
    %cst_38 = arith.constant dense<0.000000e+00> : vector<8x32xf32>
    %107 = tpu.matmul %106, %92, %cst_38 {dimension_numbers = #tpu.dot_dimension_numbers<[1], [0], [0], [1], [0, 0, 1, 1], [], []>} : vector<8x8xbf16>, vector<8x32xbf16>, vector<8x32xf32> -> vector<8x32xf32>
    "tpu.trace_stop"() : () -> ()
    %c0_39 = arith.constant 0 : index
    %c64 = arith.constant 64 : index
    %108 = vector.load %arg23[%c0_39, %c64] : memref<8x128xf32, #tpu.memory_space<vmem>>, vector<8x32xf32>
    tpu.vector_store %arg23[%c0_39, %c64], %107 {strides = array<i32>} : memref<8x128xf32, #tpu.memory_space<vmem>>, vector<8x32xf32>,
    %109 = vector.extract_strided_slice %42 {offsets = [0, 96], sizes = [8, 32], strides = [1, 1]} : vector<8x384xf32> to vector<8x32xf32>
    %110 = arith.truncf %109 : vector<8x32xf32> to vector<8x32xbf16>
    %111 = vector.extract_strided_slice %42 {offsets = [0, 224], sizes = [8, 32], strides = [1, 1]} : vector<8x384xf32> to vector<8x32xf32>
    %112 = arith.truncf %111 : vector<8x32xf32> to vector<8x32xbf16>
    %113 = vector.extract_strided_slice %42 {offsets = [0, 352], sizes = [8, 32], strides = [1, 1]} : vector<8x384xf32> to vector<8x32xf32>
    %114 = arith.truncf %113 : vector<8x32xf32> to vector<8x32xbf16>
    "tpu.trace_start"() <{level = 10 : i32, message = "qd,kd->qk"}> : () -> ()
    %cst_40 = arith.constant dense<0.000000e+00> : vector<8x8xf32>
    %115 = tpu.matmul %110, %112, %cst_40 {dimension_numbers = #tpu.dot_dimension_numbers<[1], [1], [0], [0], [0, 0, 1, 0], [], []>} : vector<8x32xbf16>, vector<8x32xbf16>, vector<8x8xf32> -> vector<8x8xf32>
    "tpu.trace_stop"() : () -> ()
    %116 = vector.broadcast %14 : vector<1x8xf32> to vector<8x8xf32>
    %117 = arith.addf %115, %116 : vector<8x8xf32>
    %cst_41 = arith.constant dense<0xFF800000> : vector<8xf32>
    %118 = vector.multi_reduction <maximumf>, %117, %cst_41 [1] : vector<8x8xf32> to vector<8xf32>
    %119 = vector.shape_cast %118 : vector<8xf32> to vector<8x1xf32>
    %120 = vector.broadcast %119 : vector<8x1xf32> to vector<8x8xf32>
    %121 = arith.subf %117, %120 : vector<8x8xf32>
    %122 = math.exp %121 : vector<8x8xf32>
    %cst_42 = arith.constant dense<0.000000e+00> : vector<8xf32>
    %123 = vector.multi_reduction <add>, %122, %cst_42 [1] : vector<8x8xf32> to vector<8xf32>
    %124 = vector.shape_cast %123 : vector<8xf32> to vector<8x1xf32>
    %125 = tpu.reciprocal %124 {approx = true} : vector<8x1xf32> -> vector<8x1xf32>
    %126 = vector.broadcast %125 : vector<8x1xf32> to vector<8x8xf32>
    %127 = arith.mulf %122, %126 : vector<8x8xf32>
    %128 = arith.truncf %127 : vector<8x8xf32> to vector<8x8xbf16>
    "tpu.trace_start"() <{level = 10 : i32, message = "qk,kd->qd"}> : () -> ()
    %cst_43 = arith.constant dense<0.000000e+00> : vector<8x32xf32>
    %129 = tpu.matmul %128, %114, %cst_43 {dimension_numbers = #tpu.dot_dimension_numbers<[1], [0], [0], [1], [0, 0, 1, 1], [], []>} : vector<8x8xbf16>, vector<8x32xbf16>, vector<8x32xf32> -> vector<8x32xf32>
    "tpu.trace_stop"() : () -> ()
    %c0_44 = arith.constant 0 : index
    %c96 = arith.constant 96 : index
    %130 = vector.load %arg23[%c0_44, %c96] : memref<8x128xf32, #tpu.memory_space<vmem>>, vector<8x32xf32>
    tpu.vector_store %arg23[%c0_44, %c96], %129 {strides = array<i32>} : memref<8x128xf32, #tpu.memory_space<vmem>>, vector<8x32xf32>,
    %c0_45 = arith.constant 0 : index
    %c0_46 = arith.constant 0 : index
    %131 = vector.load %arg23[%c0_45, %c0_46] : memref<8x128xf32, #tpu.memory_space<vmem>>, vector<8x128xf32>
    %c0_47 = arith.constant 0 : index
    %c0_48 = arith.constant 0 : index
    %132 = vector.load %arg9[%c0_47, %c0_48] : memref<128x128xbf16, #tpu.memory_space<vmem>>, vector<128x128xbf16>
    %133 = arith.truncf %131 : vector<8x128xf32> to vector<8x128xbf16>
    %cst_49 = arith.constant dense<0.000000e+00> : vector<8x128xf32>
    %134 = tpu.matmul %133, %132, %cst_49 {dimension_numbers = #tpu.dot_dimension_numbers<[1], [0], [0], [1], [0, 0, 1, 1], [], []>} : vector<8x128xbf16>, vector<128x128xbf16>, vector<8x128xf32> -> vector<8x128xf32>
    %135 = arith.addf %8, %134 : vector<8x128xf32>
    %c0_50 = arith.constant 0 : index
    %c0_51 = arith.constant 0 : index
    %136 = vector.load %arg10[%c0_50, %c0_51] : memref<1x128xf32, #tpu.memory_space<vmem>>, vector<1x128xf32>
    %137 = vector.broadcast %136 : vector<1x128xf32> to vector<8x128xf32>
    %138 = arith.addf %135, %137 : vector<8x128xf32>
    %c0_52 = arith.constant 0 : index
    %c0_53 = arith.constant 0 : index
    %139 = vector.load %arg11[%c0_52, %c0_53] : memref<1x128xf32, #tpu.memory_space<vmem>>, vector<1x128xf32>
    %c0_54 = arith.constant 0 : index
    %c0_55 = arith.constant 0 : index
    %140 = vector.load %arg12[%c0_54, %c0_55] : memref<1x128xf32, #tpu.memory_space<vmem>>, vector<1x128xf32>
    %cst_56 = arith.constant dense<0.000000e+00> : vector<8xf32>
    %141 = vector.multi_reduction <add>, %138, %cst_56 [1] : vector<8x128xf32> to vector<8xf32>
    %142 = vector.shape_cast %141 : vector<8xf32> to vector<8x1xf32>
    %cst_57 = arith.constant 1.280000e+02 : f32
    %143 = vector.broadcast %cst_57 : f32 to vector<8x1xf32>
    %144 = arith.divf %142, %143 : vector<8x1xf32>
    %145 = vector.broadcast %144 : vector<8x1xf32> to vector<8x128xf32>
    %146 = arith.subf %138, %145 : vector<8x128xf32>
    %147 = arith.mulf %146, %146 : vector<8x128xf32>
    %cst_58 = arith.constant dense<0.000000e+00> : vector<8xf32>
    %148 = vector.multi_reduction <add>, %147, %cst_58 [1] : vector<8x128xf32> to vector<8xf32>
    %149 = vector.shape_cast %148 : vector<8xf32> to vector<8x1xf32>
    %cst_59 = arith.constant 1.280000e+02 : f32
    %150 = vector.broadcast %cst_59 : f32 to vector<8x1xf32>
    %151 = arith.divf %149, %150 : vector<8x1xf32>
    %cst_60 = arith.constant 9.99999997E-7 : f32
    %152 = vector.broadcast %cst_60 : f32 to vector<8x1xf32>
    %153 = arith.addf %151, %152 : vector<8x1xf32>
    %154 = math.rsqrt %153 : vector<8x1xf32>
    %155 = vector.broadcast %154 : vector<8x1xf32> to vector<8x128xf32>
    %156 = arith.mulf %146, %155 : vector<8x128xf32>
    %157 = vector.broadcast %139 : vector<1x128xf32> to vector<8x128xf32>
    %158 = arith.mulf %156, %157 : vector<8x128xf32>
    %159 = vector.broadcast %140 : vector<1x128xf32> to vector<8x128xf32>
    %160 = arith.addf %158, %159 : vector<8x128xf32>
    %c0_61 = arith.constant 0 : index
    %c0_62 = arith.constant 0 : index
    %161 = vector.load %arg13[%c0_61, %c0_62] : memref<128x512xbf16, #tpu.memory_space<vmem>>, vector<128x512xbf16>
    %162 = arith.truncf %160 : vector<8x128xf32> to vector<8x128xbf16>
    %cst_63 = arith.constant dense<0.000000e+00> : vector<8x512xf32>
    %163 = tpu.matmul %162, %161, %cst_63 {dimension_numbers = #tpu.dot_dimension_numbers<[1], [0], [0], [1], [0, 0, 1, 1], [], []>} : vector<8x128xbf16>, vector<128x512xbf16>, vector<8x512xf32> -> vector<8x512xf32>
    %c0_64 = arith.constant 0 : index
    %c0_65 = arith.constant 0 : index
    %164 = vector.load %arg14[%c0_64, %c0_65] : memref<1x512xf32, #tpu.memory_space<vmem>>, vector<1x512xf32>
    %165 = vector.broadcast %164 : vector<1x512xf32> to vector<8x512xf32>
    %166 = arith.addf %163, %165 : vector<8x512xf32>
    %167 = arith.mulf %166, %166 : vector<8x512xf32>
    %168 = arith.mulf %166, %167 : vector<8x512xf32>
    %cst_66 = arith.constant 4.471500e-02 : f32
    %169 = vector.broadcast %cst_66 : f32 to vector<8x512xf32>
    %170 = arith.mulf %169, %168 : vector<8x512xf32>
    %171 = arith.addf %166, %170 : vector<8x512xf32>
    %cst_67 = arith.constant 0.797884583 : f32
    %172 = vector.broadcast %cst_67 : f32 to vector<8x512xf32>
    %173 = arith.mulf %172, %171 : vector<8x512xf32>
    %174 = math.tanh %173 : vector<8x512xf32>
    %cst_68 = arith.constant 1.000000e+00 : f32
    %175 = vector.broadcast %cst_68 : f32 to vector<8x512xf32>
    %176 = arith.addf %175, %174 : vector<8x512xf32>
    %cst_69 = arith.constant 5.000000e-01 : f32
    %177 = vector.broadcast %cst_69 : f32 to vector<8x512xf32>
    %178 = arith.mulf %177, %176 : vector<8x512xf32>
    %179 = arith.mulf %166, %178 : vector<8x512xf32>
    %c0_70 = arith.constant 0 : index
    %c0_71 = arith.constant 0 : index
    %180 = vector.load %arg15[%c0_70, %c0_71] : memref<512x128xbf16, #tpu.memory_space<vmem>>, vector<512x128xbf16>
    %181 = arith.truncf %179 : vector<8x512xf32> to vector<8x512xbf16>
    %cst_72 = arith.constant dense<0.000000e+00> : vector<8x128xf32>
    %182 = tpu.matmul %181, %180, %cst_72 {dimension_numbers = #tpu.dot_dimension_numbers<[1], [0], [0], [1], [0, 0, 1, 1], [], []>} : vector<8x512xbf16>, vector<512x128xbf16>, vector<8x128xf32> -> vector<8x128xf32>
    %183 = arith.addf %138, %182 : vector<8x128xf32>
    %c0_73 = arith.constant 0 : index
    %c0_74 = arith.constant 0 : index
    %184 = vector.load %arg16[%c0_73, %c0_74] : memref<1x128xf32, #tpu.memory_space<vmem>>, vector<1x128xf32>
    %185 = vector.broadcast %184 : vector<1x128xf32> to vector<8x128xf32>
    %186 = arith.addf %183, %185 : vector<8x128xf32>
    %c0_75 = arith.constant 0 : index
    %c0_76 = arith.constant 0 : index
    %187 = vector.load %arg17[%c0_75, %c0_76] : memref<1x128xf32, #tpu.memory_space<vmem>>, vector<1x128xf32>
    %c0_77 = arith.constant 0 : index
    %c0_78 = arith.constant 0 : index
    %188 = vector.load %arg18[%c0_77, %c0_78] : memref<1x128xf32, #tpu.memory_space<vmem>>, vector<1x128xf32>
    %cst_79 = arith.constant dense<0.000000e+00> : vector<8xf32>
    %189 = vector.multi_reduction <add>, %186, %cst_79 [1] : vector<8x128xf32> to vector<8xf32>
    %190 = vector.shape_cast %189 : vector<8xf32> to vector<8x1xf32>
    %cst_80 = arith.constant 1.280000e+02 : f32
    %191 = vector.broadcast %cst_80 : f32 to vector<8x1xf32>
    %192 = arith.divf %190, %191 : vector<8x1xf32>
    %193 = vector.broadcast %192 : vector<8x1xf32> to vector<8x128xf32>
    %194 = arith.subf %186, %193 : vector<8x128xf32>
    %195 = arith.mulf %194, %194 : vector<8x128xf32>
    %cst_81 = arith.constant dense<0.000000e+00> : vector<8xf32>
    %196 = vector.multi_reduction <add>, %195, %cst_81 [1] : vector<8x128xf32> to vector<8xf32>
    %197 = vector.shape_cast %196 : vector<8xf32> to vector<8x1xf32>
    %cst_82 = arith.constant 1.280000e+02 : f32
    %198 = vector.broadcast %cst_82 : f32 to vector<8x1xf32>
    %199 = arith.divf %197, %198 : vector<8x1xf32>
    %cst_83 = arith.constant 9.99999997E-7 : f32
    %200 = vector.broadcast %cst_83 : f32 to vector<8x1xf32>
    %201 = arith.addf %199, %200 : vector<8x1xf32>
    %202 = math.rsqrt %201 : vector<8x1xf32>
    %203 = vector.broadcast %202 : vector<8x1xf32> to vector<8x128xf32>
    %204 = arith.mulf %194, %203 : vector<8x128xf32>
    %205 = vector.broadcast %187 : vector<1x128xf32> to vector<8x128xf32>
    %206 = arith.mulf %204, %205 : vector<8x128xf32>
    %207 = vector.broadcast %188 : vector<1x128xf32> to vector<8x128xf32>
    %208 = arith.addf %206, %207 : vector<8x128xf32>
    %209 = vector.extract_strided_slice %208 {offsets = [0, 0], sizes = [1, 128], strides = [1, 1]} : vector<8x128xf32> to vector<1x128xf32>
    %c0_84 = arith.constant 0 : index
    %c0_85 = arith.constant 0 : index
    %210 = vector.load %arg19[%c0_84, %c0_85] : memref<128x128xbf16, #tpu.memory_space<vmem>>, vector<128x128xbf16>
    %211 = arith.truncf %209 : vector<1x128xf32> to vector<1x128xbf16>
    %cst_86 = arith.constant dense<0.000000e+00> : vector<1x128xf32>
    %212 = tpu.matmul %211, %210, %cst_86 {dimension_numbers = #tpu.dot_dimension_numbers<[1], [0], [0], [1], [0, 0, 1, 1], [], []>} : vector<1x128xbf16>, vector<128x128xbf16>, vector<1x128xf32> -> vector<1x128xf32>
    %c0_87 = arith.constant 0 : index
    %c0_88 = arith.constant 0 : index
    %213 = vector.load %arg20[%c0_87, %c0_88] : memref<1x128xf32, #tpu.memory_space<vmem>>, vector<1x128xf32>
    %214 = arith.addf %212, %213 : vector<1x128xf32>
    %c0_89 = arith.constant 0 : index
    %c0_90 = arith.constant 0 : index
    %c0_91 = arith.constant 0 : index
    %215 = vector.load %arg21[%c0_89, %c0_90, %c0_91] : memref<1x1x128xf32, #tpu.memory_space<vmem>>, vector<1x1x128xf32>
    %216 = vector.shape_cast %215 : vector<1x1x128xf32> to vector<1x128xf32>
    %217 = arith.addf %216, %214 : vector<1x128xf32>
    %cst_92 = arith.constant 5.000000e-01 : f32
    %218 = vector.broadcast %cst_92 : f32 to vector<1x128xf32>
    %219 = arith.mulf %217, %218 : vector<1x128xf32>
    %c0_93 = arith.constant 0 : index
    %c0_94 = arith.constant 0 : index
    %c0_95 = arith.constant 0 : index
    %220 = vector.load %arg22[%c0_93, %c0_94, %c0_95] : memref<1x1x128xf32, #tpu.memory_space<vmem>>, vector<1x1x128xf32>
    %221 = vector.shape_cast %220 : vector<1x1x128xf32> to vector<1x128xf32>
    %222 = vector.shape_cast %219 : vector<1x128xf32> to vector<1x1x128xf32>
    tpu.vector_store %arg22[%c0_93, %c0_94, %c0_95], %222 {strides = array<i32>} : memref<1x1x128xf32, #tpu.memory_space<vmem>>, vector<1x1x128xf32>,
    return
  }
  func.func @transform_0(%arg0: i32) -> (i32, i32, i32) {
    %c0_i32 = arith.constant 0 : i32
    %c0_i32_0 = arith.constant 0 : i32
    %c0_i32_1 = arith.constant 0 : i32
    return %arg0, %c0_i32, %c0_i32_0 : i32, i32, i32
  }
  func.func @transform_1(%arg0: i32) -> (i32, i32) {
    %c0_i32 = arith.constant 0 : i32
    %c0_i32_0 = arith.constant 0 : i32
    %c0_i32_1 = arith.constant 0 : i32
    return %c0_i32, %c0_i32_0 : i32, i32
  }
  func.func @transform_2(%arg0: i32) -> (i32, i32) {
    %c0_i32 = arith.constant 0 : i32
    %c0_i32_0 = arith.constant 0 : i32
    %c0_i32_1 = arith.constant 0 : i32
    return %c0_i32, %c0_i32_0 : i32, i32
  }
  func.func @transform_3(%arg0: i32) -> (i32, i32) {
    %c0_i32 = arith.constant 0 : i32
    %c0_i32_0 = arith.constant 0 : i32
    %c0_i32_1 = arith.constant 0 : i32
    return %c0_i32, %c0_i32_0 : i32, i32
  }
  func.func @transform_4(%arg0: i32) -> (i32, i32) {
    %c0_i32 = arith.constant 0 : i32
    %c0_i32_0 = arith.constant 0 : i32
    %c0_i32_1 = arith.constant 0 : i32
    return %c0_i32, %c0_i32_0 : i32, i32
  }
  func.func @transform_5(%arg0: i32) -> (i32, i32) {
    %c0_i32 = arith.constant 0 : i32
    %c0_i32_0 = arith.constant 0 : i32
    %c0_i32_1 = arith.constant 0 : i32
    return %c0_i32, %c0_i32_0 : i32, i32
  }
  func.func @transform_6(%arg0: i32) -> (i32, i32) {
    %c0_i32 = arith.constant 0 : i32
    %c0_i32_0 = arith.constant 0 : i32
    %c0_i32_1 = arith.constant 0 : i32
    return %c0_i32, %c0_i32_0 : i32, i32
  }
  func.func @transform_7(%arg0: i32) -> (i32, i32) {
    %c0_i32 = arith.constant 0 : i32
    %c0_i32_0 = arith.constant 0 : i32
    %c0_i32_1 = arith.constant 0 : i32
    return %c0_i32, %c0_i32_0 : i32, i32
  }
  func.func @transform_8(%arg0: i32) -> (i32, i32) {
    %c0_i32 = arith.constant 0 : i32
    %c0_i32_0 = arith.constant 0 : i32
    %c0_i32_1 = arith.constant 0 : i32
    return %c0_i32, %c0_i32_0 : i32, i32
  }
  func.func @transform_9(%arg0: i32) -> (i32, i32) {
    %c0_i32 = arith.constant 0 : i32
    %c0_i32_0 = arith.constant 0 : i32
    %c0_i32_1 = arith.constant 0 : i32
    return %c0_i32, %c0_i32_0 : i32, i32
  }
  func.func @transform_10(%arg0: i32) -> (i32, i32) {
    %c0_i32 = arith.constant 0 : i32
    %c0_i32_0 = arith.constant 0 : i32
    %c0_i32_1 = arith.constant 0 : i32
    return %c0_i32, %c0_i32_0 : i32, i32
  }
  func.func @transform_11(%arg0: i32) -> (i32, i32) {
    %c0_i32 = arith.constant 0 : i32
    %c0_i32_0 = arith.constant 0 : i32
    %c0_i32_1 = arith.constant 0 : i32
    return %c0_i32, %c0_i32_0 : i32, i32
  }
  func.func @transform_12(%arg0: i32) -> (i32, i32) {
    %c0_i32 = arith.constant 0 : i32
    %c0_i32_0 = arith.constant 0 : i32
    %c0_i32_1 = arith.constant 0 : i32
    return %c0_i32, %c0_i32_0 : i32, i32
  }
  func.func @transform_13(%arg0: i32) -> (i32, i32) {
    %c0_i32 = arith.constant 0 : i32
    %c0_i32_0 = arith.constant 0 : i32
    %c0_i32_1 = arith.constant 0 : i32
    return %c0_i32, %c0_i32_0 : i32, i32
  }
  func.func @transform_14(%arg0: i32) -> (i32, i32) {
    %c0_i32 = arith.constant 0 : i32
    %c0_i32_0 = arith.constant 0 : i32
    %c0_i32_1 = arith.constant 0 : i32
    return %c0_i32, %c0_i32_0 : i32, i32
  }
  func.func @transform_15(%arg0: i32) -> (i32, i32) {
    %c0_i32 = arith.constant 0 : i32
    %c0_i32_0 = arith.constant 0 : i32
    %c0_i32_1 = arith.constant 0 : i32
    return %c0_i32, %c0_i32_0 : i32, i32
  }
  func.func @transform_16(%arg0: i32) -> (i32, i32) {
    %c0_i32 = arith.constant 0 : i32
    %c0_i32_0 = arith.constant 0 : i32
    %c0_i32_1 = arith.constant 0 : i32
    return %c0_i32, %c0_i32_0 : i32, i32
  }
  func.func @transform_17(%arg0: i32) -> (i32, i32) {
    %c0_i32 = arith.constant 0 : i32
    %c0_i32_0 = arith.constant 0 : i32
    %c0_i32_1 = arith.constant 0 : i32
    return %c0_i32, %c0_i32_0 : i32, i32
  }
  func.func @transform_18(%arg0: i32) -> (i32, i32) {
    %c0_i32 = arith.constant 0 : i32
    %c0_i32_0 = arith.constant 0 : i32
    %c0_i32_1 = arith.constant 0 : i32
    return %c0_i32, %c0_i32_0 : i32, i32
  }
  func.func @transform_19(%arg0: i32) -> (i32, i32) {
    %c0_i32 = arith.constant 0 : i32
    %c0_i32_0 = arith.constant 0 : i32
    %c0_i32_1 = arith.constant 0 : i32
    return %c0_i32, %c0_i32_0 : i32, i32
  }
  func.func @transform_20(%arg0: i32) -> (i32, i32, i32) {
    %c0_i32 = arith.constant 0 : i32
    %c0_i32_0 = arith.constant 0 : i32
    %c0_i32_1 = arith.constant 0 : i32
    return %arg0, %c0_i32, %c0_i32_0 : i32, i32, i32
  }
  func.func @transform_21(%arg0: i32) -> (i32, i32, i32) {
    %c0_i32 = arith.constant 0 : i32
    %c0_i32_0 = arith.constant 0 : i32
    %c0_i32_1 = arith.constant 0 : i32
    return %arg0, %c0_i32, %c0_i32_0 : i32, i32, i32
  }
}

</mosaic_0001>

<bundles_post_ra>
// kernel: ensemble_forward.2
= control target key start
LH: loop header
LB: loop body
LE: loop exit
PB: predicated region body
PF: predicated region fallthrough
CT: control target
= control target key end

     0   :  { %s3535_s24 = smov 0   ;;  %s3537_s25 = smov 0   ;;  %s4330_s0 = inlined_call_operand.vmem [shape: bf16[2,256,32], index: 0, kind: input, shape index: {}]   ;;  %s4331_s1 = inlined_call_operand.vmem [shape: bf16[32,128], index: 1, kind: input, shape index: {}]   ;;  %s4332_s2 = inlined_call_operand.vmem [shape: f32[1,128], index: 2, kind: input, shape index: {}]   ;;  %s4333_s3 = inlined_call_operand.vmem [shape: bf16[128,1280], index: 3, kind: input, shape index: {}]   ;;  %s4334_s4 = inlined_call_operand.vmem [shape: f32[1,1280], index: 4, kind: input, shape index: {}]   ;;  %s4335_s5 = inlined_call_operand.vmem [shape: bf16[1280,128], index: 5, kind: input, shape index: {}]   ;;  %s4336_s6 = inlined_call_operand.vmem [shape: f32[1,128], index: 6, kind: input, shape index: {}]   ;;  %s4337_s7 = inlined_call_operand.vmem [shape: f32[2,1,128], index: 7, kind: output, shape index: {}]  }
   0x1   :  { %s3539_s26 = smov 0  }
   0x2 LB: > { %s29_s27 = sadd.s32 1, %s3487_s25  ;;  %p2650_p0 = scmp.ge.s32.totalorder %s3491_s26, 1  ;;  %s3491_s26 = sphi %s3539_s26, %s17_s26   ;;  %s3487_s25 = sphi %s3537_s25, %s4339_s25   ;;  %s3483_s24 = sphi %s3535_s24, %s4338_s24  }
   0x3   : > { %p31_p1 = scmp.ge.s32.totalorder %s29_s27, 2  ;;  %p256_p2 = scmp.lt.s32.totalorder %s3491_s26, 3 }
   0x5   : > { %s4341_s27 = smov (%p31_p1, %s29_s27), 0  ;;  %p257_p3 = pnand %p2650_p0, %p256_p2 }
   0x6   : > { %p291_p4 = scmp.lt.s32.totalorder (!%p257_p3), %s3483_s24, 1 }
   0x7   : > { %260 = sbr.rel (%p257_p3) target bundleno = 847 (0x34f), region = 48 }
   0xc   : > { %v3083_v0 = vld [vmem:[%s4331_s1 + $0x8] sm:$0xff]   ;;  %v3084_v1 = vld [vmem:[%s4331_s1] sm:$0xff]   ;;  %s4343_s24 = smov (!%p291_p4, %s3483_s24), 1  ;;  %vm444_vm0 = vcmask 261120   ;;  %v3101_v18 = vld [vmem:[%s4333_s3 + $0x234] ss:$40 sps:$4 sm:$0xff]  }
   0xd   : > { %3021 = vmatprep.subr.bf16.mxu0 %v3083_v0  ;;  %s2892_s9 = sshll.u32 %s4343_s24, 7  ;;  %v3105_v19 = vld [vmem:[%s4333_s3 + $0x244] ss:$40 sps:$4 sm:$0xff]   ;;  %v3103_v20 = vld [vmem:[%s4333_s3 + $0x240] ss:$40 sps:$4 sm:$0xff]   ;;  %v3493_v22 = vmov 0.0   ;;  %1458 = vmatprep.subr.bf16.mxu1 %v3101_v18  ;;  %s302_s20 = scalar_lea.vmem %s4337_s7, %s4343_s24 }
   0xe   : > { %3022 = vmatpush3.bf16.msra.mxu0 %v3083_v0  ;;  %s3565_s12 = scalar_lea.vmem %s4330_s0, %s2892_s9  ;;  %v3106_v21 = vld [vmem:[%s4333_s3 + $0x230] ss:$40 sps:$4 sm:$0xff]   ;;  %308 = vst [vmem:[#allocation2] sm:$0x1] %v3493_v22  ;;  %v3107_v23 = vld [vmem:[%s4333_s3 + $0x1e4] ss:$40 sps:$4 sm:$0xff]  }
   0xf   : > { %3023 = vmatprep.subr.bf16.mxu0 %v3084_v1  ;;  %v3085_v2 = vld [vmem:[%s3565_s12] sm:$0xff]   ;;  %v3086_v3 = vld [vmem:[%s3565_s12 + $0x8] sm:$0xff]   ;;  %v3087_v4 = vld [vmem:[%s3565_s12 + $0x10] sm:$0xff]   ;;  %1459 = vmatpush1.bf16.msra.mxu1 %v3106_v21  ;;  %v3494_v49 = vmov 0  }
  0x10   : > { %3025 = vmatprep.mubr.msk.bf16.mxu0 %vm444_vm0, %v3085_v2  ;;  %v3088_v5 = vld [vmem:[%s3565_s12 + $0x18] sm:$0xff]   ;;  %v3089_v6 = vld [vmem:[%s3565_s12 + $0x20] sm:$0xff]   ;;  %v3090_v7 = vld [vmem:[%s3565_s12 + $0x28] sm:$0xff]   ;;  %1460 = vmatprep.subr.bf16.mxu1 %v3107_v23 }
  0x11   : > { %v3091_v8 = vld [vmem:[%s3565_s12 + $0x30] sm:$0xff]   ;;  %v3092_v9 = vld [vmem:[%s3565_s12 + $0x38] sm:$0xff]   ;;  %v3093_v10 = vld [vmem:[%s3565_s12 + $0x40] sm:$0xff]   ;;  %1490 = vmatprep.mubr.bf16.mxu1 %v3494_v49 }
  0x12   : > { %3024 = vmatpush3.bf16.msra.mxu0 %v3084_v1  ;;  %v3094_v11 = vld [vmem:[%s3565_s12 + $0x48] sm:$0xff]   ;;  %v3095_v12 = vld [vmem:[%s3565_s12 + $0x50] sm:$0xff]   ;;  %v3096_v13 = vld [vmem:[%s3565_s12 + $0x58] sm:$0xff]  }
  0x13   : > { %v3097_v14 = vld [vmem:[%s3565_s12 + $0x60] sm:$0xff]   ;;  %v3098_v15 = vld [vmem:[%s3565_s12 + $0x68] sm:$0xff]   ;;  %v3099_v16 = vld [vmem:[%s3565_s12 + $0x70] sm:$0xff]   ;;  %1540 = vmatprep.subr.bf16.mxu0 %v3105_v19 }
  0x14   : > { %v3100_v17 = vld [vmem:[%s3565_s12 + $0x78] sm:$0xff]   ;;  %v3112_v26 = vld [vmem:[%s4333_s3 + $0x1e0] ss:$40 sps:$4 sm:$0xff]   ;;  %v3117_v28 = vld [vmem:[%s4333_s3 + $0x1a4] ss:$40 sps:$4 sm:$0xff]  }
  0x15   : > { %3026 = vmatmul.mubr.msk.bf16.vlgmr.msra.gmra.mxu0 %vm444_vm0, %v3086_v3  ;;  %v3111_v24 = vld [vmem:[%s4333_s3 + $0x1f4] ss:$40 sps:$4 sm:$0xff]   ;;  %v3109_v25 = vld [vmem:[%s4333_s3 + $0x1f0] ss:$40 sps:$4 sm:$0xff]   ;;  %1461 = vmatpush1.bf16.msra.mxu1 %v3112_v26  ;;  %v3115_v29 = vld [vmem:[%s4333_s3 + $0x1a0] ss:$40 sps:$4 sm:$0xff]  }
  0x16   : > { %3029 = vmatprep.mubr.msk.bf16.mxu0 %vm444_vm0, %v3087_v4  ;;  %1541 = vmatpush1.bf16.msra.mxu0 %v3103_v20  ;;  %v3113_v27 = vld [vmem:[%s4333_s3 + $0x194] ss:$40 sps:$4 sm:$0xff]   ;;  %v3118_v30 = vld [vmem:[%s4333_s3 + $0x190] ss:$40 sps:$4 sm:$0xff]   ;;  %v3119_v31 = vld [vmem:[%s4333_s3 + $0x144] ss:$40 sps:$4 sm:$0xff]  }
  0x17   : > { %1542 = vmatprep.subr.bf16.mxu0 %v3111_v24  ;;  %1462 = vmatprep.subr.bf16.mxu1 %v3113_v27  ;;  %v3123_v32 = vld [vmem:[%s4333_s3 + $0x154] ss:$40 sps:$4 sm:$0xff]   ;;  %v3121_v33 = vld [vmem:[%s4333_s3 + $0x150] ss:$40 sps:$4 sm:$0xff]   ;;  %v3124_v34 = vld [vmem:[%s4333_s3 + $0x140] ss:$40 sps:$4 sm:$0xff]  }
  0x18   : > { %v3125_v35 = vld [vmem:[%s4333_s3 + $0xf4] ss:$40 sps:$4 sm:$0xff]   ;;  %v3129_v36 = vld [vmem:[%s4333_s3 + $0x104] ss:$40 sps:$4 sm:$0xff]   ;;  %v3127_v37 = vld [vmem:[%s4333_s3 + $0x100] ss:$40 sps:$4 sm:$0xff]  }
  0x19   : > { %1463 = vmatpush1.bf16.msra.mxu1 %v3118_v30  ;;  %v3130_v38 = vld [vmem:[%s4333_s3 + $0xf0] ss:$40 sps:$4 sm:$0xff]   ;;  %v3131_v39 = vld [vmem:[%s4333_s3 + $0xa4] ss:$40 sps:$4 sm:$0xff]   ;;  %v3135_v40 = vld [vmem:[%s4333_s3 + $0xb4] ss:$40 sps:$4 sm:$0xff]  }
  0x1a   : > { %1543 = vmatpush1.bf16.msra.mxu0 %v3109_v25  ;;  %1464 = vmatprep.subr.bf16.mxu1 %v3119_v31  ;;  %v3133_v41 = vld [vmem:[%s4333_s3 + $0xb0] ss:$40 sps:$4 sm:$0xff]   ;;  %v3136_v42 = vld [vmem:[%s4333_s3 + $0xa0] ss:$40 sps:$4 sm:$0xff]   ;;  %v3137_v43 = vld [vmem:[%s4333_s3 + $0x54] ss:$40 sps:$4 sm:$0xff]  }
  0x1b   : > { %1544 = vmatprep.subr.bf16.mxu0 %v3117_v28  ;;  %v3139_v44 = vld [vmem:[%s4333_s3 + $0x60] ss:$40 sps:$4 sm:$0xff]   ;;  %v3141_v45 = vld [vmem:[%s4333_s3 + $0x64] ss:$40 sps:$4 sm:$0xff]   ;;  %v3142_v46 = vld [vmem:[%s4333_s3 + $0x50] ss:$40 sps:$4 sm:$0xff]  }
  0x1c   : > { %v3143_v47 = vld [vmem:[%s4333_s3 + $0x4] ss:$40 sps:$4 sm:$0xff]   ;;  %v3147_v48 = vld [vmem:[%s4333_s3 + $0x14] ss:$40 sps:$4 sm:$0xff]   ;;  %v3694_v50 = vld [vmem:[%s4332_s2] ss:$0 sm:$0xff] }
  0x1d   : > { %3030 = vmatmul.mubr.msk.bf16.gmra.mxu0 %vm444_vm0, %v3088_v5  ;;  %1465 = vmatpush1.bf16.msra.mxu1 %v3124_v34  ;;  %v3145_v51 = vld [vmem:[%s4333_s3 + $0x10] ss:$40 sps:$4 sm:$0xff]   ;;  %v3148_v52 = vld [vmem:[%s4333_s3] ss:$40 sps:$4 sm:$0xff]   ;;  %v3151_v53 = vld [vmem:[%s4333_s3 + $0x23c] ss:$40 sps:$4 sm:$0xff]  }
  0x1e   : > { %3033 = vmatprep.mubr.msk.bf16.mxu0 %vm444_vm0, %v3089_v6  ;;  %1545 = vmatpush1.bf16.msra.mxu0 %v3115_v29  ;;  %v3154_v54 = vld [vmem:[%s4333_s3 + $0x254] ss:$40 sps:$4 sm:$0xff]  }
  0x1f   : > { %1546 = vmatprep.subr.bf16.mxu0 %v3123_v32  ;;  %1466 = vmatprep.subr.bf16.mxu1 %v3125_v35 }
  0x21   : > { %1467 = vmatpush1.bf16.msra.mxu1 %v3130_v38 }
  0x22   : > { %1547 = vmatpush1.bf16.msra.mxu0 %v3121_v33  ;;  %1468 = vmatprep.subr.bf16.mxu1 %v3131_v39 }
  0x23   : > { %1548 = vmatprep.subr.bf16.mxu0 %v3129_v36 }
  0x25   : > { %3034 = vmatmul.mubr.msk.bf16.gmra.mxu0 %vm444_vm0, %v3090_v7  ;;  %1469 = vmatpush1.bf16.msra.mxu1 %v3136_v42 }
  0x26   : > { %3037 = vmatprep.mubr.msk.bf16.mxu0 %vm444_vm0, %v3091_v8  ;;  %1549 = vmatpush1.bf16.msra.mxu0 %v3127_v37 }
  0x27   : > { %1550 = vmatprep.subr.bf16.mxu0 %v3135_v40  ;;  %1470 = vmatprep.subr.bf16.mxu1 %v3137_v43 }
  0x29   : > { %1471 = vmatpush1.bf16.msra.mxu1 %v3142_v46 }
  0x2a   : > { %1551 = vmatpush1.bf16.msra.mxu0 %v3133_v41  ;;  %1472 = vmatprep.subr.bf16.mxu1 %v3143_v47 }
  0x2b   : > { %1552 = vmatprep.subr.bf16.mxu0 %v3141_v45 }
  0x2d   : > { %3038 = vmatmul.mubr.msk.bf16.gmra.mxu0 %vm444_vm0, %v3092_v9  ;;  %1473 = vmatpush1.bf16.msra.mxu1 %v3148_v52 }
  0x2e   : > { %3041 = vmatprep.mubr.msk.bf16.mxu0 %vm444_vm0, %v3093_v10  ;;  %1553 = vmatpush1.bf16.msra.mxu0 %v3139_v44 }
  0x2f   : > { %1554 = vmatprep.subr.bf16.mxu0 %v3147_v48  ;;  %1499 = vmatprep.subr.bf16.mxu1 %v3151_v53 }
  0x32   : > { %1555 = vmatpush1.bf16.msra.mxu0 %v3145_v51 }
  0x33   : > { %1622 = vmatprep.subr.bf16.mxu0 %v3154_v54 }
  0x35   : > { %3042 = vmatmul.mubr.msk.bf16.gmra.mxu0 %vm444_vm0, %v3094_v11 }
  0x36   : > { %3045 = vmatprep.mubr.msk.bf16.mxu0 %vm444_vm0, %v3095_v12 }
  0x3d   : > { %3046 = vmatmul.mubr.msk.bf16.gmra.mxu0 %vm444_vm0, %v3096_v13 }
  0x3e   : > { %3049 = vmatprep.mubr.msk.bf16.mxu0 %vm444_vm0, %v3097_v14 }
  0x45   : > { %3050 = vmatmul.mubr.msk.bf16.gmra.mxu0 %vm444_vm0, %v3098_v15 }
  0x46   : > { %3053 = vmatprep.mubr.msk.bf16.mxu0 %vm444_vm0, %v3099_v16 }
  0x4d   : > { %3054 = vmatmul.mubr.msk.bf16.gmra.mxu0 %vm444_vm0, %v3100_v17 }
  0x4e   : > { %1572 = vmatprep.mubr.bf16.mxu0 %v3494_v49 }
  0xd5   : > { %v3027_v55 = vpop.f32.mrf.mxu0 }
  0xd6   : > { %v3709_v56 = vadd.f32 %v3027_v55, %v3694_v50 }
  0xd7   : > { %v527_v57 = vpop.f32.mrf.mxu0 }
  0xd8   : > { %v2690_v58 = vmul.f32 -1.442695, %v3709_v56  ;;  %v3713_v59 = vadd.f32 %v3694_v50, %v527_v57 }
  0xd9   : > { %v3028_v60 = vpop.f32.mrf.mxu0 }
  0xda   : > { %3301 = vpow2.f32 %v2690_v58  ;;  %v2688_v61 = vmul.f32 -1.442695, %v3713_v59  ;;  %v3717_v62 = vadd.f32 %v3028_v60, %v3694_v50 }
  0xdb   : > { %v530_v63 = vpop.f32.mrf.mxu0 }
  0xdc   : > { %3303 = vpow2.f32 %v2688_v61  ;;  %v2691_v0 = vmul.f32 -1.442695, %v3717_v62  ;;  %v3721_v1 = vadd.f32 %v3694_v50, %v530_v63 }
  0xdd   : > { %v3031_v2 = vpop.f32.mrf.mxu0 }
  0xde   : > { %3305 = vpow2.f32 %v2691_v0  ;;  %v2689_v3 = vmul.f32 -1.442695, %v3721_v1  ;;  %v3725_v4 = vadd.f32 %v3031_v2, %v3694_v50 }
  0xdf   : > { %v543_v5 = vpop.f32.mrf.mxu0 }
  0xe0   : > { %3307 = vpow2.f32 %v2689_v3  ;;  %v2694_v6 = vmul.f32 -1.442695, %v3725_v4  ;;  %v3729_v7 = vadd.f32 %v3694_v50, %v543_v5 }
  0xe1   : > { %v3032_v8 = vpop.f32.mrf.mxu0 }
  0xe2   : > { %3309 = vpow2.f32 %v2694_v6  ;;  %v2692_v9 = vmul.f32 -1.442695, %v3729_v7  ;;  %v3733_v10 = vadd.f32 %v3032_v8, %v3694_v50 }
  0xe3   : > { %v546_v11 = vpop.f32.mrf.mxu0 }
  0xe4   : > { %3311 = vpow2.f32 %v2692_v9  ;;  %v2695_v12 = vmul.f32 -1.442695, %v3733_v10  ;;  %v3737_v13 = vadd.f32 %v3694_v50, %v546_v11 }
  0xe5   : > { %v3035_v14 = vpop.f32.mrf.mxu0 }
  0xe6   : > { %3313 = vpow2.f32 %v2695_v12  ;;  %v2693_v15 = vmul.f32 -1.442695, %v3737_v13  ;;  %v3741_v16 = vadd.f32 %v3035_v14, %v3694_v50 }
  0xe7   : > { %v3302_v17 = vpop.eup %3301  ;;  %v559_v18 = vpop.f32.mrf.mxu0 }
  0xe8   : > { %v752_v19 = vadd.f32 1.0, %v3302_v17  ;;  %3315 = vpow2.f32 %v2693_v15  ;;  %v2698_v20 = vmul.f32 -1.442695, %v3741_v16  ;;  %v3745_v21 = vadd.f32 %v3694_v50, %v559_v18 }
  0xe9   : > { %v3304_v22 = vpop.eup %3303  ;;  %v3036_v23 = vpop.f32.mrf.mxu0 }
  0xea   : > { %3317 = vrcp.f32 %v752_v19  ;;  %v750_v24 = vadd.f32 1.0, %v3304_v22  ;;  %v2696_v25 = vmul.f32 -1.442695, %v3745_v21  ;;  %v3749_v26 = vadd.f32 %v3036_v23, %v3694_v50 }
  0xeb   : > { %v3306_v27 = vpop.eup %3305  ;;  %3319 = vpow2.f32 %v2698_v20  ;;  %v562_v28 = vpop.f32.mrf.mxu0 }
  0xec   : > { %3321 = vrcp.f32 %v750_v24  ;;  %v753_v29 = vadd.f32 1.0, %v3306_v27  ;;  %v2699_v30 = vmul.f32 -1.442695, %v3749_v26  ;;  %v3753_v31 = vadd.f32 %v3694_v50, %v562_v28 }
  0xed   : > { %v3308_v32 = vpop.eup %3307  ;;  %3323 = vpow2.f32 %v2696_v25  ;;  %v3039_v33 = vpop.f32.mrf.mxu0 }
  0xee   : > { %3325 = vrcp.f32 %v753_v29  ;;  %v751_v34 = vadd.f32 1.0, %v3308_v32  ;;  %v2697_v35 = vmul.f32 -1.442695, %v3753_v31  ;;  %v3757_v36 = vadd.f32 %v3039_v33, %v3694_v50 }
  0xef   : > { %v3310_v37 = vpop.eup %3309  ;;  %3327 = vpow2.f32 %v2699_v30  ;;  %v575_v38 = vpop.f32.mrf.mxu0 }
  0xf0   : > { %3329 = vrcp.f32 %v751_v34  ;;  %v756_v39 = vadd.f32 1.0, %v3310_v37  ;;  %v2702_v40 = vmul.f32 -1.442695, %v3757_v36  ;;  %v3761_v41 = vadd.f32 %v3694_v50, %v575_v38 }
  0xf1   : > { %v3312_v42 = vpop.eup %3311  ;;  %3331 = vpow2.f32 %v2697_v35  ;;  %v3040_v43 = vpop.f32.mrf.mxu0 }
  0xf2   : > { %3333 = vrcp.f32 %v756_v39  ;;  %v754_v44 = vadd.f32 1.0, %v3312_v42  ;;  %v2700_v45 = vmul.f32 -1.442695, %v3761_v41  ;;  %v3765_v46 = vadd.f32 %v3040_v43, %v3694_v50 }
  0xf3   : > { %v3314_v47 = vpop.eup %3313  ;;  %3335 = vpow2.f32 %v2702_v40  ;;  %v578_v48 = vpop.f32.mrf.mxu0 }
  0xf4   : > { %3337 = vrcp.f32 %v754_v44  ;;  %v757_v51 = vadd.f32 1.0, %v3314_v47  ;;  %v2703_v52 = vmul.f32 -1.442695, %v3765_v46  ;;  %v3769_v53 = vadd.f32 %v3694_v50, %v578_v48 }
  0xf5   : > { %v3316_v54 = vpop.eup %3315  ;;  %3339 = vpow2.f32 %v2700_v45  ;;  %v3043_v55 = vpop.f32.mrf.mxu0 }
  0xf6   : > { %3341 = vrcp.f32 %v757_v51  ;;  %v755_v57 = vadd.f32 1.0, %v3316_v54  ;;  %v2701_v58 = vmul.f32 -1.442695, %v3769_v53  ;;  %v3773_v60 = vadd.f32 %v3043_v55, %v3694_v50 }
  0xf7   : > { %v3318_v61 = vpop.eup %3317  ;;  %3343 = vpow2.f32 %v2703_v52  ;;  %v591_v63 = vpop.f32.mrf.mxu0 }
  0xf8   : > { %v3320_v0 = vpop.eup %3319  ;;  %3345 = vrcp.f32 %v755_v57  ;;  %v2706_v2 = vmul.f32 -1.442695, %v3773_v60  ;;  %v3777_v3 = vadd.f32 %v3694_v50, %v591_v63  ;;  %v848_v37 = vmul.f32 %v3318_v61, %v3709_v56 }
  0xf9   : > { %v3322_v5 = vpop.eup %3321  ;;  %3347 = vpow2.f32 %v2701_v58  ;;  %v3044_v6 = vpop.f32.mrf.mxu0  ;;  %v760_v14 = vadd.f32 1.0, %v3320_v0 }
  0xfa   : > { %v3324_v8 = vpop.eup %3323  ;;  %3349 = vpow2.f32 %v2706_v2  ;;  %v2704_v9 = vmul.f32 -1.442695, %v3777_v3  ;;  %v3781_v11 = vadd.f32 %v3044_v6, %v3694_v50  ;;  %v846_v23 = vmul.f32 %v3322_v5, %v3713_v59 }
  0xfb   : > { %v3326_v12 = vpop.eup %3325  ;;  %v758_v15 = vadd.f32 1.0, %v3324_v8  ;;  %v594_v17 = vpop.f32.mrf.mxu0 }
  0xfc   : > { %v3328_v18 = vpop.eup %3327  ;;  %3351 = vpow2.f32 %v2704_v9  ;;  %v2707_v19 = vmul.f32 -1.442695, %v3781_v11  ;;  %v3785_v20 = vadd.f32 %v3694_v50, %v594_v17  ;;  %v849_v43 = vmul.f32 %v3326_v12, %v3717_v62 }
  0xfd   : > { %v3330_v22 = vpop.eup %3329  ;;  %3353 = vrcp.f32 %v758_v15  ;;  %v761_v24 = vadd.f32 1.0, %v3328_v18  ;;  %v3047_v25 = vpop.f32.mrf.mxu0 }
  0xfe   : > { %v3332_v27 = vpop.eup %3331  ;;  %v847_v28 = vmul.f32 %v3330_v22, %v3721_v1  ;;  %3355 = vpow2.f32 %v2707_v19  ;;  %v2705_v29 = vmul.f32 -1.442695, %v3785_v20  ;;  %v3791_v30 = vadd.f32 %v3047_v25, %v3694_v50 }
  0xff   : > { %v3334_v32 = vpop.eup %3333  ;;  %3357 = vrcp.f32 %v760_v14  ;;  %v759_v33 = vadd.f32 1.0, %v3332_v27  ;;  %v607_v34 = vpop.f32.mrf.mxu0 }
 0x100   : > { %v3336_v35 = vpop.eup %3335  ;;  %v879_v59 = vadd.f32 %v847_v28, %v846_v23  ;;  %3359 = vpow2.f32 %v2705_v29  ;;  %v2710_v38 = vmul.f32 -1.442695, %v3791_v30  ;;  %v3796_v1 = vadd.f32 %v3694_v50, %v607_v34 }
 0x101   : > { %v3338_v39 = vpop.eup %3337  ;;  %3361 = vrcp.f32 %v759_v33  ;;  %v3048_v40 = vpop.f32.mrf.mxu0  ;;  %v764_v48 = vadd.f32 1.0, %v3336_v35  ;;  %v852_v63 = vmul.f32 %v3334_v32, %v3725_v4 }
 0x102   : > { %v3340_v42 = vpop.eup %3339  ;;  %v880_v44 = vadd.f32 %v879_v59, %v848_v37  ;;  %3363 = vrcp.f32 %v761_v24  ;;  %v3800_v45 = vadd.f32 %v3048_v40, %v3694_v50  ;;  %v850_v56 = vmul.f32 %v3338_v39, %v3729_v7 }
 0x103   : > { %v3342_v47 = vpop.eup %3341  ;;  %v762_v51 = vadd.f32 1.0, %v3340_v42  ;;  %v2708_v52 = vmul.f32 -1.442695, %v3796_v1  ;;  %v610_v54 = vpop.f32.mrf.mxu0  ;;  %3365 = vpow2.f32 %v2710_v38 }
 0x104   : > { %v3344_v55 = vpop.eup %3343  ;;  %v881_v57 = vadd.f32 %v880_v44, %v849_v43  ;;  %v2711_v58 = vmul.f32 -1.442695, %v3800_v45  ;;  %v3806_v62 = vadd.f32 %v3694_v50, %v610_v54 }
 0x105   : > { %v3346_v61 = vpop.eup %3345  ;;  %3367 = vrcp.f32 %v762_v51  ;;  %v3051_v0 = vpop.f32.mrf.mxu0  ;;  %v765_v6 = vadd.f32 1.0, %v3344_v55 }
 0x106   : > { %v3348_v2 = vpop.eup %3347  ;;  %v882_v7 = vadd.f32 %v881_v57, %v850_v56  ;;  %v851_v5 = vmul.f32 %v3346_v61, %v3737_v13  ;;  %3369 = vpow2.f32 %v2708_v52  ;;  %v2709_v12 = vmul.f32 -1.442695, %v3806_v62 }
 0x107   : > { %v3350_v8 = vpop.eup %3349  ;;  %3371 = vrcp.f32 %v764_v48  ;;  %v763_v9 = vadd.f32 1.0, %v3348_v2  ;;  %v3812_v14 = vadd.f32 %v3051_v0, %v3694_v50  ;;  %v623_v15 = vpop.f32.mrf.mxu0  ;;  %v853_v13 = vmul.f32 %v3342_v47, %v3733_v10 }
 0x108   : > { %v883_v17 = vadd.f32 %v882_v7, %v851_v5  ;;  %v768_v18 = vadd.f32 1.0, %v3350_v8  ;;  %3373 = vpow2.f32 %v2711_v58  ;;  %v3815_v4 = vadd.f32 %v3694_v50, %v623_v15 }
 0x109   : > { %v3352_v19 = vpop.eup %3351  ;;  %3375 = vrcp.f32 %v763_v9  ;;  %v3052_v22 = vpop.f32.mrf.mxu0  ;;  %v2714_v27 = vmul.f32 -1.442695, %v3812_v14 }
 0x10a   : > { %v3354_v23 = vpop.eup %3353  ;;  %v884_v24 = vadd.f32 %v883_v17, %v852_v63  ;;  %3377 = vrcp.f32 %v765_v6  ;;  %v766_v25 = vadd.f32 1.0, %v3352_v19  ;;  %v2712_v29 = vmul.f32 -1.442695, %v3815_v4 }
 0x10b   : > { %v3356_v28 = vpop.eup %3355  ;;  %3379 = vpow2.f32 %v2709_v12  ;;  %v3821_v32 = vadd.f32 %v3052_v22, %v3694_v50  ;;  %v626_v33 = vpop.f32.mrf.mxu0  ;;  %v854_v35 = vmul.f32 %v3354_v23, %v3745_v21 }
 0x10c   : > { %v3358_v34 = vpop.eup %3357  ;;  %v885_v10 = vadd.f32 %v884_v24, %v853_v13  ;;  %3381 = vrcp.f32 %v768_v18  ;;  %v3825_v37 = vadd.f32 %v3694_v50, %v626_v33  ;;  %v769_v43 = vadd.f32 1.0, %v3356_v28 }
 0x10d   : > { %v3360_v59 = vpop.eup %3359  ;;  %3383 = vrcp.f32 %v766_v25  ;;  %v2715_v38 = vmul.f32 -1.442695, %v3821_v32  ;;  %v3055_v39 = vpop.f32.mrf.mxu0  ;;  %v856_v55 = vmul.f32 %v3358_v34, %v3741_v16 }
 0x10e   : > { %v3362_v40 = vpop.eup %3361  ;;  %v886_v42 = vadd.f32 %v885_v10, %v854_v35  ;;  %v767_v44 = vadd.f32 1.0, %v3360_v59  ;;  %3385 = vpow2.f32 %v2714_v27  ;;  %v2713_v21 = vmul.f32 -1.442695, %v3825_v37 }
 0x10f   : > { %v3364_v47 = vpop.eup %3363  ;;  %v855_v56 = vmul.f32 %v3362_v40, %v3753_v31  ;;  %3387 = vpow2.f32 %v2712_v29  ;;  %v3831_v48 = vadd.f32 %v3055_v39, %v3694_v50  ;;  %v639_v51 = vpop.f32.mrf.mxu0 }
 0x110   : > { %3389 = vrcp.f32 %v767_v44  ;;  %v3834_v52 = vadd.f32 %v3694_v50, %v639_v51  ;;  %v3366_v54 = vpop.eup %3365  ;;  %v857_v2 = vmul.f32 %v3364_v47, %v3749_v26 }
 0x111   : > { %v887_v57 = vadd.f32 %v886_v42, %v855_v56  ;;  %3391 = vpow2.f32 %v2715_v38  ;;  %v3056_v58 = vpop.f32.mrf.mxu0  ;;  %v2718_v5 = vmul.f32 -1.442695, %v3831_v48  ;;  %v772_v13 = vadd.f32 1.0, %v3366_v54 }
 0x112   : > { %v3368_v61 = vpop.eup %3367  ;;  %3393 = vrcp.f32 %v769_v43  ;;  %v2716_v31 = vmul.f32 -1.442695, %v3834_v52  ;;  %v3839_v63 = vadd.f32 %v3056_v58, %v3694_v50 }
 0x113   : > { %v3370_v0 = vpop.eup %3369  ;;  %v888_v7 = vadd.f32 %v887_v57, %v856_v55  ;;  %3395 = vpow2.f32 %v2713_v21  ;;  %v642_v6 = vpop.f32.mrf.mxu0  ;;  %v858_v17 = vmul.f32 %v3368_v61, %v3761_v41 }
 0x114   : > { %v3372_v8 = vpop.eup %3371  ;;  %v770_v16 = vadd.f32 1.0, %v3370_v0  ;;  %v2719_v9 = vmul.f32 -1.442695, %v3839_v63  ;;  %v3845_v12 = vadd.f32 %v3694_v50, %v642_v6  ;;  %3397 = vpow2.f32 %v2716_v31 }
 0x115   : > { %v3374_v15 = vpop.eup %3373  ;;  %v889_v18 = vadd.f32 %v888_v7, %v857_v2  ;;  %v860_v27 = vmul.f32 %v3372_v8, %v3757_v36 }
 0x116   : > { %v3376_v19 = vpop.eup %3375  ;;  %3399 = vrcp.f32 %v770_v16  ;;  %v2717_v26 = vmul.f32 -1.442695, %v3845_v12  ;;  %v773_v29 = vadd.f32 1.0, %v3374_v15 }
 0x117   : > { %v3378_v22 = vpop.eup %3377  ;;  %v890_v23 = vadd.f32 %v889_v18, %v858_v17  ;;  %v859_v24 = vmul.f32 %v3376_v19, %v3769_v53  ;;  %3401 = vpow2.f32 %v2718_v5 }
 0x118   : > { %v3380_v25 = vpop.eup %3379  ;;  %3403 = vpow2.f32 %v2719_v9  ;;  %v861_v35 = vmul.f32 %v3378_v22, %v3765_v46 }
 0x119   : > { %v3382_v50 = vpop.eup %3381  ;;  %v891_v28 = vadd.f32 %v890_v23, %v859_v24  ;;  %v771_v41 = vadd.f32 1.0, %v3380_v25  ;;  %3405 = vpow2.f32 %v2717_v26 }
 0x11a   : > { %v3384_v33 = vpop.eup %3383  ;;  %3407 = vrcp.f32 %v772_v13  ;;  %v864_v21 = vmul.f32 %v3382_v50, %v3773_v60 }
 0x11b   : > { %v3386_v34 = vpop.eup %3385  ;;  %v892_v10 = vadd.f32 %v891_v28, %v860_v27  ;;  %3409 = vrcp.f32 %v771_v41  ;;  %v862_v53 = vmul.f32 %v3384_v33, %v3777_v3 }
 0x11c   : > { %v3388_v59 = vpop.eup %3387  ;;  %3411 = vrcp.f32 %v773_v29  ;;  %v776_v43 = vadd.f32 1.0, %v3386_v34 }
 0x11d   : > { %v3390_v38 = vpop.eup %3389  ;;  %v893_v39 = vadd.f32 %v892_v10, %v861_v35  ;;  %v774_v36 = vadd.f32 1.0, %v3388_v59 }
 0x11e   : > { %v3392_v40 = vpop.eup %3391  ;;  %v863_v42 = vmul.f32 %v3390_v38, %v3785_v20 }
 0x11f   : > { %v3394_v44 = vpop.eup %3393  ;;  %v894_v47 = vadd.f32 %v893_v39, %v862_v53  ;;  %3413 = vrcp.f32 %v774_v36  ;;  %v777_v51 = vadd.f32 1.0, %v3392_v40 }
 0x120   : > { %v3396_v56 = vpop.eup %3395  ;;  %3415 = vrcp.f32 %v776_v43  ;;  %v865_v3 = vmul.f32 %v3394_v44, %v3781_v11  ;;  %v878_v44 = vld [vmem:[#allocation2] sm:$0x1] }
 0x121   : > { %v895_v46 = vadd.f32 %v894_v47, %v863_v42  ;;  %v775_v54 = vadd.f32 1.0, %v3396_v56  ;;  %v3398_v55 = vpop.eup %3397 }
 0x122   : > { %v778_v61 = vadd.f32 1.0, %v3398_v55  ;;  %v3158_v55 = vld [vmem:[%s4333_s3 + $0x200] ss:$40 sps:$4 sm:$0xff]  }
 0x123   : > { %v3400_v57 = vpop.eup %3399  ;;  %v896_v58 = vadd.f32 %v895_v46, %v864_v21  ;;  %3417 = vrcp.f32 %v775_v54  ;;  %v3157_v46 = vld [vmem:[%s4333_s3 + $0x1ec] ss:$40 sps:$4 sm:$0xff]   ;;  %v3155_v54 = vld [vmem:[%s4333_s3 + $0x1e8] ss:$40 sps:$4 sm:$0xff]  }
 0x124   : > { %v3402_v31 = vpop.eup %3401  ;;  %v866_v0 = vmul.f32 %v3400_v57, %v3796_v1  ;;  %3419 = vrcp.f32 %v777_v51  ;;  %v3160_v51 = vld [vmem:[%s4333_s3 + $0x204] ss:$40 sps:$4 sm:$0xff]  }
 0x125   : > { %v3404_v20 = vpop.eup %3403  ;;  %v897_v2 = vadd.f32 %v896_v58, %v865_v3  ;;  %v780_v6 = vadd.f32 1.0, %v3402_v31  ;;  %3421 = vrcp.f32 %v778_v61  ;;  %v3163_v57 = vld [vmem:[%s4333_s3 + $0x19c] ss:$40 sps:$4 sm:$0xff]   ;;  %v3161_v58 = vld [vmem:[%s4333_s3 + $0x198] ss:$40 sps:$4 sm:$0xff]  }
 0x126   : > { %v3406_v7 = vpop.eup %3405  ;;  %v781_v15 = vadd.f32 1.0, %v3404_v20  ;;  %v3166_v3 = vld [vmem:[%s4333_s3 + $0x1b4] ss:$40 sps:$4 sm:$0xff]   ;;  %v3164_v61 = vld [vmem:[%s4333_s3 + $0x1b0] ss:$40 sps:$4 sm:$0xff]  }
 0x127   : > { %v3408_v5 = vpop.eup %3407  ;;  %v898_v60 = vadd.f32 %v897_v2, %v866_v0  ;;  %v779_v8 = vadd.f32 1.0, %v3406_v7  ;;  %v3169_v31 = vld [vmem:[%s4333_s3 + $0x14c] ss:$40 sps:$4 sm:$0xff]   ;;  %v3167_v0 = vld [vmem:[%s4333_s3 + $0x148] ss:$40 sps:$4 sm:$0xff]  }
 0x128   : > { %v3410_v16 = vpop.eup %3409  ;;  %v868_v17 = vmul.f32 %v3408_v5, %v3791_v30  ;;  %v3172_v20 = vld [vmem:[%s4333_s3 + $0x164] ss:$40 sps:$4 sm:$0xff]   ;;  %v3170_v2 = vld [vmem:[%s4333_s3 + $0x160] ss:$40 sps:$4 sm:$0xff]   ;;  %v3178_v5 = vld [vmem:[%s4333_s3 + $0x114] ss:$40 sps:$4 sm:$0xff]  }
 0x129   : > { %v867_v9 = vmul.f32 %v3410_v16, %v3806_v62  ;;  %3423 = vrcp.f32 %v779_v8  ;;  %v3412_v11 = vpop.eup %3411  ;;  %v3175_v7 = vld [vmem:[%s4333_s3 + $0xfc] ss:$40 sps:$4 sm:$0xff]   ;;  %v3181_v8 = vld [vmem:[%s4333_s3 + $0xac] ss:$40 sps:$4 sm:$0xff]  }
 0x12a   : > { %3425 = vrcp.f32 %v780_v6  ;;  %v869_v1 = vmul.f32 %v3412_v11, %v3800_v45  ;;  %v3176_v6 = vld [vmem:[%s4333_s3 + $0x110] ss:$40 sps:$4 sm:$0xff]   ;;  %v3184_v16 = vld [vmem:[%s4333_s3 + $0xc4] ss:$40 sps:$4 sm:$0xff]  }
 0x12b   : > { %v899_v18 = vadd.f32 %v898_v60, %v867_v9  ;;  %3427 = vrcp.f32 %v781_v15  ;;  %v3173_v60 = vld [vmem:[%s4333_s3 + $0xf8] ss:$40 sps:$4 sm:$0xff]   ;;  %v3179_v9 = vld [vmem:[%s4333_s3 + $0xa8] ss:$40 sps:$4 sm:$0xff]   ;;  %v3187_v11 = vld [vmem:[%s4333_s3 + $0x5c] ss:$40 sps:$4 sm:$0xff]  }
 0x12c   : > { %v3414_v19 = vpop.eup %3413  ;;  %v3182_v15 = vld [vmem:[%s4333_s3 + $0xc0] ss:$40 sps:$4 sm:$0xff]  }
 0x12d   : > { %v900_v13 = vadd.f32 %v899_v18, %v868_v17  ;;  %v3416_v26 = vpop.eup %3415  ;;  %v870_v22 = vmul.f32 %v3414_v19, %v3815_v4  ;;  %v3190_v17 = vld [vmem:[%s4333_s3 + $0x74] ss:$40 sps:$4 sm:$0xff]   ;;  %v3185_v18 = vld [vmem:[%s4333_s3 + $0x58] ss:$40 sps:$4 sm:$0xff]  }
 0x12e   : > { %v872_v50 = vmul.f32 %v3416_v26, %v3812_v14  ;;  %v3188_v19 = vld [vmem:[%s4333_s3 + $0x70] ss:$40 sps:$4 sm:$0xff]  }
 0x12f   : > { %v901_v23 = vadd.f32 %v900_v13, %v869_v1  ;;  %v3193_v1 = vld [vmem:[%s4333_s3 + $0xc] ss:$40 sps:$4 sm:$0xff]   ;;  %v3191_v26 = vld [vmem:[%s4333_s3 + $0x8] ss:$40 sps:$4 sm:$0xff]  }
 0x130   : > { %v3418_v24 = vpop.eup %3417  ;;  %v3196_v13 = vld [vmem:[%s4333_s3 + $0x24] ss:$40 sps:$4 sm:$0xff]  }
 0x131   : > { %v902_v25 = vadd.f32 %v901_v23, %v870_v22  ;;  %v871_v62 = vmul.f32 %v3418_v24, %v3825_v37  ;;  %v3420_v27 = vpop.eup %3419  ;;  %v3194_v22 = vld [vmem:[%s4333_s3 + $0x20] ss:$40 sps:$4 sm:$0xff]   ;;  %v3199_v23 = vld [vmem:[%s4333_s3 + $0x24c] ss:$40 sps:$4 sm:$0xff]  }
 0x132   : > { %v3422_v30 = vpop.eup %3421  ;;  %v873_v29 = vmul.f32 %v3420_v27, %v3821_v32  ;;  %v3197_v24 = vld [vmem:[%s4333_s3 + $0x248] ss:$40 sps:$4 sm:$0xff]   ;;  %v3205_v27 = vld [vmem:[%s4333_s3 + $0x1ac] ss:$40 sps:$4 sm:$0xff]  }
 0x133   : > { %v903_v28 = vadd.f32 %v902_v25, %v871_v62  ;;  %v874_v45 = vmul.f32 %v3422_v30, %v3834_v52  ;;  %v3202_v25 = vld [vmem:[%s4333_s3 + $0x1fc] ss:$40 sps:$4 sm:$0xff]   ;;  %v3200_v62 = vld [vmem:[%s4333_s3 + $0x1f8] ss:$40 sps:$4 sm:$0xff]   ;;  %v3211_v30 = vld [vmem:[%s4333_s3 + $0x10c] ss:$40 sps:$4 sm:$0xff]  }
 0x135   : > { %v904_v41 = vadd.f32 %v903_v28, %v872_v50  ;;  %v3203_v50 = vld [vmem:[%s4333_s3 + $0x1a8] ss:$40 sps:$4 sm:$0xff]   ;;  %v3208_v28 = vld [vmem:[%s4333_s3 + $0x15c] ss:$40 sps:$4 sm:$0xff]  }
 0x136   : > { %v3424_v33 = vpop.eup %3423 }
 0x137   : > { %v905_v34 = vadd.f32 %v904_v41, %v873_v29  ;;  %v875_v35 = vmul.f32 %v3424_v33, %v3845_v12  ;;  %v3426_v4 = vpop.eup %3425  ;;  %v3209_v29 = vld [vmem:[%s4333_s3 + $0x108] ss:$40 sps:$4 sm:$0xff]   ;;  %v3214_v41 = vld [vmem:[%s4333_s3 + $0xbc] ss:$40 sps:$4 sm:$0xff]   ;;  %v3212_v33 = vld [vmem:[%s4333_s3 + $0xb8] ss:$40 sps:$4 sm:$0xff]  }
 0x138   : > { %v3428_v59 = vpop.eup %3427  ;;  %v876_v38 = vmul.f32 %v3426_v4, %v3831_v48  ;;  %v3149_v48 = vld [vmem:[%s4333_s3 + $0x238] ss:$40 sps:$4 sm:$0xff]  }
 0x139   : > { %v906_v10 = vadd.f32 %v905_v34, %v874_v45  ;;  %v877_v53 = vmul.f32 %v3428_v59, %v3839_v63  ;;  %v3152_v63 = vld [vmem:[%s4333_s3 + $0x250] ss:$40 sps:$4 sm:$0xff]   ;;  %v3217_v45 = vld [vmem:[%s4333_s3 + $0x6c] ss:$40 sps:$4 sm:$0xff]  }
 0x13a   : > { %v3215_v34 = vld [vmem:[%s4333_s3 + $0x68] ss:$40 sps:$4 sm:$0xff]   ;;  %v3218_v4 = vld [vmem:[%s4333_s3 + $0x18] ss:$40 sps:$4 sm:$0xff]  }
 0x13b   : > { %v907_v37 = vadd.f32 %v906_v10, %v875_v35  ;;  %v3220_v35 = vld [vmem:[%s4333_s3 + $0x1c] ss:$40 sps:$4 sm:$0xff]  }
 0x13c   : > { %v3221_v10 = vld [vmem:[%s4335_s5 + $0x78] sm:$0xff]  }
 0x13d   : > { %v908_v14 = vadd.f32 %v907_v37, %v876_v38  ;;  %v3222_v59 = vld [vmem:[%s4335_s5 + $0x38] sm:$0xff]   ;;  %v3223_v38 = vld [vmem:[%s4335_s5 + $0x70] sm:$0xff]  }
 0x13e   : > { %v3224_v37 = vld [vmem:[%s4335_s5 + $0x30] sm:$0xff]  }
 0x13f   : > { %v909_v39 = vadd.f32 %v908_v14, %v877_v53  ;;  %v3225_v53 = vld [vmem:[%s4335_s5 + $0x68] sm:$0xff]  }
 0x140   : > { %v3226_v14 = vld [vmem:[%s4335_s5 + $0x28] sm:$0xff]  }
 0x141   : > { %v910_v36 = vrot.slane %v909_v39, 4 }
 0x143   : > { %v911_v40 = vadd.f32 %v910_v36, %v909_v39  ;;  %v3227_v39 = vld [vmem:[%s4335_s5 + $0x60] sm:$0xff]  }
 0x144   : > { %v3228_v36 = vld [vmem:[%s4335_s5 + $0x20] sm:$0xff]  }
 0x145   : > { %v912_v32 = vrot.slane %v911_v40, 2 }
 0x147   : > { %v913_v42 = vadd.f32 %v912_v32, %v911_v40  ;;  %v3229_v40 = vld [vmem:[%s4335_s5 + $0x58] sm:$0xff]  }
 0x148   : > { %v3230_v32 = vld [vmem:[%s4335_s5 + $0x18] sm:$0xff]  }
 0x149   : > { %v914_v43 = vrot.slane %v913_v42, 1 }
 0x14b   : > { %v915_v52 = vadd.f32 %v914_v43, %v913_v42  ;;  %v3231_v42 = vld [vmem:[%s4335_s5 + $0x50] sm:$0xff]  }
 0x14c   : > { %v3232_v43 = vld [vmem:[%s4335_s5 + $0x10] sm:$0xff]  }
 0x14d   : > { %v916_v47 = vadd.f32 %v915_v52, %v878_v44  ;;  %v3233_v44 = vld [vmem:[%s4335_s5 + $0x48] sm:$0xff]  }
 0x14e   : > { %v3234_v52 = vld [vmem:[%s4335_s5 + $0x8] sm:$0xff]  }
 0x14f   : > { %917 = vst [vmem:[#allocation2] sm:$0x1] %v916_v47  ;;  %v3235_v47 = vld [vmem:[%s4335_s5 + $0x40] sm:$0xff]  }
 0x156   : > { %v921_v12 = vld [vmem:[#allocation2] sm:$0x1] }
 0x157   : > { %v922_v56 = vmul.f32 0.00390625, %v921_v12  ;;  %v3236_v12 = vld [vmem:[%s4335_s5] sm:$0xff]  }
 0x159   : > { %v3874_v21 = vpack.c.bf16 %v922_v56, %v922_v56  ;;  %v3237_v56 = vld [vmem:[%s4335_s5 + $0xf8] sm:$0xff]  }
 0x15b   : > { %1491 = vmatmul.mubr.bf16.vlgmr.msra.gmra.mxu1 %v3874_v21  ;;  %1573 = vmatmul.mubr.bf16.vlgmr.msra.gmra.mxu0 %v3874_v21 }
 0x15c   : > { %1500 = vmatpush1.bf16.msra.mxu1 %v3149_v48  ;;  %1623 = vmatpush1.bf16.msra.mxu0 %v3152_v63  ;;  %v3238_v48 = vld [vmem:[%s4335_s5 + $0x178] sm:$0xff]  }
 0x15d   : > { %1501 = vmatprep.subr.bf16.mxu1 %v3157_v46  ;;  %1624 = vmatprep.subr.bf16.mxu0 %v3160_v51  ;;  %v3239_v63 = vld [vmem:[%s4335_s5 + $0xb8] sm:$0xff]   ;;  %v3243_v46 = vld [vmem:[%s4335_s5 + $0xb0] sm:$0xff]   ;;  %v3245_v51 = vld [vmem:[%s4335_s5 + $0xe8] sm:$0xff]  }
 0x15e   : > { %1531 = vmatprep.mubr.bf16.mxu1 %v3494_v49  ;;  %1654 = vmatprep.mubr.bf16.mxu0 %v3494_v49 }
 0x160   : > { %1502 = vmatpush1.bf16.msra.mxu1 %v3155_v54  ;;  %1625 = vmatpush1.bf16.msra.mxu0 %v3158_v55  ;;  %v3247_v54 = vld [vmem:[%s4335_s5 + $0xa8] sm:$0xff]   ;;  %v3249_v55 = vld [vmem:[%s4335_s5 + $0xe0] sm:$0xff]  }
 0x161   : > { %1503 = vmatprep.subr.bf16.mxu1 %v3163_v57  ;;  %1626 = vmatprep.subr.bf16.mxu0 %v3166_v3  ;;  %v3251_v57 = vld [vmem:[%s4335_s5 + $0xa0] sm:$0xff]   ;;  %v3253_v3 = vld [vmem:[%s4335_s5 + $0xd8] sm:$0xff]  }
 0x164   : > { %1504 = vmatpush1.bf16.msra.mxu1 %v3161_v58  ;;  %1627 = vmatpush1.bf16.msra.mxu0 %v3164_v61  ;;  %v3255_v58 = vld [vmem:[%s4335_s5 + $0x98] sm:$0xff]   ;;  %v3257_v61 = vld [vmem:[%s4335_s5 + $0xd0] sm:$0xff]  }
 0x165   : > { %1505 = vmatprep.subr.bf16.mxu1 %v3169_v31  ;;  %1628 = vmatprep.subr.bf16.mxu0 %v3172_v20  ;;  %v3259_v31 = vld [vmem:[%s4335_s5 + $0x90] sm:$0xff]   ;;  %v3261_v20 = vld [vmem:[%s4335_s5 + $0xc8] sm:$0xff]  }
 0x168   : > { %1506 = vmatpush1.bf16.msra.mxu1 %v3167_v0  ;;  %1629 = vmatpush1.bf16.msra.mxu0 %v3170_v2  ;;  %v3263_v0 = vld [vmem:[%s4335_s5 + $0x88] sm:$0xff]   ;;  %v3265_v2 = vld [vmem:[%s4335_s5 + $0xc0] sm:$0xff]  }
 0x169   : > { %1507 = vmatprep.subr.bf16.mxu1 %v3175_v7  ;;  %1630 = vmatprep.subr.bf16.mxu0 %v3178_v5  ;;  %v3267_v7 = vld [vmem:[%s4335_s5 + $0x80] sm:$0xff]   ;;  %v3269_v5 = vld [vmem:[%s4335_s5 + $0x1f8] sm:$0xff]  }
 0x16c   : > { %1508 = vmatpush1.bf16.msra.mxu1 %v3173_v60  ;;  %1631 = vmatpush1.bf16.msra.mxu0 %v3176_v6  ;;  %v1408_v60 = vlaneseq }
 0x16d   : > { %1509 = vmatprep.subr.bf16.mxu1 %v3181_v8  ;;  %1632 = vmatprep.subr.bf16.mxu0 %v3184_v16  ;;  %v4124_v16 = vld [vmem:[%s4334_s4] sm:$0xff] }
 0x16e   : > { %v4118_v6 = vshrl.u32 %v1408_v60, 7  ;;  %v3244_v60 = vld [vmem:[%s4335_s5 + $0x130] sm:$0xff]  }
 0x170   : > { %1510 = vmatpush1.bf16.msra.mxu1 %v3179_v9  ;;  %1633 = vmatpush1.bf16.msra.mxu0 %v3182_v15  ;;  %v1410_v8 = vsub.s32 0, %v4118_v6  ;;  %v1414_v9 = vsub.s32 1, %v4118_v6  ;;  %v1430_v15 = vsub.s32 5, %v4118_v6 }
 0x171   : > { %1511 = vmatprep.subr.bf16.mxu1 %v3187_v11  ;;  %1634 = vmatprep.subr.bf16.mxu0 %v3190_v17 }
 0x172   : > { %v1411_v11 = vrot.slane %v4124_v16, %v1410_v8  ;;  %v1415_v17 = vrot.slane %v4124_v16, %v1414_v9 }
 0x174   : > { %1512 = vmatpush1.bf16.msra.mxu1 %v3185_v18  ;;  %1635 = vmatpush1.bf16.msra.mxu0 %v3188_v19  ;;  %v1431_v18 = vrot.slane %v4124_v16, %v1430_v15 }
 0x175   : > { %1513 = vmatprep.subr.bf16.mxu1 %v3193_v1  ;;  %1636 = vmatprep.subr.bf16.mxu0 %v3196_v13 }
 0x178   : > { %1514 = vmatpush1.bf16.msra.mxu1 %v3191_v26  ;;  %1637 = vmatpush1.bf16.msra.mxu0 %v3194_v22 }
 0x179   : > { %1581 = vmatprep.subr.bf16.mxu1 %v3199_v23  ;;  %2933 = vmatprep.subr.bf16.mxu0 %v3237_v56 }
 0x17b   : > { %1532 = vmatmul.mubr.bf16.vlgmr.msra.gmra.mxu1 %v3874_v21  ;;  %1655 = vmatmul.mubr.bf16.vlgmr.msra.gmra.mxu0 %v3874_v21 }
 0x17c   : > { %1582 = vmatpush1.bf16.msra.mxu1 %v3197_v24  ;;  %1613 = vmatprep.mubr.bf16.mxu1 %v3494_v49  ;;  %v3206_v49 = vld [vmem:[%s4333_s3 + $0x158] ss:$40 sps:$4 sm:$0xff]  }
 0x17d   : > { %1583 = vmatprep.subr.bf16.mxu1 %v3202_v25  ;;  %2934 = vmatpush3.bf16.msra.mxu0 %v3239_v63 }
 0x180   : > { %1584 = vmatpush1.bf16.msra.mxu1 %v3200_v62 }
 0x181   : > { %1585 = vmatprep.subr.bf16.mxu1 %v3205_v27 }
 0x184   : > { %1586 = vmatpush1.bf16.msra.mxu1 %v3203_v50 }
 0x185   : > { %1587 = vmatprep.subr.bf16.mxu1 %v3208_v28 }
 0x188   : > { %1588 = vmatpush1.bf16.msra.mxu1 %v3206_v49 }
 0x189   : > { %1589 = vmatprep.subr.bf16.mxu1 %v3211_v30 }
 0x18c   : > { %1590 = vmatpush1.bf16.msra.mxu1 %v3209_v29  ;;  %v1426_v29 = vsub.s32 4, %v4118_v6 }
 0x18d   : > { %1591 = vmatprep.subr.bf16.mxu1 %v3214_v41 }
 0x190   : > { %1592 = vmatpush1.bf16.msra.mxu1 %v3212_v33 }
 0x191   : > { %1593 = vmatprep.subr.bf16.mxu1 %v3217_v45 }
 0x194   : > { %1594 = vmatpush1.bf16.msra.mxu1 %v3215_v34  ;;  %v1427_v34 = vrot.slane %v4124_v16, %v1426_v29 }
 0x195   : > { %1595 = vmatprep.subr.bf16.mxu1 %v3220_v35 }
 0x198   : > { %1596 = vmatpush1.bf16.msra.mxu1 %v3218_v4 }
 0x199   : > { %2911 = vmatprep.subr.bf16.mxu1 %v3221_v10 }
 0x19b   : > { %1614 = vmatmul.mubr.bf16.vlgmr.msra.gmra.mxu1 %v3874_v21  ;;  %v3241_v21 = vld [vmem:[%s4335_s5 + $0xf0] sm:$0xff]  }
 0x19c   : > { %2912 = vmatpush3.bf16.msra.mxu1 %v3222_v59  ;;  %2935 = vmatprep.subr.bf16.mxu0 %v3241_v21 }
 0x19d   : > { %2913 = vmatprep.subr.bf16.mxu1 %v3223_v38  ;;  %2936 = vmatpush3.bf16.msra.mxu0 %v3243_v46  ;;  %v1418_v38 = vsub.s32 2, %v4118_v6 }
 0x19e   : > { %2937 = vmatprep.subr.bf16.mxu0 %v3245_v51 }
 0x1a0   : > { %2914 = vmatpush3.bf16.msra.mxu1 %v3224_v37  ;;  %v1422_v37 = vsub.s32 3, %v4118_v6 }
 0x1a1   : > { %2915 = vmatprep.subr.bf16.mxu1 %v3225_v53  ;;  %2938 = vmatpush3.bf16.msra.mxu0 %v3247_v54 }
 0x1a2   : > { %2939 = vmatprep.subr.bf16.mxu0 %v3249_v55 }
 0x1a4   : > { %2916 = vmatpush3.bf16.msra.mxu1 %v3226_v14  ;;  %v1419_v14 = vrot.slane %v4124_v16, %v1418_v38 }
 0x1a5   : > { %2917 = vmatprep.subr.bf16.mxu1 %v3227_v39  ;;  %2940 = vmatpush3.bf16.msra.mxu0 %v3251_v57  ;;  %v1005_v39 = vld [vmem:[%s4334_s4 + $0x8] sm:$0x3] }
 0x1a6   : > { %2941 = vmatprep.subr.bf16.mxu0 %v3253_v3 }
 0x1a8   : > { %2918 = vmatpush3.bf16.msra.mxu1 %v3228_v36  ;;  %v1423_v36 = vrot.slane %v4124_v16, %v1422_v37 }
 0x1a9   : > { %2919 = vmatprep.subr.bf16.mxu1 %v3229_v40  ;;  %2942 = vmatpush3.bf16.msra.mxu0 %v3255_v58 }
 0x1aa   : > { %2943 = vmatprep.subr.bf16.mxu0 %v3257_v61 }
 0x1ac   : > { %2920 = vmatpush3.bf16.msra.mxu1 %v3230_v32 }
 0x1ad   : > { %2921 = vmatprep.subr.bf16.mxu1 %v3231_v42  ;;  %2944 = vmatpush3.bf16.msra.mxu0 %v3259_v31  ;;  %v1447_v42 = vrot.slane %v1005_v39, %v1414_v9  ;;  %v3246_v9 = vld [vmem:[%s4335_s5 + $0x168] sm:$0xff]  }
 0x1ae   : > { %2945 = vmatprep.subr.bf16.mxu0 %v3261_v20 }
 0x1b0   : > { %2922 = vmatpush3.bf16.msra.mxu1 %v3232_v43 }
 0x1b1   : > { %2923 = vmatprep.subr.bf16.mxu1 %v3233_v44  ;;  %2946 = vmatpush3.bf16.msra.mxu0 %v3263_v0  ;;  %v3240_v0 = vld [vmem:[%s4335_s5 + $0x138] sm:$0xff]  }
 0x1b2   : > { %2947 = vmatprep.subr.bf16.mxu0 %v3265_v2 }
 0x1b4   : > { %2924 = vmatpush3.bf16.msra.mxu1 %v3234_v52 }
 0x1b5   : > { %2925 = vmatprep.subr.bf16.mxu1 %v3235_v47  ;;  %2948 = vmatpush3.bf16.msra.mxu0 %v3267_v7  ;;  %v3242_v7 = vld [vmem:[%s4335_s5 + $0x170] sm:$0xff]  }
 0x1b6   : > { %2977 = vmatprep.subr.bf16.mxu0 %v3269_v5 }
 0x1b8   : > { %2926 = vmatpush3.bf16.msra.mxu1 %v3236_v12 }
 0x1b9   : > { %2955 = vmatprep.subr.bf16.mxu1 %v3238_v48 }
 0x21b   : > { %v1492_v19 = vpop.f32.mrf.mxu1  ;;  %v1574_v1 = vpop.f32.mrf.mxu0 }
 0x21c   : > { %v1493_v13 = vadd.f32 %v1492_v19, %v1411_v11  ;;  %v4135_v59 = vadd.f32 %v1574_v1, %v1427_v34  ;;  %v3248_v11 = vld [vmem:[%s4335_s5 + $0x128] sm:$0xff]  }
 0x21d   : > { %v1494_v26 = vpop.f32.mrf.mxu1  ;;  %v1576_v22 = vpop.f32.mrf.mxu0  ;;  %v3264_v34 = vld [vmem:[%s4335_s5 + $0x108] sm:$0xff]  }
 0x21e   : > { %v2800_v23 = vmul.f32 -1.442695, %v1493_v13  ;;  %v1495_v24 = vadd.f32 %v1494_v26, %v1415_v17  ;;  %v1577_v25 = vadd.f32 %v1576_v22, %v1431_v18  ;;  %v2804_v53 = vmul.f32 -1.442695, %v4135_v59  ;;  %v3250_v18 = vld [vmem:[%s4335_s5 + $0x160] sm:$0xff]  }
 0x21f   : > { %v1496_v62 = vpop.f32.mrf.mxu1  ;;  %v1578_v27 = vpop.f32.mrf.mxu0  ;;  %v1443_v22 = vrot.slane %v1005_v39, %v1410_v8  ;;  %v3258_v8 = vld [vmem:[%s4335_s5 + $0x150] sm:$0xff]  }
 0x220   : > { %3429 = vpow2.f32 %v2800_v23  ;;  %v2801_v50 = vmul.f32 -1.442695, %v1495_v24  ;;  %v2805_v28 = vmul.f32 -1.442695, %v1577_v25  ;;  %v3254_v23 = vld [vmem:[%s4335_s5 + $0x158] sm:$0xff]  }
 0x221   : > { %v1497_v49 = vpop.f32.mrf.mxu1  ;;  %v1579_v30 = vpop.f32.mrf.mxu0  ;;  %v3256_v27 = vld [vmem:[%s4335_s5 + $0x118] sm:$0xff]  }
 0x222   : > { %3431 = vpow2.f32 %v2801_v50  ;;  %v3260_v49 = vld [vmem:[%s4335_s5 + $0x110] sm:$0xff]   ;;  %v1438_v30 = vsub.s32 7, %v4118_v6 }
 0x223   : > { %3433 = vpow2.f32 %v2805_v28  ;;  %v1434_v28 = vsub.s32 6, %v4118_v6  ;;  %v3266_v6 = vld [vmem:[%s4335_s5 + $0x140] sm:$0xff]  }
 0x22d   : > { %v3430_v41 = vpop.eup %3429 }
 0x22e   : > { %v1693_v33 = vadd.f32 1.0, %v3430_v41  ;;  %v3262_v41 = vld [vmem:[%s4335_s5 + $0x148] sm:$0xff]  }
 0x22f   : > { %v3432_v45 = vpop.eup %3431 }
 0x230   : > { %v3434_v35 = vpop.eup %3433  ;;  %3435 = vrcp.f32 %v1693_v33  ;;  %v1694_v4 = vadd.f32 1.0, %v3432_v45  ;;  %v1435_v33 = vrot.slane %v4124_v16, %v1434_v28  ;;  %v1439_v45 = vrot.slane %v4124_v16, %v1438_v30  ;;  %v3268_v16 = vld [vmem:[%s4335_s5 + $0x100] sm:$0xff]  }
 0x231   : > { %v1698_v10 = vadd.f32 1.0, %v3434_v35  ;;  %v3297_v28 = vld [vmem:[%s4335_s5 + $0x1c0] sm:$0xff]  }
 0x232   : > { %3437 = vrcp.f32 %v1694_v4 }
 0x233   : > { %3439 = vrcp.f32 %v1698_v10 }
 0x234   : > { %3441 = vpow2.f32 %v2804_v53 }
 0x23b   : > { %v1533_v40 = vpop.f32.mrf.mxu1  ;;  %v1656_v32 = vpop.f32.mrf.mxu0 }
 0x23c   : > { %v4145_v43 = vadd.f32 %v1533_v40, %v1419_v14  ;;  %v4183_v50 = vadd.f32 %v1656_v32, %v1443_v22  ;;  %v3290_v22 = vld [vmem:[%s4335_s5 + $0x250] sm:$0xff]  }
 0x23d   : > { %v3436_v44 = vpop.eup %3435  ;;  %v1535_v52 = vpop.f32.mrf.mxu1 }
 0x23e   : > { %v1658_v47 = vpop.f32.mrf.mxu0  ;;  %v2802_v12 = vmul.f32 -1.442695, %v4145_v43  ;;  %v4148_v56 = vadd.f32 %v1535_v52, %v1423_v36  ;;  %v1723_v63 = vmul.f32 %v3436_v44, %v1493_v13  ;;  %v3252_v13 = vld [vmem:[%s4335_s5 + $0x120] sm:$0xff]   ;;  %v2808_v29 = vmul.f32 -1.442695, %v4183_v50 }
 0x23f   : > { %v3438_v48 = vpop.eup %3437  ;;  %v4150_v21 = vadd.f32 %v1658_v47, %v1447_v42  ;;  %v1537_v46 = vpop.f32.mrf.mxu1  ;;  %v3270_v42 = vld [vmem:[%s4335_s5 + $0x278] sm:$0xff]  }
 0x240   : > { %v1660_v51 = vpop.f32.mrf.mxu0  ;;  %v3440_v54 = vpop.eup %3439  ;;  %v1724_v55 = vmul.f32 %v3438_v48, %v1495_v24  ;;  %3443 = vpow2.f32 %v2802_v12  ;;  %v2803_v57 = vmul.f32 -1.442695, %v4148_v56  ;;  %v1893_v2 = vpack.c.bf16 %v1723_v63, %v1723_v63 }
 0x241   : > { %v1728_v3 = vmul.f32 %v3440_v54, %v1577_v25  ;;  %v2809_v58 = vmul.f32 -1.442695, %v4150_v21  ;;  %v1538_v61 = vpop.f32.mrf.mxu1  ;;  %v3442_v15 = vpop.eup %3441 }
 0x242   : > { %v1661_v31 = vpop.f32.mrf.mxu0  ;;  %v1894_v20 = vpack.c.bf16 %v1724_v55, %v1724_v55  ;;  %3445 = vpow2.f32 %v2803_v57  ;;  %v1697_v17 = vadd.f32 1.0, %v3442_v15  ;;  %v3275_v55 = vld [vmem:[%s4335_s5 + $0x1b0] sm:$0xff]   ;;  %v3284_v15 = vld [vmem:[%s4335_s5 + $0x220] sm:$0xff]  }
 0x243   : > { %3447 = vpow2.f32 %v2809_v58  ;;  %v1898_v5 = vpack.c.bf16 %v1728_v3, %v1728_v3  ;;  %v3276_v57 = vld [vmem:[%s4335_s5 + $0x230] sm:$0xff]   ;;  %v3277_v3 = vld [vmem:[%s4335_s5 + $0x1e8] sm:$0xff]  }
 0x244   : > { %2416 = vmatprep.mubr.bf16.mxu1 %v1894_v20  ;;  %3449 = vrcp.f32 %v1697_v17  ;;  %v3278_v58 = vld [vmem:[%s4335_s5 + $0x268] sm:$0xff]   ;;  %v3285_v17 = vld [vmem:[%s4335_s5 + $0x1d8] sm:$0xff]  }
 0x245   : > { %2417 = vmatmul.mubr.bf16.vlgmr.msra.gmra.mxu1 %v1893_v2  ;;  %v3279_v31 = vld [vmem:[%s4335_s5 + $0x1a8] sm:$0xff]   ;;  %v3281_v2 = vld [vmem:[%s4335_s5 + $0x1e0] sm:$0xff]  }
 0x246   : > { %2956 = vmatpush3.bf16.msra.mxu1 %v3240_v0  ;;  %2496 = vmatprep.mubr.bf16.mxu1 %v1898_v5  ;;  %v3280_v20 = vld [vmem:[%s4335_s5 + $0x228] sm:$0xff]  }
 0x247   : > { %2957 = vmatprep.subr.bf16.mxu1 %v3242_v7  ;;  %v3282_v7 = vld [vmem:[%s4335_s5 + $0x260] sm:$0xff]  }
 0x24a   : > { %2958 = vmatpush3.bf16.msra.mxu1 %v3244_v60 }
 0x24b   : > { %2959 = vmatprep.subr.bf16.mxu1 %v3246_v9  ;;  %v3283_v9 = vld [vmem:[%s4335_s5 + $0x1a0] sm:$0xff]  }
 0x24d   : > { %v3444_v19 = vpop.eup %3443 }
 0x24e   : > { %v1695_v1 = vadd.f32 1.0, %v3444_v19  ;;  %2960 = vmatpush3.bf16.msra.mxu1 %v3248_v11 }
 0x24f   : > { %v3446_v26 = vpop.eup %3445  ;;  %2961 = vmatprep.subr.bf16.mxu1 %v3250_v18  ;;  %v3286_v18 = vld [vmem:[%s4335_s5 + $0x258] sm:$0xff]  }
 0x250   : > { %v3448_v24 = vpop.eup %3447  ;;  %3451 = vrcp.f32 %v1695_v1  ;;  %v1696_v25 = vadd.f32 1.0, %v3446_v26  ;;  %v3287_v1 = vld [vmem:[%s4335_s5 + $0x198] sm:$0xff]   ;;  %v3289_v26 = vld [vmem:[%s4335_s5 + $0x1d0] sm:$0xff]  }
 0x251   : > { %v1702_v62 = vadd.f32 1.0, %v3448_v24  ;;  %v3450_v4 = vpop.eup %3449  ;;  %v3292_v24 = vld [vmem:[%s4335_s5 + $0x210] sm:$0xff]  }
 0x252   : > { %3453 = vrcp.f32 %v1696_v25  ;;  %2962 = vmatpush3.bf16.msra.mxu1 %v3252_v13  ;;  %v1727_v36 = vmul.f32 %v3450_v4, %v4135_v59  ;;  %v3271_v59 = vld [vmem:[%s4335_s5 + $0x1b8] sm:$0xff]   ;;  %v3293_v25 = vld [vmem:[%s4335_s5 + $0x1c8] sm:$0xff]  }
 0x253   : > { %3455 = vrcp.f32 %v1702_v62  ;;  %2963 = vmatprep.subr.bf16.mxu1 %v3254_v23  ;;  %v3288_v13 = vld [vmem:[%s4335_s5 + $0x218] sm:$0xff]   ;;  %v3291_v23 = vld [vmem:[%s4335_s5 + $0x190] sm:$0xff]   ;;  %v3294_v62 = vld [vmem:[%s4335_s5 + $0x248] sm:$0xff]  }
 0x254   : > { %3457 = vpow2.f32 %v2808_v29  ;;  %v1897_v46 = vpack.c.bf16 %v1727_v36, %v1727_v36 }
 0x256   : > { %2964 = vmatpush3.bf16.msra.mxu1 %v3256_v27  ;;  %v3295_v27 = vld [vmem:[%s4335_s5 + $0x188] sm:$0xff]  }
 0x257   : > { %2965 = vmatprep.subr.bf16.mxu1 %v3258_v8  ;;  %v3296_v8 = vld [vmem:[%s4335_s5 + $0x208] sm:$0xff]  }
 0x25a   : > { %2966 = vmatpush3.bf16.msra.mxu1 %v3260_v49  ;;  %v3298_v49 = vld [vmem:[%s4335_s5 + $0x240] sm:$0xff]  }
 0x25b   : > { %v1615_v35 = vpop.f32.mrf.mxu1  ;;  %2967 = vmatprep.subr.bf16.mxu1 %v3262_v41  ;;  %v3299_v41 = vld [vmem:[%s4335_s5 + $0x180] sm:$0xff]  }
 0x25c   : > { %v4205_v10 = vadd.f32 %v1615_v35, %v1435_v33  ;;  %v3300_v33 = vld [vmem:[%s4335_s5 + $0x200] sm:$0xff]  }
 0x25d   : > { %v3452_v38 = vpop.eup %3451  ;;  %v1617_v37 = vpop.f32.mrf.mxu1 }
 0x25e   : > { %v2806_v53 = vmul.f32 -1.442695, %v4205_v10  ;;  %v4208_v14 = vadd.f32 %v1617_v37, %v1439_v45  ;;  %2968 = vmatpush3.bf16.msra.mxu1 %v3264_v34  ;;  %v1725_v40 = vmul.f32 %v3452_v38, %v4145_v43  ;;  %v3272_v43 = vld [vmem:[%s4335_s5 + $0x238] sm:$0xff]  }
 0x25f   : > { %v3454_v39 = vpop.eup %3453  ;;  %v1619_v32 = vpop.f32.mrf.mxu1  ;;  %2969 = vmatprep.subr.bf16.mxu1 %v3266_v6 }
 0x260   : > { %v3456_v44 = vpop.eup %3455  ;;  %v1726_v52 = vmul.f32 %v3454_v39, %v4148_v56  ;;  %3459 = vpow2.f32 %v2806_v53  ;;  %v2807_v47 = vmul.f32 -1.442695, %v4208_v14  ;;  %v1895_v51 = vpack.c.bf16 %v1725_v40, %v1725_v40  ;;  %v3273_v56 = vld [vmem:[%s4335_s5 + $0x1f0] sm:$0xff]  }
 0x261   : > { %v1732_v12 = vmul.f32 %v3456_v44, %v4150_v21  ;;  %v1620_v48 = vpop.f32.mrf.mxu1  ;;  %v3274_v21 = vld [vmem:[%s4335_s5 + $0x270] sm:$0xff]   ;;  %v3458_v61 = vpop.eup %3457 }
 0x262   : > { %v1896_v63 = vpack.c.bf16 %v1726_v52, %v1726_v52  ;;  %3461 = vpow2.f32 %v2807_v47  ;;  %2970 = vmatpush3.bf16.msra.mxu1 %v3268_v16  ;;  %v1701_v0 = vadd.f32 1.0, %v3458_v61 }
 0x263   : > { %2999 = vmatprep.subr.bf16.mxu1 %v3270_v42  ;;  %v1902_v54 = vpack.c.bf16 %v1732_v12, %v1732_v12  ;;  %v1903_v12 = vld [vmem:[%s4336_s6] sm:$0x1] }
 0x264   : > { %2456 = vmatprep.mubr.bf16.mxu0 %v1896_v63  ;;  %3463 = vrcp.f32 %v1701_v0 }
 0x265   : > { %2457 = vmatmul.mubr.bf16.vlgmr.msra.gmra.mxu0 %v1895_v51  ;;  %2497 = vmatmul.mubr.bf16.vlgmr.msra.gmra.mxu1 %v1897_v46 }
 0x266   : > { %2978 = vmatpush3.bf16.msra.mxu0 %v3271_v59  ;;  %3000 = vmatpush3.bf16.msra.mxu1 %v3272_v43 }
 0x267   : > { %2576 = vmatprep.mubr.bf16.mxu1 %v1902_v54  ;;  %2979 = vmatprep.subr.bf16.mxu0 %v3273_v56 }
 0x268   : > { %3001 = vmatprep.subr.bf16.mxu1 %v3274_v21 }
 0x26a   : > { %2980 = vmatpush3.bf16.msra.mxu0 %v3275_v55  ;;  %3002 = vmatpush3.bf16.msra.mxu1 %v3276_v57 }
 0x26b   : > { %2981 = vmatprep.subr.bf16.mxu0 %v3277_v3  ;;  %3003 = vmatprep.subr.bf16.mxu1 %v3278_v58 }
 0x26d   : > { %v3460_v5 = vpop.eup %3459 }
 0x26e   : > { %v1699_v60 = vadd.f32 1.0, %v3460_v5  ;;  %2982 = vmatpush3.bf16.msra.mxu0 %v3279_v31  ;;  %3004 = vmatpush3.bf16.msra.mxu1 %v3280_v20 }
 0x26f   : > { %v3462_v11 = vpop.eup %3461  ;;  %2983 = vmatprep.subr.bf16.mxu0 %v3281_v2  ;;  %3005 = vmatprep.subr.bf16.mxu1 %v3282_v7 }
 0x270   : > { %3465 = vrcp.f32 %v1699_v60  ;;  %v1700_v19 = vadd.f32 1.0, %v3462_v11 }
 0x271   : > { %v3464_v30 = vpop.eup %3463 }
 0x272   : > { %3467 = vrcp.f32 %v1700_v19  ;;  %2984 = vmatpush3.bf16.msra.mxu0 %v3283_v9  ;;  %3006 = vmatpush3.bf16.msra.mxu1 %v3284_v15  ;;  %v1731_v34 = vmul.f32 %v3464_v30, %v4183_v50 }
 0x273   : > { %2985 = vmatprep.subr.bf16.mxu0 %v3285_v17  ;;  %3007 = vmatprep.subr.bf16.mxu1 %v3286_v18 }
 0x274   : > { %v1901_v38 = vpack.c.bf16 %v1731_v34, %v1731_v34 }
 0x276   : > { %2986 = vmatpush3.bf16.msra.mxu0 %v3287_v1  ;;  %3008 = vmatpush3.bf16.msra.mxu1 %v3288_v13 }
 0x277   : > { %2987 = vmatprep.subr.bf16.mxu0 %v3289_v26  ;;  %3009 = vmatprep.subr.bf16.mxu1 %v3290_v22 }
 0x27a   : > { %2988 = vmatpush3.bf16.msra.mxu0 %v3291_v23  ;;  %3010 = vmatpush3.bf16.msra.mxu1 %v3292_v24 }
 0x27b   : > { %2989 = vmatprep.subr.bf16.mxu0 %v3293_v25  ;;  %3011 = vmatprep.subr.bf16.mxu1 %v3294_v62 }
 0x27d   : > { %v3466_v29 = vpop.eup %3465 }
 0x27e   : > { %2990 = vmatpush3.bf16.msra.mxu0 %v3295_v27  ;;  %3012 = vmatpush3.bf16.msra.mxu1 %v3296_v8  ;;  %v1729_v35 = vmul.f32 %v3466_v29, %v4205_v10 }
 0x27f   : > { %v3468_v45 = vpop.eup %3467  ;;  %2991 = vmatprep.subr.bf16.mxu0 %v3297_v28  ;;  %3013 = vmatprep.subr.bf16.mxu1 %v3298_v49 }
 0x280   : > { %v1730_v6 = vmul.f32 %v3468_v45, %v4208_v14  ;;  %v1899_v37 = vpack.c.bf16 %v1729_v35, %v1729_v35 }
 0x282   : > { %v1900_v4 = vpack.c.bf16 %v1730_v6, %v1730_v6  ;;  %2992 = vmatpush3.bf16.msra.mxu0 %v3299_v41  ;;  %3014 = vmatpush3.bf16.msra.mxu1 %v3300_v33 }
 0x284   : > { %2536 = vmatprep.mubr.bf16.mxu0 %v1900_v4 }
 0x285   : > { %2537 = vmatmul.mubr.bf16.vlgmr.msra.gmra.mxu0 %v1899_v37  ;;  %2577 = vmatmul.mubr.bf16.vlgmr.msra.gmra.mxu1 %v1901_v38 }
 0x305   : > { %v2927_v53 = vpop.f32.mrf.mxu1 }
 0x307   : > { %v2928_v16 = vpop.f32.mrf.mxu1 }
 0x308   : > { %v2929_v47 = vadd.f32 %v2928_v16, %v2927_v53 }
 0x309   : > { %v2930_v39 = vpop.f32.mrf.mxu1 }
 0x30a   : > { %v2419_v63 = vadd.f32 %v2929_v47, %v1903_v12 }
 0x30b   : > { %v2931_v36 = vpop.f32.mrf.mxu1 }
 0x325   : > { %v2949_v40 = vpop.f32.mrf.mxu0  ;;  %v2971_v50 = vpop.f32.mrf.mxu1 }
 0x327   : > { %v2950_v32 = vpop.f32.mrf.mxu0  ;;  %v2972_v10 = vpop.f32.mrf.mxu1 }
 0x328   : > { %v2951_v48 = vadd.f32 %v2950_v32, %v2949_v40  ;;  %v2973_v51 = vadd.f32 %v2972_v10, %v2971_v50 }
 0x329   : > { %v2952_v42 = vpop.f32.mrf.mxu0  ;;  %v2974_v44 = vpop.f32.mrf.mxu1 }
 0x32a   : > { %v2459_v59 = vadd.f32 %v2951_v48, %v2419_v63 }
 0x32b   : > { %v2953_v52 = vpop.f32.mrf.mxu0  ;;  %v2975_v14 = vpop.f32.mrf.mxu1 }
 0x32c   : > { %v2499_v54 = vadd.f32 %v2973_v51, %v2459_v59 }
 0x345   : > { %v2993_v43 = vpop.f32.mrf.mxu0  ;;  %v3015_v46 = vpop.f32.mrf.mxu1 }
 0x347   : > { %v2994_v56 = vpop.f32.mrf.mxu0  ;;  %v3016_v21 = vpop.f32.mrf.mxu1 }
 0x348   : > { %v2995_v55 = vadd.f32 %v2994_v56, %v2993_v43  ;;  %v3017_v61 = vadd.f32 %v3016_v21, %v3015_v46 }
 0x349   : > { %v2996_v57 = vpop.f32.mrf.mxu0  ;;  %v3018_v3 = vpop.f32.mrf.mxu1 }
 0x34a   : > { %v2539_v58 = vadd.f32 %v2995_v55, %v2499_v54 }
 0x34b   : > { %v2997_v31 = vpop.f32.mrf.mxu0  ;;  %v3019_v20 = vpop.f32.mrf.mxu1 }
 0x34c   : > { %v2579_v0 = vadd.f32 %v3017_v61, %v2539_v58 }
 0x34e   : > { %2584 = vst [vmem:[%s302_s20] sm:$0x1] %v2579_v0 }
 0x34f PF: > { %s17_s26 = sadd.s32 1, %s3491_s26   ;;  %s4338_s24 = smov %s3487_s25 }
 0x350   : > { %p14_p5 = scmp.ge.s32.totalorder %s17_s26, 4   ;;  %s4339_s25 = smov %s4341_s27 }
 0x352   :  { %16 = sbr.rel (!%p14_p5) target bundleno = 2 (0x2), region = 86 }

// kernel: ensemble_forward.3
= control target key start
LH: loop header
LB: loop body
LE: loop exit
PB: predicated region body
PF: predicated region fallthrough
CT: control target
= control target key end

     0   :  { %s4614_s0 = inlined_call_operand.vmem [shape: bf16[2,8,768], index: 0, kind: input, shape index: {}]   ;;  %s4615_s1 = inlined_call_operand.vmem [shape: bf16[768,128], index: 1, kind: input, shape index: {}]   ;;  %s4616_s2 = inlined_call_operand.vmem [shape: f32[1,128], index: 2, kind: input, shape index: {}]   ;;  %s4617_s3 = inlined_call_operand.vmem [shape: f32[8,128], index: 3, kind: input, shape index: {}]   ;;  %s4618_s4 = inlined_call_operand.vmem [shape: f32[1,128], index: 4, kind: input, shape index: {}]   ;;  %s4619_s5 = inlined_call_operand.vmem [shape: f32[1,128], index: 5, kind: input, shape index: {}]   ;;  %s4620_s6 = inlined_call_operand.vmem [shape: bf16[128,384], index: 6, kind: input, shape index: {}]   ;;  %s4621_s7 = inlined_call_operand.vmem [shape: f32[1,384], index: 7, kind: input, shape index: {}]   ;;  %s4622_s8 = inlined_call_operand.vmem [shape: bf16[128,128], index: 8, kind: input, shape index: {}]   ;;  %s4623_s9 = inlined_call_operand.vmem [shape: f32[1,128], index: 9, kind: input, shape index: {}]   ;;  %s4624_s10 = inlined_call_operand.vmem [shape: f32[1,128], index: 10, kind: input, shape index: {}]   ;;  %s4625_s11 = inlined_call_operand.vmem [shape: f32[1,128], index: 11, kind: input, shape index: {}]   ;;  %s4626_s12 = inlined_call_operand.vmem [shape: bf16[128,512], index: 12, kind: input, shape index: {}]   ;;  %s4627_s13 = inlined_call_operand.vmem [shape: f32[1,512], index: 13, kind: input, shape index: {}]   ;;  %s4628_s14 = inlined_call_operand.vmem [shape: bf16[512,128], index: 14, kind: input, shape index: {}]   ;;  %s4629_s15 = inlined_call_operand.vmem [shape: f32[1,128], index: 15, kind: input, shape index: {}]   ;;  %s4630_s16 = inlined_call_operand.vmem [shape: f32[1,128], index: 16, kind: input, shape index: {}]   ;;  %s4631_s17 = inlined_call_operand.vmem [shape: f32[1,128], index: 17, kind: input, shape index: {}]   ;;  %s4632_s18 = inlined_call_operand.vmem [shape: bf16[128,128], index: 18, kind: input, shape index: {}]   ;;  %s4633_s19 = inlined_call_operand.vmem [shape: f32[1,128], index: 19, kind: input, shape index: {}]   ;;  %s4634_s20 = inlined_call_operand.vmem [shape: f32[2,1,128], index: 20, kind: input, shape index: {}]   ;;  %s4635_s21 = inlined_call_operand.hbm [shape: f32[2,1,128], index: 21, kind: output, shape index: {}]  }
   0x1   :  { %4646 = sst [smem:[#allocation13_spill]] %s4614_s0 }
   0x2   :  { %4647 = sst [smem:[#allocation14_spill]] %s4615_s1 }
   0x3   :  { %4648 = sst [smem:[#allocation15_spill]] %s4616_s2 }
   0x4   :  { %4649 = sst [smem:[#allocation16_spill]] %s4617_s3 }
   0x5   :  { %4650 = sst [smem:[#allocation17_spill]] %s4618_s4 }
   0x6   :  { %4651 = sst [smem:[#allocation18_spill]] %s4619_s5 }
   0x7   :  { %4652 = sst [smem:[#allocation19_spill]] %s4620_s6 }
   0x8   :  { %4653 = sst [smem:[#allocation20_spill]] %s4635_s21 }
   0x9   :  { %26 = vsyncpa [#allocation4], 0 }
   0xa   :  { %28 = vsyncpa [#allocation4 + $0x1], 0  ;;  %s3880_s2 = smov 0   ;;  %s3882_s25 = smov 0  }
   0xb   :  { %s3884_s26 = smov 0   ;;  %s3886_s27 = smov 0  }
   0xc LB: > { %4654 = sst [smem:[#allocation6_spill]] %s3748_s2  ;;  %s3901_s3 = sadd.s32 4294967295, %s3760_s27   ;;  %s3760_s27 = sphi %s3886_s27, %s4675_s27   ;;  %s3756_s26 = sphi %s3884_s26, %s4677_s26   ;;  %s3752_s25 = sphi %s3882_s25, %s4679_s25   ;;  %s3748_s2 = sphi %s3880_s2, %s4678_s2  }
   0xd   : > { %4655 = sst [smem:[#allocation7_spill]] %s3756_s26  ;;  %s2997_s28 = sadd.s32 4294967294, %s3760_s27  }
   0xe   : > { %4656 = sst [smem:[#allocation8_spill]] %s3760_s27  ;;  %s3905_s29 = sadd.s32 1, %s3760_s27  }
   0xf   : > { %4657 = sst [smem:[#allocation9_spill]] %s3905_s29  ;;  %s492_s0 = sadd.s32 1, %s3756_s26 }
  0x10   : > { %s489_s4 = ssub.s32 %s3760_s27, %s3905_s29  ;;  %p502_p0 = scmp.ne.s32.totalorder %s3756_s26, %s3752_s25 }
  0x11   : > { %p490_p1 = scmp.eq.s32.totalorder %s489_s4, 0  ;;  %p503_p2 = scmp.eq.s32.totalorder %s3901_s3, 1 }
  0x12   : > { %p508_p3 = scmp.ne.s32.totalorder %s3752_s25, %s3748_s2  ;;  %p509_p4 = scmp.eq.s32.totalorder %s2997_s28, 1 }
  0x13   : > { %s3916_s30 = scalar_select %p490_p1, %s3756_s26, %s492_s0  }
  0x14   : > { %p3918_p5 = por %p503_p2, %p502_p0  ;;  %p3922_p6 = por %p509_p4, %p508_p3 }
  0x15   : > { %4658 = sst [smem:[#allocation10_spill]] %s3916_s30  ;;  %p3000_p7 = scmp.ge.s32.totalorder %s3760_s27, 1 }
  0x16   : > { %s4659_s5 = scalar_select %p3918_p5, 1, 0 }
  0x17   : > { %s4661_s22 = scalar_select %p3922_p6, 1, 0 }
  0x18   : > { %4660 = sst [smem:[#allocation11_spill]] %s4659_s5  ;;  %p598_p8 = scmp.lt.s32.totalorder %s3760_s27, 3 }
  0x19   : > { %4662 = sst [smem:[#allocation12_spill]] %s4661_s22 }
  0x1a   : > { %p599_p9 = pnand %p3000_p7, %p598_p8 }
  0x1b   : > { %s4663_s24 = sld [smem:[#allocation14_spill]] (!%p599_p9)  ;;  %p660_p10 = scmp.lt.s32.totalorder (!%p599_p9), %s3901_s3, 1 }
  0x1c   : > { %602 = sbr.rel (%p599_p9) target bundleno = 3633 (0xe31), region = 104  ;;  %s4664_s5 = sld [smem:[#allocation13_spill]] (!%p599_p9) }
  0x1d   : > { %s4666_s22 = sld [smem:[#allocation16_spill]] (!%p599_p9)  ;;  %s3766_s29 = smov (!%p599_p9), 32  }
  0x1e   : > { %s4667_s6 = sld [smem:[#allocation19_spill]] (!%p599_p9)  ;;  %s3768_s2 = smov (!%p599_p9), 64  }
  0x1f   : > { %s4668_s30 = sld [smem:[#allocation17_spill]] (!%p599_p9)  ;;  %s3177_s0 = sshll.u32 (!%p599_p9), %s3901_s3, 4 }
  0x20   : > { %s4669_s26 = sld [smem:[#allocation18_spill]] (!%p599_p9) }
  0x21   : > { %v3488_v0 = vld [vmem:[%s4663_s24 + $0x78] sm:$0xff]   ;;  %v3492_v4 = vld [vmem:[%s4663_s24 + $0x70] sm:$0xff]   ;;  %v3496_v8 = vld [vmem:[%s4663_s24 + $0x68] sm:$0xff]   ;;  %s3993_s4 = scalar_select %p660_p10, %s3901_s3, 1  ;;  %vm3764_vm0 = vmmov 0   ;;  %vm1500_vm1 = vcmask 261120  }
  0x22   : > { %v3489_v1 = vld [vmem:[%s4663_s24 + $0x38] sm:$0xff]   ;;  %3180 = vmatprep.subr.bf16.mxu0 %v3488_v0  ;;  %v3493_v5 = vld [vmem:[%s4663_s24 + $0x30] sm:$0xff]   ;;  %v3497_v9 = vld [vmem:[%s4663_s24 + $0x28] sm:$0xff]   ;;  %vm1563_vm2 = vcmask 1043456   ;;  %vm1547_vm4 = vcmask 64512   ;;  %vm1725_vm5 = vcmask 523520  }
  0x23   : > { %v3490_v2 = vld [vmem:[%s4663_s24 + $0xf8] sm:$0xff]   ;;  %3181 = vmatpush3.bf16.msra.mxu0 %v3489_v1  ;;  %v3494_v6 = vld [vmem:[%s4663_s24 + $0xf0] sm:$0xff]   ;;  %v3498_v10 = vld [vmem:[%s4663_s24 + $0xe8] sm:$0xff]   ;;  %s3441_s1 = smul.u32 24, %s3993_s4  ;;  %vm1841_vm6 = vcmask 785920   ;;  %vm1957_vm7 = vcmask 1048320  }
  0x24   : > { %v3491_v3 = vld [vmem:[%s4663_s24 + $0xb8] sm:$0xff]   ;;  %3202 = vmatprep.subr.bf16.mxu1 %v3490_v2  ;;  %3182 = vmatprep.subr.bf16.mxu0 %v3492_v4  ;;  %v3495_v7 = vld [vmem:[%s4663_s24 + $0xb0] sm:$0xff]   ;;  %v3499_v11 = vld [vmem:[%s4663_s24 + $0xa8] sm:$0xff]   ;;  %s3769_s3 = smov [#allocation3]  }
  0x25   : > { %3203 = vmatpush3.bf16.msra.mxu1 %v3491_v3  ;;  %v3500_v12 = vld [vmem:[%s4663_s24 + $0x60] sm:$0xff]   ;;  %v3504_v16 = vld [vmem:[%s4663_s24 + $0x58] sm:$0xff]   ;;  %v3508_v20 = vld [vmem:[%s4663_s24 + $0x50] sm:$0xff]   ;;  %s4023_s27 = scalar_lea.vmem %s4664_s5, %s3441_s1  ;;  %s4665_s1 = sld [smem:[#allocation15_spill]] }
  0x26   : > { %3204 = vmatprep.subr.bf16.mxu1 %v3494_v6  ;;  %v3501_v13 = vld [vmem:[%s4663_s24 + $0x20] sm:$0xff]   ;;  %v3505_v17 = vld [vmem:[%s4663_s24 + $0x18] sm:$0xff]   ;;  %v3509_v21 = vld [vmem:[%s4663_s24 + $0x10] sm:$0xff]  }
  0x27   : > { %3183 = vmatpush3.bf16.msra.mxu0 %v3493_v5  ;;  %v3502_v14 = vld [vmem:[%s4663_s24 + $0xe0] sm:$0xff]   ;;  %v3506_v18 = vld [vmem:[%s4663_s24 + $0xd8] sm:$0xff]   ;;  %v3510_v22 = vld [vmem:[%s4663_s24 + $0xd0] sm:$0xff]  }
  0x28   : > { %3184 = vmatprep.subr.bf16.mxu0 %v3496_v8  ;;  %v3503_v15 = vld [vmem:[%s4663_s24 + $0xa0] sm:$0xff]   ;;  %v3507_v19 = vld [vmem:[%s4663_s24 + $0x98] sm:$0xff]   ;;  %v3511_v23 = vld [vmem:[%s4663_s24 + $0x90] sm:$0xff]  }
  0x29   : > { %3205 = vmatpush3.bf16.msra.mxu1 %v3495_v7  ;;  %v3512_v24 = vld [vmem:[%s4663_s24 + $0x48] sm:$0xff]   ;;  %v3516_v28 = vld [vmem:[%s4663_s24 + $0x40] sm:$0xff]   ;;  %v3522_v35 = vld [vmem:[%s4663_s24 + $0x178] sm:$0xff]  }
  0x2a   : > { %3206 = vmatprep.subr.bf16.mxu1 %v3498_v10  ;;  %v3513_v25 = vld [vmem:[%s4663_s24 + $0x8] sm:$0xff]   ;;  %v3517_v29 = vld [vmem:[%s4663_s24] sm:$0xff]   ;;  %v3525_v39 = vld [vmem:[%s4663_s24 + $0x138] sm:$0xff]  }
  0x2b   : > { %3185 = vmatpush3.bf16.msra.mxu0 %v3497_v9  ;;  %v3514_v26 = vld [vmem:[%s4663_s24 + $0xc8] sm:$0xff]   ;;  %v3518_v30 = vld [vmem:[%s4663_s24 + $0xc0] sm:$0xff]   ;;  %v3526_v40 = vld [vmem:[%s4663_s24 + $0x170] sm:$0xff]  }
  0x2c   : > { %3186 = vmatprep.subr.bf16.mxu0 %v3500_v12  ;;  %v3515_v27 = vld [vmem:[%s4663_s24 + $0x88] sm:$0xff]   ;;  %v669_v31 = vld [vmem:[%s4023_s27] sm:$0xff]  ;;  %v3527_v41 = vld [vmem:[%s4663_s24 + $0x130] sm:$0xff]  }
  0x2d   : > { %3207 = vmatpush3.bf16.msra.mxu1 %v3499_v11  ;;  %v3003_v32 = vcombine.low %v669_v31, %v669_v31  ;;  %v3004_v33 = vcombine.high %v669_v31, %v669_v31  ;;  %v3521_v34 = vld [vmem:[%s4663_s24 + $0x80] sm:$0xff]   ;;  %v670_v36 = vld [vmem:[%s4023_s27 + $0x8] sm:$0xff]  ;;  %v3532_v46 = vld [vmem:[%s4663_s24 + $0x158] sm:$0xff]  }
  0x2e   : > { %3208 = vmatprep.subr.bf16.mxu1 %v3502_v14  ;;  %v3005_v37 = vcombine.low %v670_v36, %v670_v36  ;;  %v3006_v38 = vcombine.high %v670_v36, %v670_v36  ;;  %v3528_v42 = vld [vmem:[%s4663_s24 + $0x168] sm:$0xff]   ;;  %v3530_v44 = vld [vmem:[%s4663_s24 + $0x160] sm:$0xff]   ;;  %v3533_v47 = vld [vmem:[%s4663_s24 + $0x118] sm:$0xff]  }
  0x2f   : > { %3187 = vmatpush3.bf16.msra.mxu0 %v3501_v13  ;;  %1116 = vmatprep.mubr.bf16.mxu0 %v3004_v33  ;;  %v3529_v43 = vld [vmem:[%s4663_s24 + $0x128] sm:$0xff]   ;;  %v3531_v45 = vld [vmem:[%s4663_s24 + $0x120] sm:$0xff]   ;;  %v3534_v48 = vld [vmem:[%s4663_s24 + $0x150] sm:$0xff]  }
  0x30   : > { %3188 = vmatprep.subr.bf16.mxu0 %v3504_v16  ;;  %1156 = vmatprep.mubr.bf16.mxu1 %v3006_v38  ;;  %v671_v49 = vld [vmem:[%s4023_s27 + $0x10] sm:$0xff]  ;;  %v3536_v52 = vld [vmem:[%s4663_s24 + $0x148] sm:$0xff]   ;;  %v3538_v54 = vld [vmem:[%s4663_s24 + $0x140] sm:$0xff]   ;;  %v3762_v16 = vmov 0.0  }
  0x31   : > { %3209 = vmatpush3.bf16.msra.mxu1 %v3503_v15  ;;  %v3008_v50 = vcombine.high %v671_v49, %v671_v49  ;;  %v3535_v51 = vld [vmem:[%s4663_s24 + $0x110] sm:$0xff]   ;;  %v3537_v53 = vld [vmem:[%s4663_s24 + $0x108] sm:$0xff]   ;;  %v3539_v55 = vld [vmem:[%s4663_s24 + $0x100] sm:$0xff]   ;;  %v3007_v56 = vcombine.low %v671_v49, %v671_v49 }
  0x32   : > { %3210 = vmatprep.subr.bf16.mxu1 %v3506_v18  ;;  %v3002_v2 = vld [vmem:[%s4665_s1] ss:$0 sm:$0xff]  ;;  %v3542_v14 = vld [vmem:[%s4667_s6 + $0xa8] ss:$12 sps:$4 sm:$0xff]   ;;  %v3544_v15 = vld [vmem:[%s4667_s6 + $0xac] ss:$12 sps:$4 sm:$0xff]  }
  0x33   : > { %3189 = vmatpush3.bf16.msra.mxu0 %v3505_v17  ;;  %v1204_v10 = vld [vmem:[%s4666_s22] sm:$0xff]  ;;  %v3545_v17 = vld [vmem:[%s4667_s6 + $0xb0] ss:$12 sps:$4 sm:$0xff]   ;;  %v3560_v31 = vld [vmem:[%s4667_s6 + $0x4c] ss:$12 sps:$4 sm:$0xff]   ;;  %s3765_s1 = smov 96   ;;  %s667_s22 = scalar_lea.vmem %s4634_s20, %s3993_s4 }
  0x34   : > { %3190 = vmatprep.subr.bf16.mxu0 %v3508_v20  ;;  %v3548_v18 = vld [vmem:[%s4667_s6 + $0x94] ss:$12 sps:$4 sm:$0xff]   ;;  %v3549_v20 = vld [vmem:[%s4667_s6 + $0x98] ss:$12 sps:$4 sm:$0xff]   ;;  %v3561_v33 = vld [vmem:[%s4667_s6 + $0x50] ss:$12 sps:$4 sm:$0xff]  }
  0x35   : > { %3211 = vmatpush3.bf16.msra.mxu1 %v3507_v19  ;;  %v3546_v19 = vld [vmem:[%s4667_s6 + $0x90] ss:$12 sps:$4 sm:$0xff]  }
  0x36   : > { %3212 = vmatprep.subr.bf16.mxu1 %v3510_v22  ;;  %v3562_v36 = vld [vmem:[%s4667_s6 + $0x30] ss:$12 sps:$4 sm:$0xff]  }
  0x37   : > { %3191 = vmatpush3.bf16.msra.mxu0 %v3509_v21  ;;  %v3568_v38 = vld [vmem:[%s4667_s6 + $0x1c] ss:$12 sps:$4 sm:$0xff]  }
  0x38   : > { %3192 = vmatprep.subr.bf16.mxu0 %v3512_v24 }
  0x39   : > { %3213 = vmatpush3.bf16.msra.mxu1 %v3511_v23 }
  0x3a   : > { %3214 = vmatprep.subr.bf16.mxu1 %v3514_v26  ;;  %v3550_v26 = vld [vmem:[%s4667_s6 + $0x78] ss:$12 sps:$4 sm:$0xff]  }
  0x3b   : > { %3193 = vmatpush3.bf16.msra.mxu0 %v3513_v25  ;;  %v3552_v25 = vld [vmem:[%s4667_s6 + $0x7c] ss:$12 sps:$4 sm:$0xff]  }
  0x3c   : > { %3194 = vmatprep.subr.bf16.mxu0 %v3516_v28  ;;  %v3554_v28 = vld [vmem:[%s4667_s6 + $0x60] ss:$12 sps:$4 sm:$0xff]  }
  0x3d   : > { %3215 = vmatpush3.bf16.msra.mxu1 %v3515_v27  ;;  %v3553_v27 = vld [vmem:[%s4667_s6 + $0x80] ss:$12 sps:$4 sm:$0xff]  }
  0x3e   : > { %3216 = vmatprep.subr.bf16.mxu1 %v3518_v30  ;;  %v3557_v30 = vld [vmem:[%s4667_s6 + $0x68] ss:$12 sps:$4 sm:$0xff]  }
  0x3f   : > { %3195 = vmatpush3.bf16.msra.mxu0 %v3517_v29  ;;  %v3556_v29 = vld [vmem:[%s4667_s6 + $0x64] ss:$12 sps:$4 sm:$0xff]  }
  0x40   : > { %3224 = vmatprep.subr.bf16.mxu0 %v3522_v35  ;;  %v3763_v35 = vmov 0  }
  0x41   : > { %3217 = vmatpush3.bf16.msra.mxu1 %v3521_v34  ;;  %v3564_v34 = vld [vmem:[%s4667_s6 + $0x34] ss:$12 sps:$4 sm:$0xff]  }
  0x42   : > { %1117 = vmatmul.mubr.bf16.vlgmr.msra.gmra.mxu0 %v3003_v32  ;;  %1416 = vmatprep.subr.bf16.mxu1 %v3544_v15  ;;  %v3558_v32 = vld [vmem:[%s4667_s6 + $0x48] ss:$12 sps:$4 sm:$0xff]  }
  0x43   : > { %3225 = vmatpush3.bf16.msra.mxu0 %v3525_v39  ;;  %1196 = vmatprep.mubr.bf16.mxu0 %v3008_v50  ;;  %v3566_v39 = vld [vmem:[%s4667_s6 + $0x18] ss:$12 sps:$4 sm:$0xff]   ;;  %v3058_v50 = vld [vmem:[%s4669_s26] ss:$0 sm:$0xff] }
  0x44   : > { %1157 = vmatmul.mubr.bf16.vlgmr.msra.gmra.mxu1 %v3005_v37  ;;  %3226 = vmatprep.subr.bf16.mxu0 %v3526_v40  ;;  %v3565_v37 = vld [vmem:[%s4667_s6 + $0x38] ss:$12 sps:$4 sm:$0xff]   ;;  %v3569_v40 = vld [vmem:[%s4667_s6 + $0x20] ss:$12 sps:$4 sm:$0xff]  }
  0x45   : > { %1417 = vmatpush1.bf16.msra.mxu1 %v3542_v14  ;;  %1448 = vmatprep.mubr.bf16.mxu1 %v3763_v35 }
  0x46   : > { %1418 = vmatprep.subr.bf16.mxu1 %v3548_v18  ;;  %v3767_v18 = vmov -1e+30  }
  0x47   : > { %3227 = vmatpush3.bf16.msra.mxu0 %v3527_v41  ;;  %v3572_v41 = vld [vmem:[%s4667_s6 + $0x4] ss:$12 sps:$4 sm:$0xff]  }
  0x48   : > { %3228 = vmatprep.subr.bf16.mxu0 %v3528_v42  ;;  %v3570_v42 = vld [vmem:[%s4667_s6] ss:$12 sps:$4 sm:$0xff]  }
  0x49   : > { %1419 = vmatpush1.bf16.msra.mxu1 %v3546_v19 }
  0x4a   : > { %1420 = vmatprep.subr.bf16.mxu1 %v3552_v25 }
  0x4b   : > { %3229 = vmatpush3.bf16.msra.mxu0 %v3529_v43  ;;  %v3573_v43 = vld [vmem:[%s4667_s6 + $0x8] ss:$12 sps:$4 sm:$0xff]   ;;  %s4671_s6 = sld [smem:[#allocation20_spill]] }
  0x4c   : > { %3230 = vmatprep.subr.bf16.mxu0 %v3530_v44 }
  0x4d   : > { %1421 = vmatpush1.bf16.msra.mxu1 %v3550_v26 }
  0x4e   : > { %1422 = vmatprep.subr.bf16.mxu1 %v3556_v29 }
  0x4f   : > { %3231 = vmatpush3.bf16.msra.mxu0 %v3531_v45 }
  0x50   : > { %3232 = vmatprep.subr.bf16.mxu0 %v3532_v46 }
  0x51   : > { %1423 = vmatpush1.bf16.msra.mxu1 %v3554_v28  ;;  %s4579_s21 = scalar_lea.hbm %s4671_s6, %s3177_s0 }
  0x52   : > { %1424 = vmatprep.subr.bf16.mxu1 %v3560_v31 }
  0x53   : > { %3233 = vmatpush3.bf16.msra.mxu0 %v3533_v47 }
  0x54   : > { %3234 = vmatprep.subr.bf16.mxu0 %v3534_v48  ;;  %v3057_v48 = vld [vmem:[%s4668_s30] ss:$0 sm:$0xff] }
  0x55   : > { %1425 = vmatpush1.bf16.msra.mxu1 %v3558_v32 }
  0x56   : > { %1426 = vmatprep.subr.bf16.mxu1 %v3564_v34 }
  0x57   : > { %3235 = vmatpush3.bf16.msra.mxu0 %v3535_v51 }
  0x58   : > { %3236 = vmatprep.subr.bf16.mxu0 %v3536_v52 }
  0x59   : > { %1427 = vmatpush1.bf16.msra.mxu1 %v3562_v36 }
  0x5a   : > { %1428 = vmatprep.subr.bf16.mxu1 %v3568_v38 }
  0x5b   : > { %3237 = vmatpush3.bf16.msra.mxu0 %v3537_v53 }
  0x5c   : > { %3238 = vmatprep.subr.bf16.mxu0 %v3538_v54  ;;  %v1206_v54 = vlaneseq }
  0x5d   : > { %1429 = vmatpush1.bf16.msra.mxu1 %v3566_v39 }
  0x5e   : > { %1430 = vmatprep.subr.bf16.mxu1 %v3572_v41 }
  0x5f   : > { %3239 = vmatpush3.bf16.msra.mxu0 %v3539_v55  ;;  %v4190_v55 = vshrl.u32 %v1206_v54, 7 }
  0x60   : > { %3333 = vmatprep.subr.bf16.mxu0 %v3762_v16 }
  0x61   : > { %1431 = vmatpush1.bf16.msra.mxu1 %v3570_v42 }
  0x62   : > { %1197 = vmatmul.mubr.bf16.vlgmr.msra.gmra.mxu0 %v3007_v56  ;;  %3353 = vmatprep.subr.bf16.mxu1 %v3762_v16  ;;  %v1279_v56 = vsub.s32 1, %v4190_v55 }
  0x63   : > { %3334 = vmatpush3.bf16.msra.mxu0 %v3545_v17  ;;  %3349 = vmatprep.mubr.msk.bf16.mxu0 %vm3764_vm0, %v3762_v16  ;;  %v1207_v17 = vand.u32 127, %v1206_v54 }
  0x64   : > { %3335 = vmatprep.subr.bf16.mxu0 %v3762_v16 }
  0x65   : > { %vm1208_vm3 = vcmp.lt.s32.totalorder %v1207_v17, 5 }
  0x66   : > { %v4216_v19 = vsel %vm1208_vm3, 0.0, %v3767_v18 }
  0x67   : > { %3336 = vmatpush3.bf16.msra.mxu0 %v3549_v20 }
  0x68   : > { %3337 = vmatprep.subr.bf16.mxu0 %v3762_v16 }
  0x6b   : > { %3338 = vmatpush3.bf16.msra.mxu0 %v3553_v27 }
  0x6c   : > { %3339 = vmatprep.subr.bf16.mxu0 %v3762_v16 }
  0x6f   : > { %3340 = vmatpush3.bf16.msra.mxu0 %v3557_v30 }
  0x70   : > { %3341 = vmatprep.subr.bf16.mxu0 %v3762_v16 }
  0x73   : > { %3342 = vmatpush3.bf16.msra.mxu0 %v3561_v33 }
  0x74   : > { %3343 = vmatprep.subr.bf16.mxu0 %v3762_v16 }
  0x77   : > { %3344 = vmatpush3.bf16.msra.mxu0 %v3565_v37 }
  0x78   : > { %3345 = vmatprep.subr.bf16.mxu0 %v3762_v16 }
  0x7b   : > { %3346 = vmatpush3.bf16.msra.mxu0 %v3569_v40 }
  0x7c   : > { %3347 = vmatprep.subr.bf16.mxu0 %v3762_v16 }
  0x7f   : > { %3348 = vmatpush3.bf16.msra.mxu0 %v3573_v43 }
  0x80   : > { %3377 = vmatprep.subr.bf16.mxu0 %v3762_v16 }
 0x102   : > { %v3196_v57 = vpop.f32.mrf.mxu0 }
 0x104   : > { %v3197_v58 = vpop.f32.mrf.mxu0  ;;  %v3218_v59 = vpop.f32.mrf.mxu1 }
 0x105   : > { %v3198_v1 = vadd.f32 %v3197_v58, %v3196_v57  ;;  %v1271_v57 = vld [vmem:[%s4621_s7] sm:$0x7]  ;;  %v1283_v58 = vsub.s32 2, %v4190_v55 }
 0x106   : > { %v3199_v60 = vpop.f32.mrf.mxu0  ;;  %v3219_v61 = vpop.f32.mrf.mxu1 }
 0x107   : > { %v1119_v3 = vadd.f32 %v3198_v1, %v3002_v2  ;;  %v3220_v4 = vadd.f32 %v3219_v61, %v3218_v59  ;;  %v1280_v59 = vrot.slane %v1271_v57, %v1279_v56  ;;  %v1284_v1 = vrot.slane %v1271_v57, %v1283_v58 }
 0x108   : > { %v3200_v62 = vpop.f32.mrf.mxu0  ;;  %v3221_v63 = vpop.f32.mrf.mxu1 }
 0x109   : > { %v1159_v7 = vadd.f32 %v3220_v4, %v1119_v3  ;;  %v1275_v62 = vsub.s32 0, %v4190_v55 }
 0x10a   : > { %v3222_v0 = vpop.f32.mrf.mxu1 }
 0x122   : > { %v3240_v5 = vpop.f32.mrf.mxu0 }
 0x124   : > { %v3241_v6 = vpop.f32.mrf.mxu0 }
 0x125   : > { %v3242_v8 = vadd.f32 %v3241_v6, %v3240_v5  ;;  %v1276_v5 = vrot.slane %v1271_v57, %v1275_v62 }
 0x126   : > { %v3243_v9 = vpop.f32.mrf.mxu0 }
 0x127   : > { %v1199_v11 = vadd.f32 %v3242_v8, %v1159_v7 }
 0x128   : > { %v3244_v12 = vpop.f32.mrf.mxu0 }
 0x129   : > { %v4091_v13 = vadd.f32 %v1204_v10, %v1199_v11 }
 0x12b   : > { %1212 = vadd.xlane.f32.xlu0 %v4091_v13 }
 0x1b4   : > { %v1213_v21 = vpop.xlane.xlu0 %1212 }
 0x1b5   : > { %v1215_v22 = vmul.f32 0.0078125, %v1213_v21 }
 0x1b7   : > { %v1216_v23 = vsub.f32 %v4091_v13, %v1215_v22 }
 0x1b9   : > { %v1217_v24 = vmul.f32 %v1216_v23, %v1216_v23 }
 0x1bb   : > { %1218 = vadd.xlane.f32.xlu0 %v1217_v24 }
 0x244   : > { %v1219_v44 = vpop.xlane.xlu0 %1218 }
 0x245   : > { %v1220_v45 = vmul.f32 0.0078125, %v1219_v44 }
 0x247   : > { %v1221_v46 = vadd.f32 1e-06, %v1220_v45 }
 0x249   : > { %3670 = vrsqrt.f32 %v1221_v46 }
 0x256   : > { %v3671_v47 = vpop.eup %3670 }
 0x257   : > { %v1223_v49 = vmul.f32 %v3671_v47, %v1216_v23 }
 0x259   : > { %v1230_v51 = vmul.f32 %v3057_v48, %v1223_v49 }
 0x25b   : > { %v1237_v52 = vadd.f32 %v3058_v50, %v1230_v51 }
 0x25d   : > { %v1270_v53 = vpack.c.bf16 %v1237_v52, %v1237_v52 }
 0x25f   : > { %1449 = vmatmul.mubr.bf16.vlgmr.msra.gmra.mxu1 %v1270_v53  ;;  %3350 = vmatmul.mubr.bf16.vlgmr.msra.gmra.mxu0 %v1270_v53 }
 0x260   : > { %3355 = vmatprep.mubr.msk.bf16.mxu1 %vm3764_vm0, %v3762_v16  ;;  %3379 = vmatprep.mubr.msk.bf16.mxu0 %vm3764_vm0, %v3762_v16 }
 0x31f   : > { %v1450_v60 = vpop.f32.mrf.mxu1  ;;  %v1491_v61 = vpop.f32.mrf.mxu0 }
 0x320   : > { %v1492_v9 = vadd.f32 %v1491_v61, %v1284_v1  ;;  %v1451_v11 = vadd.f32 %v1450_v60, %v1276_v5 }
 0x321   : > { %v1452_v63 = vpop.f32.mrf.mxu1  ;;  %v3351_v0 = vpop.f32.mrf.mxu0 }
 0x322   : > { %v1453_v2 = vadd.f32 %v1452_v63, %v1280_v59  ;;  %v4207_v12 = vpack.c.bf16 %v1492_v9, %v1492_v9  ;;  %v1497_v14 = vpack.c.bf16 %v1451_v11, %v1451_v11 }
 0x323   : > { %v1454_v3 = vpop.f32.mrf.mxu1  ;;  %v1494_v4 = vpop.f32.mrf.mxu0 }
 0x324   : > { %v1498_v6 = vpack.c.bf16 %v1453_v2, %v1453_v2  ;;  %v1565_v15 = vsel %vm1563_vm2, %v4207_v12, 0 }
 0x325   : > { %v1455_v7 = vpop.f32.mrf.mxu1  ;;  %v3352_v8 = vpop.f32.mrf.mxu0 }
 0x326   : > { %1612 = vrot.lane.b32.xlu0 %v1498_v6, %s3765_s1  ;;  %v1505_v10 = vsel %vm1500_vm1, %v1498_v6, 0 }
 0x327   : > { %3354 = vmatpush3.bf16.xpose.msra.mxu1 %v1505_v10 }
 0x328   : > { %3359 = vmatprep.subr.bf16.mxu1 %v3762_v16 }
 0x32a   : > { %1845 = vrot.lane.b32.xlu0 %v1498_v6, %s3766_s29 }
 0x32e   : > { %3356 = vmatmul.mubr.msk.bf16.vlgmr.msra.gmra.mxu1 %vm1500_vm1, %v1497_v14 }
 0x32f   : > { %3360 = vmatpush3.bf16.msra.mxu1 %v1565_v15  ;;  %3361 = vmatprep.mubr.msk.bf16.mxu1 %vm3764_vm0, %v3762_v16 }
 0x330   : > { %3365 = vmatprep.subr.bf16.mxu1 %v3762_v16 }
 0x398   : > { %v1613_v33 = vpop.permute.xlu0 %1612 }
 0x399   : > { %v1618_v43 = vsel %vm1500_vm1, %v1613_v33, 0 }
 0x39c   : > { %v1846_v38 = vpop.permute.xlu0 %1845 }
 0x39d   : > { %v1851_v41 = vsel %vm1500_vm1, %v1846_v38, 0 }
 0x3ee   : > { %v1541_v20 = vpop.f32.mrf.mxu1 }
 0x3ef   : > { %v1542_v21 = vadd.f32 %v1541_v20, %v4216_v19 }
 0x3f0   : > { %v3357_v22 = vpop.f32.mrf.mxu1 }
 0x3f1   : > { %v1548_v23 = vsel %vm1547_vm4, %v1542_v21, -inf }
 0x3f2   : > { %1549 = vmax.xlane.f32.xlu1 %v1548_v23  ;;  %v1544_v24 = vpop.f32.mrf.mxu1 }
 0x3f4   : > { %v3358_v25 = vpop.f32.mrf.mxu1 }
 0x47b   : > { %v1550_v26 = vpop.xlane.xlu1 %1549 }
 0x47c   : > { %v1551_v27 = vsub.f32 %v1542_v21, %v1550_v26 }
 0x47e   : > { %v1552_v28 = vmul.f32 1.442695, %v1551_v27 }
 0x480   : > { %3672 = vpow2.f32 %v1552_v28 }
 0x48d   : > { %v3673_v29 = vpop.eup %3672 }
 0x48e   : > { %v1554_v30 = vsel %vm1547_vm4, %v3673_v29, 0.0 }
 0x48f   : > { %1555 = vadd.xlane.f32.xlu1 %v1554_v30 }
 0x4a0   : > { %1609 = vrot.lane.b32.xlu1 %v1497_v14, %s3765_s1 }
 0x4a4   : > { %1729 = vrot.lane.b32.xlu1 %v1498_v6, %s3768_s2 }
 0x4a8   : > { %1727 = vrot.lane.b32.xlu1 %v1497_v14, %s3768_s2 }
 0x4ac   : > { %1843 = vrot.lane.b32.xlu1 %v1497_v14, %s3766_s29 }
 0x518   : > { %v1556_v31 = vpop.xlane.xlu1 %1555 }
 0x519   : > { %3674 = vrcp.f32 %v1556_v31 }
 0x51c   : > { %v1610_v32 = vpop.permute.xlu1 %1609 }
 0x520   : > { %v1730_v34 = vpop.permute.xlu1 %1729 }
 0x521   : > { %v1735_v36 = vsel %vm1500_vm1, %v1730_v34, 0 }
 0x522   : > { %3378 = vmatpush3.bf16.xpose.msra.mxu0 %v1735_v36 }
 0x523   : > { %3389 = vmatprep.subr.bf16.mxu0 %v3762_v16 }
 0x524   : > { %v1728_v40 = vpop.permute.xlu1 %1727 }
 0x526   : > { %v3675_v37 = vpop.eup %3674 }
 0x527   : > { %v1558_v39 = vmul.f32 %v3675_v37, %v3673_v29 }
 0x528   : > { %v1844_v44 = vpop.permute.xlu1 %1843 }
 0x529   : > { %3380 = vmatmul.mubr.msk.bf16.vlgmr.msra.gmra.mxu0 %vm1500_vm1, %v1728_v40  ;;  %v1559_v42 = vpack.c.bf16 %v1558_v39, %v1558_v39 }
 0x52a   : > { %3390 = vmatpush3.bf16.xpose.msra.mxu0 %v1851_v41  ;;  %3391 = vmatprep.mubr.msk.bf16.mxu0 %vm3764_vm0, %v3762_v16 }
 0x52b   : > { %3362 = vmatmul.mubr.msk.bf16.vlgmr.msra.gmra.mxu1 %vm1547_vm4, %v1559_v42  ;;  %3401 = vmatprep.subr.bf16.mxu0 %v3762_v16 }
 0x52c   : > { %3366 = vmatpush3.bf16.xpose.msra.mxu1 %v1618_v43  ;;  %3367 = vmatprep.mubr.msk.bf16.mxu1 %vm3764_vm0, %v3762_v16  ;;  %v3574_v43 = vld [vmem:[%s4622_s8 + $0x38] sm:$0xff]  }
 0x52d   : > { %3371 = vmatprep.subr.bf16.mxu1 %v3762_v16 }
 0x531   : > { %3392 = vmatmul.mubr.msk.bf16.vlgmr.msra.gmra.mxu0 %vm1500_vm1, %v1844_v44  ;;  %v3575_v44 = vld [vmem:[%s4622_s8 + $0x30] sm:$0xff]  }
 0x532   : > { %3417 = vmatprep.mubr.msk.bf16.mxu0 %vm3764_vm0, %v3762_v16  ;;  %3402 = vmatpush3.bf16.msra.mxu0 %v3574_v43  ;;  %v3615_v43 = vld [vmem:[%s4626_s12 + $0x48] ss:$16 sps:$4 sm:$0xff]  }
 0x533   : > { %3368 = vmatmul.mubr.msk.bf16.vlgmr.msra.gmra.mxu1 %vm1500_vm1, %v1610_v32  ;;  %3403 = vmatprep.subr.bf16.mxu0 %v3762_v16 }
 0x534   : > { %3373 = vmatprep.mubr.msk.bf16.mxu1 %vm3764_vm0, %v3762_v16 }
 0x536   : > { %3404 = vmatpush3.bf16.msra.mxu0 %v3575_v44  ;;  %v3620_v44 = vld [vmem:[%s4626_s12 + $0x24] ss:$16 sps:$4 sm:$0xff]  }
 0x537   : > { %3405 = vmatprep.subr.bf16.mxu0 %v3762_v16 }
 0x5e9   : > { %v1771_v45 = vpop.f32.mrf.mxu0 }
 0x5ea   : > { %v1772_v46 = vadd.f32 %v1771_v45, %v4216_v19  ;;  %v3576_v45 = vld [vmem:[%s4622_s8 + $0x28] sm:$0xff]  }
 0x5eb   : > { %v1601_v47 = vpop.f32.mrf.mxu1  ;;  %v3381_v48 = vpop.f32.mrf.mxu0  ;;  %3406 = vmatpush3.bf16.msra.mxu0 %v3576_v45  ;;  %v3623_v45 = vld [vmem:[%s4626_s12 + $0x2c] ss:$16 sps:$4 sm:$0xff]  }
 0x5ec   : > { %1607 = vst.msk [vmem:[#allocation2] sm:$0xff] %vm1500_vm1, %v1601_v47  ;;  %v1777_v49 = vsel %vm1547_vm4, %v1772_v46, -inf  ;;  %3407 = vmatprep.subr.bf16.mxu0 %v3762_v16  ;;  %v3578_v47 = vld [vmem:[%s4622_s8 + $0x18] sm:$0xff]   ;;  %v3579_v48 = vld [vmem:[%s4622_s8 + $0x10] sm:$0xff]  }
 0x5ed   : > { %1778 = vmax.xlane.f32.xlu1 %v1777_v49  ;;  %v3363_v50 = vpop.f32.mrf.mxu1  ;;  %v1774_v51 = vpop.f32.mrf.mxu0 }
 0x5ef   : > { %v1604_v52 = vpop.f32.mrf.mxu1  ;;  %v3382_v53 = vpop.f32.mrf.mxu0 }
 0x5f0   : > { %v3580_v52 = vld [vmem:[%s4622_s8 + $0x8] sm:$0xff]  }
 0x5f1   : > { %v3364_v54 = vpop.f32.mrf.mxu1  ;;  %v1887_v57 = vpop.f32.mrf.mxu0 }
 0x5f2   : > { %v1888_v1 = vadd.f32 %v1887_v57, %v4216_v19  ;;  %v3581_v54 = vld [vmem:[%s4622_s8] sm:$0xff]  }
 0x5f3   : > { %v1654_v59 = vpop.f32.mrf.mxu1  ;;  %v3393_v60 = vpop.f32.mrf.mxu0 }
 0x5f4   : > { %v1655_v61 = vadd.f32 %v1654_v59, %v4216_v19  ;;  %v1893_v6 = vsel %vm1547_vm4, %v1888_v1, -inf }
 0x5f5   : > { %v3369_v63 = vpop.f32.mrf.mxu1  ;;  %v1890_v0 = vpop.f32.mrf.mxu0 }
 0x5f6   : > { %v1660_v2 = vsel %vm1547_vm4, %v1655_v61, -inf }
 0x5f7   : > { %v3394_v3 = vpop.f32.mrf.mxu0  ;;  %1661 = vmax.xlane.f32.xlu0 %v1660_v2  ;;  %v1657_v4 = vpop.f32.mrf.mxu1 }
 0x5f9   : > { %v3370_v5 = vpop.f32.mrf.mxu1 }
 0x5fb   : > { %1894 = vmax.xlane.f32.xlu0 %v1893_v6 }
 0x676   : > { %v1779_v7 = vpop.xlane.xlu1 %1778 }
 0x677   : > { %v1780_v8 = vsub.f32 %v1772_v46, %v1779_v7  ;;  %v3577_v46 = vld [vmem:[%s4622_s8 + $0x20] sm:$0xff]  }
 0x678   : > { %3408 = vmatpush3.bf16.msra.mxu0 %v3577_v46  ;;  %v3618_v46 = vld [vmem:[%s4626_s12 + $0x20] ss:$16 sps:$4 sm:$0xff]  }
 0x679   : > { %v1781_v9 = vmul.f32 1.442695, %v1780_v8  ;;  %3409 = vmatprep.subr.bf16.mxu0 %v3762_v16 }
 0x67b   : > { %3676 = vpow2.f32 %v1781_v9  ;;  %v3099_v9 = vld [vmem:[%s4623_s9] ss:$0 sm:$0xff] }
 0x67c   : > { %3410 = vmatpush3.bf16.msra.mxu0 %v3578_v47  ;;  %v3621_v47 = vld [vmem:[%s4626_s12 + $0x28] ss:$16 sps:$4 sm:$0xff]  }
 0x67d   : > { %3411 = vmatprep.subr.bf16.mxu0 %v3762_v16 }
 0x680   : > { %v1662_v10 = vpop.xlane.xlu0 %1661  ;;  %3412 = vmatpush3.bf16.msra.mxu0 %v3579_v48  ;;  %v3626_v48 = vld [vmem:[%s4626_s12 + $0x4] ss:$16 sps:$4 sm:$0xff]  }
 0x681   : > { %v1663_v11 = vsub.f32 %v1655_v61, %v1662_v10  ;;  %3413 = vmatprep.subr.bf16.mxu0 %v3762_v16 }
 0x683   : > { %v1664_v14 = vmul.f32 1.442695, %v1663_v11 }
 0x684   : > { %v1895_v15 = vpop.xlane.xlu0 %1894  ;;  %3414 = vmatpush3.bf16.msra.mxu0 %v3580_v52 }
 0x685   : > { %3678 = vpow2.f32 %v1664_v14  ;;  %v1896_v17 = vsub.f32 %v1888_v1, %v1895_v15  ;;  %3415 = vmatprep.subr.bf16.mxu0 %v3762_v16 }
 0x687   : > { %v1897_v18 = vmul.f32 1.442695, %v1896_v17 }
 0x688   : > { %v3677_v19 = vpop.eup %3676  ;;  %3416 = vmatpush3.bf16.msra.mxu0 %v3581_v54 }
 0x689   : > { %3680 = vpow2.f32 %v1897_v18  ;;  %v1783_v20 = vsel %vm1547_vm4, %v3677_v19, 0.0  ;;  %v3582_v18 = vld [vmem:[%s4626_s12 + $0xe0] ss:$16 sps:$4 sm:$0xff]  }
 0x68a   : > { %1784 = vadd.xlane.f32.xlu0 %v1783_v20  ;;  %v3590_v20 = vld [vmem:[%s4626_s12 + $0xc4] ss:$16 sps:$4 sm:$0xff]  }
 0x692   : > { %v3679_v21 = vpop.eup %3678 }
 0x693   : > { %v1666_v22 = vsel %vm1547_vm4, %v3679_v21, 0.0 }
 0x694   : > { %1667 = vadd.xlane.f32.xlu0 %v1666_v22  ;;  %v3588_v22 = vld [vmem:[%s4626_s12 + $0xc0] ss:$16 sps:$4 sm:$0xff]  }
 0x696   : > { %v3681_v23 = vpop.eup %3680 }
 0x697   : > { %v1899_v24 = vsel %vm1547_vm4, %v3681_v23, 0.0 }
 0x698   : > { %1900 = vadd.xlane.f32.xlu1 %v1899_v24 }
 0x6a9   : > { %1789 = vrot.lane.b32.xlu1 %v4207_v12, %s3768_s2 }
 0x6aa   : > { %1673 = vrot.lane.b32.xlu0 %v4207_v12, %s3765_s1 }
 0x6ad   : > { %1905 = vrot.lane.b32.xlu1 %v4207_v12, %s3766_s29 }
 0x713   : > { %v1785_v25 = vpop.xlane.xlu0 %1784 }
 0x71d   : > { %v1668_v26 = vpop.xlane.xlu0 %1667 }
 0x71e   : > { %3682 = vrcp.f32 %v1668_v26 }
 0x71f   : > { %3684 = vrcp.f32 %v1785_v25 }
 0x721   : > { %v1674_v27 = vpop.permute.xlu0 %1673  ;;  %v1901_v29 = vpop.xlane.xlu1 %1900 }
 0x722   : > { %v1679_v28 = vsel %vm1563_vm2, %v1674_v27, 0  ;;  %3686 = vrcp.f32 %v1901_v29  ;;  %v3599_v29 = vld [vmem:[%s4626_s12 + $0xac] ss:$16 sps:$4 sm:$0xff]  }
 0x723   : > { %3372 = vmatpush3.bf16.msra.mxu1 %v1679_v28  ;;  %v3596_v28 = vld [vmem:[%s4626_s12 + $0xa4] ss:$16 sps:$4 sm:$0xff]  }
 0x724   : > { %3383 = vmatprep.subr.bf16.mxu1 %v3762_v16 }
 0x725   : > { %v1790_v32 = vpop.permute.xlu1 %1789 }
 0x726   : > { %v1795_v36 = vsel %vm1563_vm2, %v1790_v32, 0  ;;  %v3600_v32 = vld [vmem:[%s4626_s12 + $0x80] ss:$16 sps:$4 sm:$0xff]  }
 0x729   : > { %v1906_v37 = vpop.permute.xlu1 %1905 }
 0x72a   : > { %v1911_v40 = vsel %vm1563_vm2, %v1906_v37, 0  ;;  %v3611_v37 = vld [vmem:[%s4626_s12 + $0x6c] ss:$16 sps:$4 sm:$0xff]  }
 0x72b   : > { %v3683_v30 = vpop.eup %3682 }
 0x72c   : > { %v1670_v31 = vmul.f32 %v3683_v30, %v3679_v21  ;;  %v3685_v34 = vpop.eup %3684  ;;  %v3593_v21 = vld [vmem:[%s4626_s12 + $0xcc] ss:$16 sps:$4 sm:$0xff]   ;;  %v3594_v30 = vld [vmem:[%s4626_s12 + $0xa0] ss:$16 sps:$4 sm:$0xff]  }
 0x72d   : > { %v1787_v12 = vmul.f32 %v3685_v34, %v3677_v19  ;;  %v3585_v19 = vld [vmem:[%s4626_s12 + $0xe8] ss:$16 sps:$4 sm:$0xff]  }
 0x72e   : > { %v1671_v33 = vpack.c.bf16 %v1670_v31, %v1670_v31  ;;  %v3597_v31 = vld [vmem:[%s4626_s12 + $0xa8] ss:$16 sps:$4 sm:$0xff]  }
 0x72f   : > { %v1788_v38 = vpack.c.bf16 %v1787_v12, %v1787_v12  ;;  %v3687_v39 = vpop.eup %3686  ;;  %v3603_v34 = vld [vmem:[%s4626_s12 + $0x88] ss:$16 sps:$4 sm:$0xff]   ;;  %v3608_v12 = vld [vmem:[%s4626_s12 + $0x64] ss:$16 sps:$4 sm:$0xff]  }
 0x730   : > { %3374 = vmatmul.mubr.msk.bf16.vlgmr.msra.gmra.mxu1 %vm1547_vm4, %v1671_v33  ;;  %v1903_v41 = vmul.f32 %v3687_v39, %v3681_v23  ;;  %v3591_v23 = vld [vmem:[%s4626_s12 + $0xc8] ss:$16 sps:$4 sm:$0xff]   ;;  %v3602_v33 = vld [vmem:[%s4626_s12 + $0x84] ss:$16 sps:$4 sm:$0xff]  }
 0x731   : > { %3384 = vmatpush3.bf16.msra.mxu1 %v1795_v36  ;;  %3385 = vmatprep.mubr.msk.bf16.mxu1 %vm3764_vm0, %v3762_v16  ;;  %v3605_v36 = vld [vmem:[%s4626_s12 + $0x8c] ss:$16 sps:$4 sm:$0xff]   ;;  %v3609_v39 = vld [vmem:[%s4626_s12 + $0x68] ss:$16 sps:$4 sm:$0xff]  }
 0x732   : > { %3395 = vmatprep.subr.bf16.mxu1 %v3762_v16  ;;  %v1904_v42 = vpack.c.bf16 %v1903_v41, %v1903_v41  ;;  %v3617_v41 = vld [vmem:[%s4626_s12 + $0x4c] ss:$16 sps:$4 sm:$0xff]  }
 0x738   : > { %3386 = vmatmul.mubr.msk.bf16.vlgmr.msra.gmra.mxu1 %vm1547_vm4, %v1788_v38  ;;  %v3606_v38 = vld [vmem:[%s4626_s12 + $0x60] ss:$16 sps:$4 sm:$0xff]  }
 0x739   : > { %3396 = vmatpush3.bf16.msra.mxu1 %v1911_v40  ;;  %3397 = vmatprep.mubr.msk.bf16.mxu1 %vm3764_vm0, %v3762_v16  ;;  %v3614_v40 = vld [vmem:[%s4626_s12 + $0x44] ss:$16 sps:$4 sm:$0xff]  }
 0x740   : > { %3398 = vmatmul.mubr.msk.bf16.vlgmr.msra.gmra.mxu1 %vm1547_vm4, %v1904_v42  ;;  %v3612_v42 = vld [vmem:[%s4626_s12 + $0x40] ss:$16 sps:$4 sm:$0xff]  }
 0x741   : > { %2348 = vmatprep.mubr.bf16.mxu1 %v3763_v35 }
 0x7f0   : > { %v1715_v49 = vpop.f32.mrf.mxu1 }
 0x7f1   : > { %1722 = vrot.lane.b32.xlu1 %v1715_v49, %s3766_s29  ;;  %v3629_v49 = vld [vmem:[%s4626_s12 + $0xc] ss:$16 sps:$4 sm:$0xff]  }
 0x7f2   : > { %v3375_v50 = vpop.f32.mrf.mxu1 }
 0x7f3   : > { %v3624_v50 = vld [vmem:[%s4626_s12] ss:$16 sps:$4 sm:$0xff]  }
 0x7f4   : > { %v1718_v51 = vpop.f32.mrf.mxu1 }
 0x7f5   : > { %v3627_v51 = vld [vmem:[%s4626_s12 + $0x8] ss:$16 sps:$4 sm:$0xff]  }
 0x7f6   : > { %v3376_v53 = vpop.f32.mrf.mxu1 }
 0x7f8   : > { %v1831_v57 = vpop.f32.mrf.mxu1 }
 0x7f9   : > { %1838 = vrot.lane.b32.xlu0 %v1831_v57, %s3768_s2  ;;  %s658_s2 = sand.u32 1, %s3752_s25  }
 0x7fa   : > { %v3387_v59 = vpop.f32.mrf.mxu1  ;;  %s659_s27 = scalar_lea.vmem [#allocation3], %s658_s2  ;;  %s2921_s4 = scalar_lea.sflag [#allocation4], %s658_s2 }
 0x7fb   : > { %v3100_v59 = vld [vmem:[%s4624_s10] ss:$0 sm:$0xff]  ;;  %s2933_s26 = sshll.u32 %s659_s27, 4  ;;  %s2934_s26 = int_to_ptr.vmem [resolvable:$true] %s2933_s26 }
 0x7fc   : > { %v1834_v60 = vpop.f32.mrf.mxu1  ;;  %s3700_s5 = scalar_lea.vmem %s2934_s26, 16 }
 0x7fd   : > { %p3701_p11 = scmp.ne.s32.totalorder %s2934_s26, %s3700_s5 }
 0x7fe   : > { %v3388_v61 = vpop.f32.mrf.mxu1 }
 0x7ff   : > { %v3101_v61 = vld [vmem:[%s4625_s11] ss:$0 sm:$0xff]  ;;  %p3702_p12 = pnand %p3701_p11, %p3918_p5 }
 0x800   : > { %v1947_v63 = vpop.f32.mrf.mxu1 }
 0x801   : > { %1954 = vrot.lane.b32.xlu1 %v1947_v63, %s3765_s1  ;;  %p3703_p13 = pneg %p3702_p12 }
 0x802   : > { %v3399_v0 = vpop.f32.mrf.mxu1 }
 0x804   : > { %v1950_v1 = vpop.f32.mrf.mxu1 }
 0x806   : > { %v3400_v2 = vpop.f32.mrf.mxu1 }
 0x807   : > { %v3630_v2 = vld [vmem:[%s4628_s14 + $0x78] sm:$0xff]  }
 0x863   : > { %v1723_v3 = vpop.permute.xlu1 %1722 }
 0x864   : > { %1726 = vst.msk [vmem:[#allocation2] sm:$0xff] %vm1725_vm5, %v1723_v3  ;;  %v3631_v3 = vld [vmem:[%s4628_s14 + $0xf8] sm:$0xff]  }
 0x86b   : > { %v1839_v4 = vpop.permute.xlu0 %1838 }
 0x86c   : > { %1842 = vst.msk [vmem:[#allocation2] sm:$0xff] %vm1841_vm6, %v1839_v4  ;;  %v3632_v4 = vld [vmem:[%s4628_s14 + $0x38] sm:$0xff]  }
 0x873   : > { %v1955_v5 = vpop.permute.xlu1 %1954 }
 0x874   : > { %1958 = vst.msk [vmem:[#allocation2] sm:$0xff] %vm1957_vm7, %v1955_v5  ;;  %v3633_v5 = vld [vmem:[%s4628_s14 + $0xb8] sm:$0xff]  }
 0x87b   : > { %v1959_v6 = vld [vmem:[#allocation2] sm:$0xff] }
 0x87c   : > { %v1976_v7 = vpack.c.bf16 %v1959_v6, %v1959_v6  ;;  %v3634_v6 = vld [vmem:[%s4628_s14 + $0x70] sm:$0xff]  }
 0x87e   : > { %3418 = vmatmul.mubr.bf16.vlgmr.msra.gmra.mxu0 %v1976_v7  ;;  %v3635_v7 = vld [vmem:[%s4628_s14 + $0xf0] sm:$0xff]  }
 0x87f   : > { %2389 = vmatprep.mubr.bf16.mxu0 %v3763_v35  ;;  %v3584_v35 = vld [vmem:[%s4626_s12 + $0xe4] ss:$16 sps:$4 sm:$0xff]  }
 0x880   : > { %2316 = vmatprep.subr.bf16.mxu1 %v3584_v35  ;;  %v3643_v35 = vld [vmem:[%s4628_s14 + $0xe0] sm:$0xff]  }
 0x881   : > { %2317 = vmatpush1.bf16.msra.mxu1 %v3582_v18  ;;  %v3642_v18 = vld [vmem:[%s4628_s14 + $0x60] sm:$0xff]  }
 0x882   : > { %2318 = vmatprep.subr.bf16.mxu1 %v3590_v20  ;;  %v3646_v20 = vld [vmem:[%s4628_s14 + $0x58] sm:$0xff]  }
 0x885   : > { %2319 = vmatpush1.bf16.msra.mxu1 %v3588_v22  ;;  %v3648_v22 = vld [vmem:[%s4628_s14 + $0x18] sm:$0xff]  }
 0x886   : > { %2320 = vmatprep.subr.bf16.mxu1 %v3596_v28  ;;  %v3654_v28 = vld [vmem:[%s4628_s14 + $0x48] sm:$0xff]  }
 0x889   : > { %2321 = vmatpush1.bf16.msra.mxu1 %v3594_v30  ;;  %v3656_v30 = vld [vmem:[%s4628_s14 + $0x8] sm:$0xff]  }
 0x88a   : > { %2322 = vmatprep.subr.bf16.mxu1 %v3602_v33  ;;  %v3659_v33 = vld [vmem:[%s4628_s14 + $0xc0] sm:$0xff]  }
 0x88d   : > { %2323 = vmatpush1.bf16.msra.mxu1 %v3600_v32  ;;  %v3658_v32 = vld [vmem:[%s4628_s14 + $0x40] sm:$0xff]  }
 0x88e   : > { %2324 = vmatprep.subr.bf16.mxu1 %v3608_v12  ;;  %v2134_v12 = vld [vmem:[%s4627_s13] sm:$0xf] }
 0x891   : > { %2325 = vmatpush1.bf16.msra.mxu1 %v3606_v38  ;;  %v2139_v38 = vrot.slane %v2134_v12, %v1275_v62 }
 0x892   : > { %2326 = vmatprep.subr.bf16.mxu1 %v3614_v40  ;;  %v2143_v40 = vrot.slane %v2134_v12, %v1279_v56 }
 0x895   : > { %2327 = vmatpush1.bf16.msra.mxu1 %v3612_v42 }
 0x896   : > { %2328 = vmatprep.subr.bf16.mxu1 %v3620_v44 }
 0x899   : > { %2329 = vmatpush1.bf16.msra.mxu1 %v3618_v46 }
 0x89a   : > { %2330 = vmatprep.subr.bf16.mxu1 %v3626_v48 }
 0x89d   : > { %2331 = vmatpush1.bf16.msra.mxu1 %v3624_v50 }
 0x89e   : > { %3280 = vmatprep.subr.bf16.mxu1 %v3630_v2 }
 0x93e   : > { %v2059_v8 = vpop.f32.mrf.mxu0 }
 0x93f   : > { %v2065_v10 = vadd.f32 %v2059_v8, %v4091_v13  ;;  %v3587_v13 = vld [vmem:[%s4626_s12 + $0xec] ss:$16 sps:$4 sm:$0xff]   ;;  %v3636_v8 = vld [vmem:[%s4628_s14 + $0x30] sm:$0xff]  }
 0x940   : > { %v3419_v11 = vpop.f32.mrf.mxu0  ;;  %2357 = vmatprep.subr.bf16.mxu0 %v3587_v13  ;;  %v3645_v13 = vld [vmem:[%s4628_s14 + $0xa0] sm:$0xff]  }
 0x941   : > { %v4311_v14 = vadd.f32 %v3099_v9, %v2065_v10  ;;  %2358 = vmatpush1.bf16.msra.mxu0 %v3585_v19  ;;  %v3637_v9 = vld [vmem:[%s4628_s14 + $0xb0] sm:$0xff]   ;;  %v3638_v10 = vld [vmem:[%s4628_s14 + $0x68] sm:$0xff]   ;;  %v3644_v19 = vld [vmem:[%s4628_s14 + $0x20] sm:$0xff]  }
 0x942   : > { %v2062_v15 = vpop.f32.mrf.mxu0  ;;  %2359 = vmatprep.subr.bf16.mxu0 %v3593_v21  ;;  %v3639_v11 = vld [vmem:[%s4628_s14 + $0xe8] sm:$0xff]   ;;  %v3647_v21 = vld [vmem:[%s4628_s14 + $0xd8] sm:$0xff]  }
 0x943   : > { %2076 = vadd.xlane.f32.xlu0 %v4311_v14  ;;  %v3640_v15 = vld [vmem:[%s4628_s14 + $0x28] sm:$0xff]  }
 0x944   : > { %v3420_v17 = vpop.f32.mrf.mxu0 }
 0x945   : > { %2360 = vmatpush1.bf16.msra.mxu0 %v3591_v23  ;;  %v3641_v17 = vld [vmem:[%s4628_s14 + $0xa8] sm:$0xff]   ;;  %v3649_v23 = vld [vmem:[%s4628_s14 + $0x98] sm:$0xff]  }
 0x946   : > { %2361 = vmatprep.subr.bf16.mxu0 %v3599_v29  ;;  %v3655_v29 = vld [vmem:[%s4628_s14 + $0xc8] sm:$0xff]  }
 0x949   : > { %2362 = vmatpush1.bf16.msra.mxu0 %v3597_v31  ;;  %v3657_v31 = vld [vmem:[%s4628_s14 + $0x88] sm:$0xff]  }
 0x94a   : > { %2363 = vmatprep.subr.bf16.mxu0 %v3605_v36  ;;  %v3661_v36 = vld [vmem:[%s4628_s14 + $0x80] sm:$0xff]  }
 0x94d   : > { %2364 = vmatpush1.bf16.msra.mxu0 %v3603_v34  ;;  %v3660_v34 = vld [vmem:[%s4628_s14] sm:$0xff]  }
 0x94e   : > { %2365 = vmatprep.subr.bf16.mxu0 %v3611_v37  ;;  %v2150_v37 = vsub.s32 3, %v4190_v55 }
 0x951   : > { %2366 = vmatpush1.bf16.msra.mxu0 %v3609_v39  ;;  %v2147_v39 = vrot.slane %v2134_v12, %v1283_v58 }
 0x952   : > { %2367 = vmatprep.subr.bf16.mxu0 %v3617_v41  ;;  %v2151_v41 = vrot.slane %v2134_v12, %v2150_v37 }
 0x955   : > { %2368 = vmatpush1.bf16.msra.mxu0 %v3615_v43 }
 0x956   : > { %2369 = vmatprep.subr.bf16.mxu0 %v3623_v45 }
 0x959   : > { %2370 = vmatpush1.bf16.msra.mxu0 %v3621_v47 }
 0x95a   : > { %2371 = vmatprep.subr.bf16.mxu0 %v3629_v49 }
 0x95d   : > { %2372 = vmatpush1.bf16.msra.mxu0 %v3627_v51 }
 0x95e   : > { %3302 = vmatprep.subr.bf16.mxu0 %v3631_v3 }
 0x9cc   : > { %v2077_v24 = vpop.xlane.xlu0 %2076 }
 0x9cd   : > { %v2078_v25 = vmul.f32 0.0078125, %v2077_v24  ;;  %v3650_v24 = vld [vmem:[%s4628_s14 + $0x50] sm:$0xff]  }
 0x9cf   : > { %v2079_v26 = vsub.f32 %v4311_v14, %v2078_v25  ;;  %v3651_v25 = vld [vmem:[%s4628_s14 + $0xd0] sm:$0xff]  }
 0x9d1   : > { %v2080_v27 = vmul.f32 %v2079_v26, %v2079_v26 }
 0x9d3   : > { %2081 = vadd.xlane.f32.xlu1 %v2080_v27  ;;  %v3653_v27 = vld [vmem:[%s4628_s14 + $0x90] sm:$0xff]  }
 0xa5c   : > { %v2082_v52 = vpop.xlane.xlu1 %2081 }
 0xa5d   : > { %v2083_v53 = vmul.f32 0.0078125, %v2082_v52 }
 0xa5f   : > { %v2084_v54 = vadd.f32 1e-06, %v2083_v53 }
 0xa61   : > { %3688 = vrsqrt.f32 %v2084_v54 }
 0xa6e   : > { %v3689_v57 = vpop.eup %3688 }
 0xa6f   : > { %v2086_v60 = vmul.f32 %v3689_v57, %v2079_v26  ;;  %v3652_v26 = vld [vmem:[%s4628_s14 + $0x10] sm:$0xff]  }
 0xa71   : > { %v2093_v63 = vmul.f32 %v3100_v59, %v2086_v60 }
 0xa73   : > { %v2100_v0 = vadd.f32 %v3101_v61, %v2093_v63 }
 0xa75   : > { %v2133_v1 = vpack.c.bf16 %v2100_v0, %v2100_v0 }
 0xa77   : > { %2349 = vmatmul.mubr.bf16.vlgmr.msra.gmra.mxu1 %v2133_v1  ;;  %2390 = vmatmul.mubr.bf16.vlgmr.msra.gmra.mxu0 %v2133_v1 }
 0xa78   : > { %3281 = vmatpush3.bf16.msra.mxu1 %v3632_v4  ;;  %3303 = vmatpush3.bf16.msra.mxu0 %v3633_v5 }
 0xa79   : > { %3282 = vmatprep.subr.bf16.mxu1 %v3634_v6  ;;  %3304 = vmatprep.subr.bf16.mxu0 %v3635_v7 }
 0xa7c   : > { %3283 = vmatpush3.bf16.msra.mxu1 %v3636_v8  ;;  %3305 = vmatpush3.bf16.msra.mxu0 %v3637_v9 }
 0xa7d   : > { %3284 = vmatprep.subr.bf16.mxu1 %v3638_v10  ;;  %3306 = vmatprep.subr.bf16.mxu0 %v3639_v11 }
 0xa80   : > { %3285 = vmatpush3.bf16.msra.mxu1 %v3640_v15  ;;  %3307 = vmatpush3.bf16.msra.mxu0 %v3641_v17 }
 0xa81   : > { %3286 = vmatprep.subr.bf16.mxu1 %v3642_v18  ;;  %3308 = vmatprep.subr.bf16.mxu0 %v3643_v35 }
 0xa84   : > { %3287 = vmatpush3.bf16.msra.mxu1 %v3644_v19  ;;  %3309 = vmatpush3.bf16.msra.mxu0 %v3645_v13 }
 0xa85   : > { %3288 = vmatprep.subr.bf16.mxu1 %v3646_v20  ;;  %3310 = vmatprep.subr.bf16.mxu0 %v3647_v21 }
 0xa88   : > { %3289 = vmatpush3.bf16.msra.mxu1 %v3648_v22  ;;  %3311 = vmatpush3.bf16.msra.mxu0 %v3649_v23 }
 0xa89   : > { %3290 = vmatprep.subr.bf16.mxu1 %v3650_v24  ;;  %3312 = vmatprep.subr.bf16.mxu0 %v3651_v25 }
 0xa8c   : > { %3291 = vmatpush3.bf16.msra.mxu1 %v3652_v26  ;;  %3313 = vmatpush3.bf16.msra.mxu0 %v3653_v27 }
 0xa8d   : > { %3292 = vmatprep.subr.bf16.mxu1 %v3654_v28  ;;  %3314 = vmatprep.subr.bf16.mxu0 %v3655_v29 }
 0xa90   : > { %3293 = vmatpush3.bf16.msra.mxu1 %v3656_v30  ;;  %3315 = vmatpush3.bf16.msra.mxu0 %v3657_v31 }
 0xa91   : > { %3294 = vmatprep.subr.bf16.mxu1 %v3658_v32  ;;  %3316 = vmatprep.subr.bf16.mxu0 %v3659_v33 }
 0xa94   : > { %3295 = vmatpush3.bf16.msra.mxu1 %v3660_v34  ;;  %3317 = vmatpush3.bf16.msra.mxu0 %v3661_v36 }
 0xa95   : > { %3421 = vmatprep.subr.bf16.mxu1 %v3762_v16 }
 0xb37   : > { %v2350_v42 = vpop.f32.mrf.mxu1  ;;  %v2391_v43 = vpop.f32.mrf.mxu0 }
 0xb38   : > { %v2351_v44 = vadd.f32 %v2350_v42, %v2139_v38  ;;  %v2392_v45 = vadd.f32 %v2391_v43, %v2147_v39  ;;  %v3166_v43 = vld [vmem:[%s4629_s15] ss:$0 sm:$0xff] }
 0xb39   : > { %v2352_v46 = vpop.f32.mrf.mxu1  ;;  %v2393_v47 = vpop.f32.mrf.mxu0 }
 0xb3a   : > { %v2398_v48 = vmul.f32 %v2351_v44, %v2351_v44  ;;  %v2400_v49 = vmul.f32 %v2392_v45, %v2392_v45  ;;  %v2353_v50 = vadd.f32 %v2352_v46, %v2143_v40  ;;  %v2394_v51 = vadd.f32 %v2393_v47, %v2151_v41  ;;  %v3662_v46 = vld [vmem:[%s4632_s18 + $0x38] sm:$0xff]   ;;  %v3663_v47 = vld [vmem:[%s4632_s18 + $0x30] sm:$0xff]  }
 0xb3b   : > { %v2354_v52 = vpop.f32.mrf.mxu1  ;;  %v2395_v53 = vpop.f32.mrf.mxu0 }
 0xb3c   : > { %v2402_v62 = vmul.f32 %v2398_v48, %v2351_v44  ;;  %v2404_v54 = vmul.f32 %v2400_v49, %v2392_v45  ;;  %v2399_v57 = vmul.f32 %v2353_v50, %v2353_v50  ;;  %v2401_v58 = vmul.f32 %v2394_v51, %v2394_v51  ;;  %v3665_v52 = vld [vmem:[%s4632_s18 + $0x20] sm:$0xff]   ;;  %v3666_v53 = vld [vmem:[%s4632_s18 + $0x18] sm:$0xff]  }
 0xb3d   : > { %v2355_v59 = vpop.f32.mrf.mxu1  ;;  %v2396_v55 = vpop.f32.mrf.mxu0 }
 0xb3e   : > { %v2406_v56 = vmul.f32 0.044715, %v2402_v62  ;;  %v2408_v60 = vmul.f32 0.044715, %v2404_v54  ;;  %v2403_v61 = vmul.f32 %v2399_v57, %v2353_v50  ;;  %v2405_v63 = vmul.f32 %v2401_v58, %v2394_v51  ;;  %v3667_v62 = vld [vmem:[%s4632_s18 + $0x10] sm:$0xff]   ;;  %v3668_v54 = vld [vmem:[%s4632_s18 + $0x8] sm:$0xff]  }
 0xb3f   : > { %v3669_v57 = vld [vmem:[%s4632_s18] sm:$0xff]  }
 0xb40   : > { %v2410_v0 = vadd.f32 %v2406_v56, %v2351_v44  ;;  %v2412_v1 = vadd.f32 %v2408_v60, %v2392_v45  ;;  %v2407_v2 = vmul.f32 0.044715, %v2403_v61  ;;  %v2409_v3 = vmul.f32 0.044715, %v2405_v63  ;;  %v3167_v60 = vld [vmem:[%s4630_s16] ss:$0 sm:$0xff] }
 0xb41   : > { %v3168_v63 = vld [vmem:[%s4631_s17] ss:$0 sm:$0xff] }
 0xb42   : > { %v2414_v4 = vmul.f32 0.7978846, %v2410_v0  ;;  %v2416_v5 = vmul.f32 0.7978846, %v2412_v1  ;;  %v2411_v6 = vadd.f32 %v2407_v2, %v2353_v50  ;;  %v2413_v7 = vadd.f32 %v2409_v3, %v2394_v51 }
 0xb44   : > { %3690 = vtanh.f32 %v2414_v4  ;;  %v2415_v8 = vmul.f32 0.7978846, %v2411_v6  ;;  %v2417_v9 = vmul.f32 0.7978846, %v2413_v7  ;;  %v2916_v4 = vld [vmem:[%s667_s22] sm:$0x1] }
 0xb45   : > { %3692 = vtanh.f32 %v2416_v5  ;;  %s3704_s22 = sshll.u32 %s3769_s3, 4  ;;  %s3705_s22 = int_to_ptr.vmem [resolvable:$false] %s3704_s22 }
 0xb46   : > { %3694 = vtanh.f32 %v2415_v8  ;;  %s3706_s23 = scalar_lea.vmem %s3705_s22, 32  ;;  %p3707_p0 = scmp.lt.s32.totalorder %s2934_s26, %s3705_s22 }
 0xb47   : > { %3696 = vtanh.f32 %v2417_v9  ;;  %p3708_p1 = scmp.lt.s32.totalorder %s3706_s23, %s3700_s5 }
 0xb49   : > { %p3709_p2 = por %p3708_p1, %p3707_p0 }
 0xb4b   : > { %p3710_p3 = pnand %p3709_p2, %p3703_p13 }
 0xb51   : > { %v3691_v10 = vpop.eup %3690 }
 0xb52   : > { %v3693_v11 = vpop.eup %3692  ;;  %v2422_v15 = vadd.f32 1.0, %v3691_v10 }
 0xb53   : > { %v3695_v17 = vpop.eup %3694  ;;  %v2424_v18 = vadd.f32 1.0, %v3693_v11 }
 0xb54   : > { %v3697_v35 = vpop.eup %3696  ;;  %v2423_v19 = vadd.f32 1.0, %v3695_v17  ;;  %v2426_v13 = vmul.f32 0.5, %v2422_v15 }
 0xb55   : > { %v2425_v20 = vadd.f32 1.0, %v3697_v35  ;;  %v2428_v21 = vmul.f32 0.5, %v2424_v18 }
 0xb56   : > { %v2427_v22 = vmul.f32 0.5, %v2423_v19  ;;  %v2430_v24 = vmul.f32 %v2426_v13, %v2351_v44 }
 0xb57   : > { %v2429_v23 = vmul.f32 0.5, %v2425_v20  ;;  %v2432_v26 = vmul.f32 %v2428_v21, %v2392_v45 }
 0xb58   : > { %v2431_v25 = vmul.f32 %v2427_v22, %v2353_v50  ;;  %v2498_v30 = vpack.c.bf16 %v2430_v24, %v2430_v24 }
 0xb59   : > { %v2433_v27 = vmul.f32 %v2429_v23, %v2394_v51  ;;  %v2500_v31 = vpack.c.bf16 %v2432_v26, %v2432_v26  ;;  %v3664_v51 = vld [vmem:[%s4632_s18 + $0x28] sm:$0xff]  }
 0xb5a   : > { %v2499_v28 = vpack.c.bf16 %v2431_v25, %v2431_v25 }
 0xb5b   : > { %v2501_v29 = vpack.c.bf16 %v2433_v27, %v2433_v27 }
 0xb5c   : > { %2726 = vmatprep.mubr.bf16.mxu1 %v2499_v28 }
 0xb5d   : > { %2766 = vmatprep.mubr.bf16.mxu0 %v2501_v29  ;;  %2727 = vmatmul.mubr.bf16.vlgmr.msra.gmra.mxu1 %v2498_v30 }
 0xb5e   : > { %2767 = vmatmul.mubr.bf16.vlgmr.msra.gmra.mxu0 %v2500_v31  ;;  %3437 = vmatprep.mubr.msk.bf16.mxu1 %vm3764_vm0, %v3762_v16 }
 0xb5f   : > { %3422 = vmatpush3.bf16.msra.mxu1 %v3662_v46 }
 0xb60   : > { %3423 = vmatprep.subr.bf16.mxu1 %v3762_v16 }
 0xb63   : > { %3424 = vmatpush3.bf16.msra.mxu1 %v3663_v47 }
 0xb64   : > { %3425 = vmatprep.subr.bf16.mxu1 %v3762_v16 }
 0xb67   : > { %3426 = vmatpush3.bf16.msra.mxu1 %v3664_v51 }
 0xb68   : > { %3427 = vmatprep.subr.bf16.mxu1 %v3762_v16 }
 0xb6b   : > { %3428 = vmatpush3.bf16.msra.mxu1 %v3665_v52 }
 0xb6c   : > { %3429 = vmatprep.subr.bf16.mxu1 %v3762_v16 }
 0xb6f   : > { %3430 = vmatpush3.bf16.msra.mxu1 %v3666_v53 }
 0xb70   : > { %3431 = vmatprep.subr.bf16.mxu1 %v3762_v16 }
 0xb73   : > { %3432 = vmatpush3.bf16.msra.mxu1 %v3667_v62 }
 0xb74   : > { %3433 = vmatprep.subr.bf16.mxu1 %v3762_v16 }
 0xb77   : > { %3434 = vmatpush3.bf16.msra.mxu1 %v3668_v54 }
 0xb78   : > { %3435 = vmatprep.subr.bf16.mxu1 %v3762_v16  ;;  %v2827_v16 = vld [vmem:[%s4633_s19] sm:$0x1] }
 0xb7b   : > { %3436 = vmatpush3.bf16.msra.mxu1 %v3669_v57 }
 0xc1d   : > { %v3296_v32 = vpop.f32.mrf.mxu1 }
 0xc1e   : > { %v3318_v33 = vpop.f32.mrf.mxu0 }
 0xc1f   : > { %v3297_v34 = vpop.f32.mrf.mxu1 }
 0xc20   : > { %v3298_v36 = vadd.f32 %v3297_v34, %v3296_v32  ;;  %v3319_v12 = vpop.f32.mrf.mxu0 }
 0xc21   : > { %v3320_v37 = vadd.f32 %v3319_v12, %v3318_v33  ;;  %v3299_v38 = vpop.f32.mrf.mxu1 }
 0xc22   : > { %v3321_v39 = vpop.f32.mrf.mxu0 }
 0xc23   : > { %v2769_v40 = vadd.f32 %v3320_v37, %v3298_v36  ;;  %v3300_v41 = vpop.f32.mrf.mxu1 }
 0xc24   : > { %v3322_v42 = vpop.f32.mrf.mxu0 }
 0xc25   : > { %v2774_v44 = vadd.f32 %v2769_v40, %v4311_v14 }
 0xc27   : > { %v2782_v45 = vadd.f32 %v3166_v43, %v2774_v44 }
 0xc29   : > { %2785 = vadd.xlane.f32.xlu0 %v2782_v45 }
 0xcb2   : > { %v2786_v48 = vpop.xlane.xlu0 %2785 }
 0xcb3   : > { %v2787_v49 = vmul.f32 0.0078125, %v2786_v48 }
 0xcb5   : > { %v2788_v50 = vsub.f32 %v2782_v45, %v2787_v49 }
 0xcb7   : > { %v2789_v14 = vmul.f32 %v2788_v50, %v2788_v50 }
 0xcb9   : > { %2790 = vadd.xlane.f32.xlu0 %v2789_v14 }
 0xd42   : > { %v2791_v58 = vpop.xlane.xlu0 %2790 }
 0xd43   : > { %v2792_v59 = vmul.f32 0.0078125, %v2791_v58 }
 0xd45   : > { %v2793_v55 = vadd.f32 1e-06, %v2792_v59 }
 0xd47   : > { %3698 = vrsqrt.f32 %v2793_v55 }
 0xd54   : > { %v3699_v56 = vpop.eup %3698 }
 0xd55   : > { %v2795_v61 = vmul.f32 %v3699_v56, %v2788_v50 }
 0xd57   : > { %v2802_v0 = vmul.f32 %v3167_v60, %v2795_v61 }
 0xd59   : > { %v2809_v1 = vadd.f32 %v3168_v63, %v2802_v0 }
 0xd5b   : > { %v2826_v2 = vpack.c.bf16 %v2809_v1, %v2809_v1 }
 0xd5d   : > { %3438 = vmatmul.mubr.bf16.vlgmr.msra.gmra.mxu1 %v2826_v2 }
 0xe1d   : > { %v2910_v3 = vpop.f32.mrf.mxu1 }
 0xe1e   : > { %v2911_v5 = vadd.f32 %v2910_v3, %v2827_v16 }
 0xe1f   : > { %v3439_v6 = vpop.f32.mrf.mxu1 }
 0xe20   : > { %v2917_v7 = vadd.f32 %v2916_v4, %v2911_v5 }
 0xe21   : > { %v2913_v8 = vpop.f32.mrf.mxu1 }
 0xe22   : > { %v2918_v9 = vmul.f32 0.5, %v2917_v7 }
 0xe23   : > { %v3440_v10 = vpop.f32.mrf.mxu1 }
 0xe24   : > { %2919 = vst [vmem:[%s659_s27] sm:$0x1] %v2918_v9 }
 0xe25   : > { %3713 = shalt.err (!%p3710_p3)
}
 0xe26   : > { %s3714_s28 = scalar_lea.hbm %s4579_s21, 16  ;;  %s3718_s27 = scalar_lea.hbm %s4671_s6, 32 }
 0xe27   : > { %p3715_p4 = scmp.ne.s32.totalorder %s4579_s21, %s3714_s28  ;;  %p3719_p9 = scmp.lt.s32.totalorder %s4579_s21, %s4671_s6 }
 0xe28   : > { %p3720_p10 = scmp.lt.s32.totalorder %s3718_s27, %s3714_s28 }
 0xe29   : > { %p3716_p7 = pnand %p3715_p4, %p3918_p5 }
 0xe2a   : > { %p3721_p11 = por %p3720_p10, %p3719_p9 }
 0xe2b   : > { %p3717_p8 = pneg %p3716_p7 }
 0xe2d   : > { %p3722_p12 = pnand %p3721_p11, %p3717_p8 }
 0xe2f   : > { %3725 = shalt.err (!%p3722_p12)
}
 0xe30   : > { %3442 = dma.vmem_to_hbm [thread:$0]  (%p3918_p5), %s2934_s26, 16, %s4579_s21, %s2921_s4  }
 0xe31 PF: > { %s4672_s5 = sld [smem:[#allocation8_spill]] }
 0xe32   : > { %s4673_s3 = sld [smem:[#allocation6_spill]] }
 0xe37   : > { %p3448_p13 = scmp.ge.s32.totalorder %s4672_s5, 2 }
 0xe38   : > { %s2945_s23 = sand.u32 1, %s4673_s3  }
 0xe39   : > { %p3445_p0 = pnand %p3448_p13, %p3922_p6  ;;  %s2946_s2 = scalar_lea.sflag [#allocation4], %s2945_s23 }
 0xe3b   : > { %p3446_p1 = pneg %p3445_p0 }
 0xe3d   : > { %3743 = dma.done.wait (%p3446_p1), %s2946_s2, 16  }
 0xe3e   : > { %3745 = vsyncadd (%p3446_p1), %s2946_s2, 4294967280  ;;  %s4675_s27 = sld [smem:[#allocation9_spill]]  ;;  %s4678_s2 = smov %s3752_s25 }
 0xe3f   : > { %s4676_s28 = sld [smem:[#allocation7_spill]] }
 0xe40   : > { %s4677_s26 = sld [smem:[#allocation10_spill]] }
 0xe44   : > { %p31_p2 = scmp.ge.s32.totalorder %s4675_s27, 4  }
 0xe45   : > { %s4679_s25 = smov %s4676_s28 }
 0xe46   :  { %33 = sbr.rel (!%p31_p2) target bundleno = 12 (0xc), region = 142 }
 0xe4b   :  { %2950 = vsyncpa [#allocation4], 1 }
 0xe4c   :  { %2952 = vsyncpa [#allocation4 + $0x1], 1 }

</bundles_post_ra>
